<compile_context>
chip_gen: v5e
topology: v5e:2x2
jax: 0.10.0
libtpu: 0.0.40
codegen_flags: <defaults>
</compile_context>

<pallas_src>
import functools

import jax
import jax.numpy as jnp
from jax.experimental import pallas as pl
from jax.experimental.pallas import tpu as pltpu


# Low-res row/col offsets (into the zero-padded low-res input) used by output phase a (or b):
# phase 0 -> offsets (0, 1), phase 1 -> offsets (1, 2).
_OFFS = ((0, 1), (1, 2))

# _COMB[phase][local_tap][orig_tap]: how the three original 3x3 taps along one axis collapse
# onto the two low-res taps of that phase (nearest upsampling duplicates pixels).
_COMB = (
    ((1.0, 0.0, 0.0),   # phase 0, offset 0 <- w[0]
     (0.0, 1.0, 1.0)),  # phase 0, offset 1 <- w[1] + w[2]
    ((1.0, 1.0, 0.0),   # phase 1, offset 1 <- w[0] + w[1]
     (0.0, 0.0, 1.0)),  # phase 1, offset 2 <- w[2]
)


def _round_up(x: int, m: int) -> int:
    return ((x + m - 1) // m) * m


def _pick_block_h(H: int, W: int, C: int, itemsize: int,
                  budget_bytes: int = 24 * 2**20) -> int:
    """Row-block size Hb (even) from a VMEM budget, then balanced so Hp ~= H."""
    in_row = (W + 2) * C * itemsize                       # main input rows
    out_row = 2 * W * 2 * C * itemsize                    # output rows (2W x 2C per low-res row)
    slab_row = (W + 2) * C * itemsize                     # slab scratch
    tmp_row = 2 * W * C * itemsize + 2 * W * C * 4        # lhs temps + fp32 accumulators
    per_row = 2 * in_row + 2 * out_row + slab_row + tmp_row
    fixed = 2 * (16 * C * C * itemsize + 4 * C) + 4 * (W + 2) * C * itemsize
    hb = max(2, (budget_bytes - fixed) // max(per_row, 1))
    hb = min(hb, max(H, 2), 512)
    if hb >= 8:
        hb = (hb // 8) * 8
    else:
        hb = max(2, hb - (hb % 2))
    # Balance: keep the padded row count Hp = n_blocks * Hb as close to H as possible.
    n_blk = max(1, -(-H // hb))
    hb = max(2, _round_up(-(-H // n_blk), 2))
    return int(hb)


def _upsample_conv_kernel(xm_ref, xh_ref, w_ref, b_ref, o_ref, slab_ref):
    # xm_ref : (1, Hb, W+2, C)   main low-res rows of this block (padded, channels-last)
    # xh_ref : (1, 2,  W+2, C)   2-row halo directly below the block
    # w_ref  : (4, 4, C, C)      phase-combined 2x2 conv weights (VMEM-resident)
    # b_ref  : (1, C)            bias (fp32, VMEM-resident)
    # o_ref  : (1, Hb, 2W, 2C)   out[0, li, a*W + j, b*C + c] = y[2*(i0+li)+a, 2j+b, c]
    # slab_ref: (Hb+2, W+2, C)   VMEM scratch holding the block's padded row slab
    Hb = xm_ref.shape[1]
    Wp2 = xm_ref.shape[2]
    C = xm_ref.shape[3]
    W = Wp2 - 2

    # Assemble the (Hb+2)-row slab once; all 9 tap windows are cheap VMEM slices of it.
    slab_ref[0:Hb, :, :] = xm_ref[0]
    slab_ref[Hb:Hb + 2, :, :] = xh_ref[0]

    bias = b_ref[...].astype(jnp.float32)                              # (1, C)

    for a in range(2):                                                  # output row phase
        for bph in range(2):                                            # output col phase
            p = 2 * a + bph
            acc = None
            for ri in range(2):                                         # the phase's 2x2 taps
                r = _OFFS[a][ri]
                for si in range(2):
                    s = _OFFS[bph][si]
                    lhs = slab_ref[r:r + Hb, s:s + W, :].reshape(Hb * W, C)
                    rhs = w_ref[p, 2 * ri + si]                          # (Cin, Cout)
                    t = jnp.dot(lhs, rhs, preferred_element_type=jnp.float32)
                    acc = t if acc is None else acc + t
            y = (acc + bias).astype(o_ref.dtype).reshape(Hb, W, C)
            o_ref[0, :, a * W:(a + 1) * W, bph * C:(bph + 1) * C] = y


def upsample(x, w, b, *, block_h=None):
    """UpSample.forward: nearest 2x upsample then Conv2d(C, C, 3, padding=1).

    x: (N, C, H, W) NCHW (as in PyTorch); w: (C, C, 3, 3) OIHW; b: (C,).
    Returns (N, C, 2H, 2W).
    """
    N, C, H, W = x.shape
    assert w.shape == (C, C, 3, 3) and b.shape == (C,)
    dtype = x.dtype
    itemsize = jnp.dtype(dtype).itemsize

    Hb = block_h if block_h is not None else _pick_block_h(H, W, C, itemsize)
    assert Hb >= 2 and Hb % 2 == 0, "row block must be even (2-row halo indexing)"
    Hp = _round_up(H, Hb)

    # ---- XLA-side layout prep (pure data movement) -------------------------------------
    x_nhwc = jnp.transpose(x, (0, 2, 3, 1))                            # (N, H, W, C)
    # 1-pixel zero halo (+ extra zero rows so Hp | row blocks); extra rows only affect
    # output rows >= H, which are sliced off below.
    xp = jnp.pad(x_nhwc, ((0, 0), (1, 1 + Hp - H), (1, 1), (0, 0)))    # (N, Hp+2, W+2, C)

    # Phase-combined weights wk[2a+b, 2ri+si, ci, co] and bias, kept VMEM-resident.
    comb = jnp.asarray(_COMB, dtype=jnp.float32)                        # (2, 2, 3)
    w_t = jnp.transpose(w, (2, 3, 1, 0)).astype(jnp.float32)            # (kh, kw, Cin, Cout)
    wk = jnp.einsum('arh,bsw,hwio->abrsio', comb, comb, w_t)
    wk = wk.reshape(4, 4, C, C).astype(dtype)
    bias = b.reshape(1, C).astype(jnp.float32)

    # ---- VMEM budget ---------------------------------------------------------------------
    blk_in = (Hb + 2) * (W + 2) * C * itemsize
    blk_out = Hb * 2 * W * 2 * C * itemsize
    blk_w = 16 * C * C * itemsize + 4 * C
    slab = (Hb + 2) * (W + 2) * C * itemsize
    tmps = 4 * Hb * W * C * 4
    vmem_limit = int(min(64 * 2**20,
                         max(32 * 2**20,
                             2 * (blk_in + blk_out + blk_w) + slab + tmps + 4 * 2**20)))

    halo_stride = Hb // 2   # halo block (size 2) index for row block i is (i+1)*Hb/2

    out = pl.pallas_call(
        _upsample_conv_kernel,
        out_shape=jax.ShapeDtypeStruct((N, Hp, 2 * W, 2 * C), dtype),
        grid_spec=pltpu.PrefetchScalarGridSpec(
            num_scalar_prefetch=0,
            grid=(N, Hp // Hb),
            in_specs=[
                # main Hb rows of the padded input
                pl.BlockSpec((1, Hb, W + 2, C), lambda n, i: (n, i, 0, 0)),
                # 2-row halo below the block (same array passed a second time)
                pl.BlockSpec((1, 2, W + 2, C),
                             lambda n, i: (n, (i + 1) * halo_stride, 0, 0)),
                # resident phase-combined weights + bias
                pl.BlockSpec((4, 4, C, C), lambda n, i: (0, 0, 0, 0)),
                pl.BlockSpec((1, C), lambda n, i: (0, 0)),
            ],
            out_specs=pl.BlockSpec((1, Hb, 2 * W, 2 * C), lambda n, i: (n, i, 0, 0)),
            scratch_shapes=[pltpu.VMEM((Hb + 2, W + 2, C), dtype)],
        ),
        compiler_params=pltpu.CompilerParams(
            dimension_semantics=("parallel", "parallel"),
            vmem_limit_bytes=vmem_limit,
        ),
    )(xp, xp, wk, bias)

    # (N, H, 2W, 2C) -> (N, 2H, 2W, C) is a pure (free) reshape of the phase-packed layout.
    y = out[:, :H].reshape(N, 2 * H, 2 * W, C)
    return jnp.transpose(y, (0, 3, 1, 2))                              # (N, C, 2H, 2W)


def _reference_upsample(x, w, b):
    """Pure-JAX reference: nearest 2x upsample + 3x3 same conv (NCHW / OIHW)."""
    x_up = jnp.repeat(jnp.repeat(x, 2, axis=2), 2, axis=3)
    y = jax.lax.conv_general_dilated(
        x_up, w, window_strides=(1, 1), padding=((1, 1), (1, 1)),
        dimension_numbers=('NCHW', 'OIHW', 'NCHW'),
        precision=jax.lax.Precision.HIGHEST)
    return y + b.reshape(1, -1, 1, 1)


if __name__ == "__main__":
    def _run_check(N, C, H, W, block_h=None):
        key = jax.random.PRNGKey(0)
        kx, kw, kb = jax.random.split(key, 3)
        x = jax.random.normal(kx, (N, C, H, W), dtype=jnp.float32)
        bound = 1.0 / (C * 3 * 3) ** 0.5            # PyTorch Conv2d default init range
        w = jax.random.uniform(kw, (C, C, 3, 3), jnp.float32, -bound, bound)
        b = jax.random.uniform(kb, (C,), jnp.float32, -bound, bound)

        fn = jax.jit(functools.partial(upsample, block_h=block_h))
        y = jax.block_until_ready(fn(x, w, b))

        y_ref = _reference_upsample(x, w, b)
        assert y.shape == (N, C, 2 * H, 2 * W)
        max_err = float(jnp.max(jnp.abs(y - y_ref)))
        assert jnp.allclose(y, y_ref, atol=1e-4, rtol=1e-4), f"max_err={max_err}"

    _run_check(2, 4, 16, 16)                 # required small config (single row block / sample)
    _run_check(1, 8, 12, 16, block_h=8)      # multi row-block + halo + padded-rows path
    print("KERNEL_OK")
</pallas_src>

<mosaic_0001>
module attributes {stable_mosaic.version = 11 : i64} {
  func.func @_upsample_conv_kernel(%arg0: i32, %arg1: i32, %arg2: memref<1x16x18x4xf32, #tpu.memory_space<vmem>>, %arg3: memref<1x2x18x4xf32, #tpu.memory_space<vmem>>, %arg4: memref<4x4x4x4xf32, #tpu.memory_space<vmem>>, %arg5: memref<1x4xf32, #tpu.memory_space<vmem>>, %arg6: memref<1x16x32x8xf32, #tpu.memory_space<vmem>>, %arg7: memref<18x18x4xf32, #tpu.memory_space<vmem>>) attributes {dimension_semantics = [#tpu.dimension_semantics<parallel>, #tpu.dimension_semantics<parallel>], iteration_bounds = array<i64: 2, 1>, scalar_prefetch = 0 : i64, scratch_operands = 1 : i64, tpu.core_type = #tpu.core_type<tc>, window_params = [{transform_indices = @transform_0, window_bounds = array<i64: 1, 16, 18, 4>}, {transform_indices = @transform_1, window_bounds = array<i64: 1, 2, 18, 4>}, {pipeline_mode = #tpu.pipeline_mode<synchronous>, transform_indices = @transform_2, window_bounds = array<i64: 4, 4, 4, 4>}, {pipeline_mode = #tpu.pipeline_mode<synchronous>, transform_indices = @transform_3, window_bounds = array<i64: 1, 4>}, {transform_indices = @transform_4, window_bounds = array<i64: 1, 16, 32, 8>}]} {
    %c0 = arith.constant 0 : index
    %c0_0 = arith.constant 0 : index
    %c0_1 = arith.constant 0 : index
    %c0_2 = arith.constant 0 : index
    %0 = vector.load %arg2[%c0, %c0_0, %c0_1, %c0_2] : memref<1x16x18x4xf32, #tpu.memory_space<vmem>>, vector<1x16x18x4xf32>
    %1 = vector.shape_cast %0 : vector<1x16x18x4xf32> to vector<16x18x4xf32>
    %c0_3 = arith.constant 0 : index
    %c0_4 = arith.constant 0 : index
    %c0_5 = arith.constant 0 : index
    %2 = vector.load %arg7[%c0_3, %c0_4, %c0_5] : memref<18x18x4xf32, #tpu.memory_space<vmem>>, vector<16x18x4xf32>
    tpu.vector_store %arg7[%c0_3, %c0_4, %c0_5], %1 {strides = array<i32>} : memref<18x18x4xf32, #tpu.memory_space<vmem>>, vector<16x18x4xf32>,
    %c0_6 = arith.constant 0 : index
    %c0_7 = arith.constant 0 : index
    %c0_8 = arith.constant 0 : index
    %c0_9 = arith.constant 0 : index
    %3 = vector.load %arg3[%c0_6, %c0_7, %c0_8, %c0_9] : memref<1x2x18x4xf32, #tpu.memory_space<vmem>>, vector<1x2x18x4xf32>
    %4 = vector.shape_cast %3 : vector<1x2x18x4xf32> to vector<2x18x4xf32>
    %c16 = arith.constant 16 : index
    %c0_10 = arith.constant 0 : index
    %c0_11 = arith.constant 0 : index
    %5 = vector.load %arg7[%c16, %c0_10, %c0_11] : memref<18x18x4xf32, #tpu.memory_space<vmem>>, vector<2x18x4xf32>
    tpu.vector_store %arg7[%c16, %c0_10, %c0_11], %4 {strides = array<i32>} : memref<18x18x4xf32, #tpu.memory_space<vmem>>, vector<2x18x4xf32>,
    %c0_12 = arith.constant 0 : index
    %c0_13 = arith.constant 0 : index
    %6 = vector.load %arg5[%c0_12, %c0_13] : memref<1x4xf32, #tpu.memory_space<vmem>>, vector<1x4xf32>
    %c0_14 = arith.constant 0 : index
    %c0_15 = arith.constant 0 : index
    %c0_16 = arith.constant 0 : index
    %7 = vector.load %arg7[%c0_14, %c0_15, %c0_16] : memref<18x18x4xf32, #tpu.memory_space<vmem>>, vector<16x16x4xf32>
    %8 = vector.shape_cast %7 : vector<16x16x4xf32> to vector<256x4xf32>
    %c0_17 = arith.constant 0 : index
    %c0_18 = arith.constant 0 : index
    %c0_19 = arith.constant 0 : index
    %c0_20 = arith.constant 0 : index
    %9 = vector.load %arg4[%c0_17, %c0_18, %c0_19, %c0_20] : memref<4x4x4x4xf32, #tpu.memory_space<vmem>>, vector<1x1x4x4xf32>
    %10 = vector.shape_cast %9 : vector<1x1x4x4xf32> to vector<4x4xf32>
    %cst = arith.constant dense<0.000000e+00> : vector<256x4xf32>
    %11 = tpu.matmul %8, %10, %cst {dimension_numbers = #tpu.dot_dimension_numbers<[1], [0], [0], [1], [0, 0, 1, 1], [], []>} : vector<256x4xf32>, vector<4x4xf32>, vector<256x4xf32> -> vector<256x4xf32>
    %c0_21 = arith.constant 0 : index
    %c1 = arith.constant 1 : index
    %c0_22 = arith.constant 0 : index
    %12 = vector.load %arg7[%c0_21, %c1, %c0_22] : memref<18x18x4xf32, #tpu.memory_space<vmem>>, vector<16x16x4xf32>
    %13 = vector.shape_cast %12 : vector<16x16x4xf32> to vector<256x4xf32>
    %c0_23 = arith.constant 0 : index
    %c1_24 = arith.constant 1 : index
    %c0_25 = arith.constant 0 : index
    %c0_26 = arith.constant 0 : index
    %14 = vector.load %arg4[%c0_23, %c1_24, %c0_25, %c0_26] : memref<4x4x4x4xf32, #tpu.memory_space<vmem>>, vector<1x1x4x4xf32>
    %15 = vector.shape_cast %14 : vector<1x1x4x4xf32> to vector<4x4xf32>
    %cst_27 = arith.constant dense<0.000000e+00> : vector<256x4xf32>
    %16 = tpu.matmul %13, %15, %cst_27 {dimension_numbers = #tpu.dot_dimension_numbers<[1], [0], [0], [1], [0, 0, 1, 1], [], []>} : vector<256x4xf32>, vector<4x4xf32>, vector<256x4xf32> -> vector<256x4xf32>
    %17 = arith.addf %11, %16 : vector<256x4xf32>
    %c1_28 = arith.constant 1 : index
    %c0_29 = arith.constant 0 : index
    %c0_30 = arith.constant 0 : index
    %18 = vector.load %arg7[%c1_28, %c0_29, %c0_30] : memref<18x18x4xf32, #tpu.memory_space<vmem>>, vector<16x16x4xf32>
    %19 = vector.shape_cast %18 : vector<16x16x4xf32> to vector<256x4xf32>
    %c0_31 = arith.constant 0 : index
    %c2 = arith.constant 2 : index
    %c0_32 = arith.constant 0 : index
    %c0_33 = arith.constant 0 : index
    %20 = vector.load %arg4[%c0_31, %c2, %c0_32, %c0_33] : memref<4x4x4x4xf32, #tpu.memory_space<vmem>>, vector<1x1x4x4xf32>
    %21 = vector.shape_cast %20 : vector<1x1x4x4xf32> to vector<4x4xf32>
    %cst_34 = arith.constant dense<0.000000e+00> : vector<256x4xf32>
    %22 = tpu.matmul %19, %21, %cst_34 {dimension_numbers = #tpu.dot_dimension_numbers<[1], [0], [0], [1], [0, 0, 1, 1], [], []>} : vector<256x4xf32>, vector<4x4xf32>, vector<256x4xf32> -> vector<256x4xf32>
    %23 = arith.addf %17, %22 : vector<256x4xf32>
    %c1_35 = arith.constant 1 : index
    %c1_36 = arith.constant 1 : index
    %c0_37 = arith.constant 0 : index
    %24 = vector.load %arg7[%c1_35, %c1_36, %c0_37] : memref<18x18x4xf32, #tpu.memory_space<vmem>>, vector<16x16x4xf32>
    %25 = vector.shape_cast %24 : vector<16x16x4xf32> to vector<256x4xf32>
    %c0_38 = arith.constant 0 : index
    %c3 = arith.constant 3 : index
    %c0_39 = arith.constant 0 : index
    %c0_40 = arith.constant 0 : index
    %26 = vector.load %arg4[%c0_38, %c3, %c0_39, %c0_40] : memref<4x4x4x4xf32, #tpu.memory_space<vmem>>, vector<1x1x4x4xf32>
    %27 = vector.shape_cast %26 : vector<1x1x4x4xf32> to vector<4x4xf32>
    %cst_41 = arith.constant dense<0.000000e+00> : vector<256x4xf32>
    %28 = tpu.matmul %25, %27, %cst_41 {dimension_numbers = #tpu.dot_dimension_numbers<[1], [0], [0], [1], [0, 0, 1, 1], [], []>} : vector<256x4xf32>, vector<4x4xf32>, vector<256x4xf32> -> vector<256x4xf32>
    %29 = arith.addf %23, %28 : vector<256x4xf32>
    %30 = vector.broadcast %6 : vector<1x4xf32> to vector<256x4xf32>
    %31 = arith.addf %29, %30 : vector<256x4xf32>
    %32 = vector.shape_cast %31 : vector<256x4xf32> to vector<16x16x4xf32>
    %c0_42 = arith.constant 0 : index
    %c0_43 = arith.constant 0 : index
    %c0_44 = arith.constant 0 : index
    %c0_45 = arith.constant 0 : index
    %33 = vector.load %arg6[%c0_42, %c0_43, %c0_44, %c0_45] : memref<1x16x32x8xf32, #tpu.memory_space<vmem>>, vector<1x16x16x4xf32>
    %34 = vector.shape_cast %33 : vector<1x16x16x4xf32> to vector<16x16x4xf32>
    %35 = vector.shape_cast %32 : vector<16x16x4xf32> to vector<1x16x16x4xf32>
    tpu.vector_store %arg6[%c0_42, %c0_43, %c0_44, %c0_45], %35 {strides = array<i32>} : memref<1x16x32x8xf32, #tpu.memory_space<vmem>>, vector<1x16x16x4xf32>,
    %c0_46 = arith.constant 0 : index
    %c1_47 = arith.constant 1 : index
    %c0_48 = arith.constant 0 : index
    %36 = vector.load %arg7[%c0_46, %c1_47, %c0_48] : memref<18x18x4xf32, #tpu.memory_space<vmem>>, vector<16x16x4xf32>
    %37 = vector.shape_cast %36 : vector<16x16x4xf32> to vector<256x4xf32>
    %c1_49 = arith.constant 1 : index
    %c0_50 = arith.constant 0 : index
    %c0_51 = arith.constant 0 : index
    %c0_52 = arith.constant 0 : index
    %38 = vector.load %arg4[%c1_49, %c0_50, %c0_51, %c0_52] : memref<4x4x4x4xf32, #tpu.memory_space<vmem>>, vector<1x1x4x4xf32>
    %39 = vector.shape_cast %38 : vector<1x1x4x4xf32> to vector<4x4xf32>
    %cst_53 = arith.constant dense<0.000000e+00> : vector<256x4xf32>
    %40 = tpu.matmul %37, %39, %cst_53 {dimension_numbers = #tpu.dot_dimension_numbers<[1], [0], [0], [1], [0, 0, 1, 1], [], []>} : vector<256x4xf32>, vector<4x4xf32>, vector<256x4xf32> -> vector<256x4xf32>
    %c0_54 = arith.constant 0 : index
    %c2_55 = arith.constant 2 : index
    %c0_56 = arith.constant 0 : index
    %41 = vector.load %arg7[%c0_54, %c2_55, %c0_56] : memref<18x18x4xf32, #tpu.memory_space<vmem>>, vector<16x16x4xf32>
    %42 = vector.shape_cast %41 : vector<16x16x4xf32> to vector<256x4xf32>
    %c1_57 = arith.constant 1 : index
    %c1_58 = arith.constant 1 : index
    %c0_59 = arith.constant 0 : index
    %c0_60 = arith.constant 0 : index
    %43 = vector.load %arg4[%c1_57, %c1_58, %c0_59, %c0_60] : memref<4x4x4x4xf32, #tpu.memory_space<vmem>>, vector<1x1x4x4xf32>
    %44 = vector.shape_cast %43 : vector<1x1x4x4xf32> to vector<4x4xf32>
    %cst_61 = arith.constant dense<0.000000e+00> : vector<256x4xf32>
    %45 = tpu.matmul %42, %44, %cst_61 {dimension_numbers = #tpu.dot_dimension_numbers<[1], [0], [0], [1], [0, 0, 1, 1], [], []>} : vector<256x4xf32>, vector<4x4xf32>, vector<256x4xf32> -> vector<256x4xf32>
    %46 = arith.addf %40, %45 : vector<256x4xf32>
    %c1_62 = arith.constant 1 : index
    %c1_63 = arith.constant 1 : index
    %c0_64 = arith.constant 0 : index
    %47 = vector.load %arg7[%c1_62, %c1_63, %c0_64] : memref<18x18x4xf32, #tpu.memory_space<vmem>>, vector<16x16x4xf32>
    %48 = vector.shape_cast %47 : vector<16x16x4xf32> to vector<256x4xf32>
    %c1_65 = arith.constant 1 : index
    %c2_66 = arith.constant 2 : index
    %c0_67 = arith.constant 0 : index
    %c0_68 = arith.constant 0 : index
    %49 = vector.load %arg4[%c1_65, %c2_66, %c0_67, %c0_68] : memref<4x4x4x4xf32, #tpu.memory_space<vmem>>, vector<1x1x4x4xf32>
    %50 = vector.shape_cast %49 : vector<1x1x4x4xf32> to vector<4x4xf32>
    %cst_69 = arith.constant dense<0.000000e+00> : vector<256x4xf32>
    %51 = tpu.matmul %48, %50, %cst_69 {dimension_numbers = #tpu.dot_dimension_numbers<[1], [0], [0], [1], [0, 0, 1, 1], [], []>} : vector<256x4xf32>, vector<4x4xf32>, vector<256x4xf32> -> vector<256x4xf32>
    %52 = arith.addf %46, %51 : vector<256x4xf32>
    %c1_70 = arith.constant 1 : index
    %c2_71 = arith.constant 2 : index
    %c0_72 = arith.constant 0 : index
    %53 = vector.load %arg7[%c1_70, %c2_71, %c0_72] : memref<18x18x4xf32, #tpu.memory_space<vmem>>, vector<16x16x4xf32>
    %54 = vector.shape_cast %53 : vector<16x16x4xf32> to vector<256x4xf32>
    %c1_73 = arith.constant 1 : index
    %c3_74 = arith.constant 3 : index
    %c0_75 = arith.constant 0 : index
    %c0_76 = arith.constant 0 : index
    %55 = vector.load %arg4[%c1_73, %c3_74, %c0_75, %c0_76] : memref<4x4x4x4xf32, #tpu.memory_space<vmem>>, vector<1x1x4x4xf32>
    %56 = vector.shape_cast %55 : vector<1x1x4x4xf32> to vector<4x4xf32>
    %cst_77 = arith.constant dense<0.000000e+00> : vector<256x4xf32>
    %57 = tpu.matmul %54, %56, %cst_77 {dimension_numbers = #tpu.dot_dimension_numbers<[1], [0], [0], [1], [0, 0, 1, 1], [], []>} : vector<256x4xf32>, vector<4x4xf32>, vector<256x4xf32> -> vector<256x4xf32>
    %58 = arith.addf %52, %57 : vector<256x4xf32>
    %59 = vector.broadcast %6 : vector<1x4xf32> to vector<256x4xf32>
    %60 = arith.addf %58, %59 : vector<256x4xf32>
    %61 = vector.shape_cast %60 : vector<256x4xf32> to vector<16x16x4xf32>
    %c0_78 = arith.constant 0 : index
    %c0_79 = arith.constant 0 : index
    %c0_80 = arith.constant 0 : index
    %c4 = arith.constant 4 : index
    %62 = vector.load %arg6[%c0_78, %c0_79, %c0_80, %c4] : memref<1x16x32x8xf32, #tpu.memory_space<vmem>>, vector<1x16x16x4xf32>
    %63 = vector.shape_cast %62 : vector<1x16x16x4xf32> to vector<16x16x4xf32>
    %64 = vector.shape_cast %61 : vector<16x16x4xf32> to vector<1x16x16x4xf32>
    tpu.vector_store %arg6[%c0_78, %c0_79, %c0_80, %c4], %64 {strides = array<i32>} : memref<1x16x32x8xf32, #tpu.memory_space<vmem>>, vector<1x16x16x4xf32>,
    %c1_81 = arith.constant 1 : index
    %c0_82 = arith.constant 0 : index
    %c0_83 = arith.constant 0 : index
    %65 = vector.load %arg7[%c1_81, %c0_82, %c0_83] : memref<18x18x4xf32, #tpu.memory_space<vmem>>, vector<16x16x4xf32>
    %66 = vector.shape_cast %65 : vector<16x16x4xf32> to vector<256x4xf32>
    %c2_84 = arith.constant 2 : index
    %c0_85 = arith.constant 0 : index
    %c0_86 = arith.constant 0 : index
    %c0_87 = arith.constant 0 : index
    %67 = vector.load %arg4[%c2_84, %c0_85, %c0_86, %c0_87] : memref<4x4x4x4xf32, #tpu.memory_space<vmem>>, vector<1x1x4x4xf32>
    %68 = vector.shape_cast %67 : vector<1x1x4x4xf32> to vector<4x4xf32>
    %cst_88 = arith.constant dense<0.000000e+00> : vector<256x4xf32>
    %69 = tpu.matmul %66, %68, %cst_88 {dimension_numbers = #tpu.dot_dimension_numbers<[1], [0], [0], [1], [0, 0, 1, 1], [], []>} : vector<256x4xf32>, vector<4x4xf32>, vector<256x4xf32> -> vector<256x4xf32>
    %c1_89 = arith.constant 1 : index
    %c1_90 = arith.constant 1 : index
    %c0_91 = arith.constant 0 : index
    %70 = vector.load %arg7[%c1_89, %c1_90, %c0_91] : memref<18x18x4xf32, #tpu.memory_space<vmem>>, vector<16x16x4xf32>
    %71 = vector.shape_cast %70 : vector<16x16x4xf32> to vector<256x4xf32>
    %c2_92 = arith.constant 2 : index
    %c1_93 = arith.constant 1 : index
    %c0_94 = arith.constant 0 : index
    %c0_95 = arith.constant 0 : index
    %72 = vector.load %arg4[%c2_92, %c1_93, %c0_94, %c0_95] : memref<4x4x4x4xf32, #tpu.memory_space<vmem>>, vector<1x1x4x4xf32>
    %73 = vector.shape_cast %72 : vector<1x1x4x4xf32> to vector<4x4xf32>
    %cst_96 = arith.constant dense<0.000000e+00> : vector<256x4xf32>
    %74 = tpu.matmul %71, %73, %cst_96 {dimension_numbers = #tpu.dot_dimension_numbers<[1], [0], [0], [1], [0, 0, 1, 1], [], []>} : vector<256x4xf32>, vector<4x4xf32>, vector<256x4xf32> -> vector<256x4xf32>
    %75 = arith.addf %69, %74 : vector<256x4xf32>
    %c2_97 = arith.constant 2 : index
    %c0_98 = arith.constant 0 : index
    %c0_99 = arith.constant 0 : index
    %76 = vector.load %arg7[%c2_97, %c0_98, %c0_99] : memref<18x18x4xf32, #tpu.memory_space<vmem>>, vector<16x16x4xf32>
    %77 = vector.shape_cast %76 : vector<16x16x4xf32> to vector<256x4xf32>
    %c2_100 = arith.constant 2 : index
    %c2_101 = arith.constant 2 : index
    %c0_102 = arith.constant 0 : index
    %c0_103 = arith.constant 0 : index
    %78 = vector.load %arg4[%c2_100, %c2_101, %c0_102, %c0_103] : memref<4x4x4x4xf32, #tpu.memory_space<vmem>>, vector<1x1x4x4xf32>
    %79 = vector.shape_cast %78 : vector<1x1x4x4xf32> to vector<4x4xf32>
    %cst_104 = arith.constant dense<0.000000e+00> : vector<256x4xf32>
    %80 = tpu.matmul %77, %79, %cst_104 {dimension_numbers = #tpu.dot_dimension_numbers<[1], [0], [0], [1], [0, 0, 1, 1], [], []>} : vector<256x4xf32>, vector<4x4xf32>, vector<256x4xf32> -> vector<256x4xf32>
    %81 = arith.addf %75, %80 : vector<256x4xf32>
    %c2_105 = arith.constant 2 : index
    %c1_106 = arith.constant 1 : index
    %c0_107 = arith.constant 0 : index
    %82 = vector.load %arg7[%c2_105, %c1_106, %c0_107] : memref<18x18x4xf32, #tpu.memory_space<vmem>>, vector<16x16x4xf32>
    %83 = vector.shape_cast %82 : vector<16x16x4xf32> to vector<256x4xf32>
    %c2_108 = arith.constant 2 : index
    %c3_109 = arith.constant 3 : index
    %c0_110 = arith.constant 0 : index
    %c0_111 = arith.constant 0 : index
    %84 = vector.load %arg4[%c2_108, %c3_109, %c0_110, %c0_111] : memref<4x4x4x4xf32, #tpu.memory_space<vmem>>, vector<1x1x4x4xf32>
    %85 = vector.shape_cast %84 : vector<1x1x4x4xf32> to vector<4x4xf32>
    %cst_112 = arith.constant dense<0.000000e+00> : vector<256x4xf32>
    %86 = tpu.matmul %83, %85, %cst_112 {dimension_numbers = #tpu.dot_dimension_numbers<[1], [0], [0], [1], [0, 0, 1, 1], [], []>} : vector<256x4xf32>, vector<4x4xf32>, vector<256x4xf32> -> vector<256x4xf32>
    %87 = arith.addf %81, %86 : vector<256x4xf32>
    %88 = vector.broadcast %6 : vector<1x4xf32> to vector<256x4xf32>
    %89 = arith.addf %87, %88 : vector<256x4xf32>
    %90 = vector.shape_cast %89 : vector<256x4xf32> to vector<16x16x4xf32>
    %c0_113 = arith.constant 0 : index
    %c0_114 = arith.constant 0 : index
    %c16_115 = arith.constant 16 : index
    %c0_116 = arith.constant 0 : index
    %91 = vector.load %arg6[%c0_113, %c0_114, %c16_115, %c0_116] : memref<1x16x32x8xf32, #tpu.memory_space<vmem>>, vector<1x16x16x4xf32>
    %92 = vector.shape_cast %91 : vector<1x16x16x4xf32> to vector<16x16x4xf32>
    %93 = vector.shape_cast %90 : vector<16x16x4xf32> to vector<1x16x16x4xf32>
    tpu.vector_store %arg6[%c0_113, %c0_114, %c16_115, %c0_116], %93 {strides = array<i32>} : memref<1x16x32x8xf32, #tpu.memory_space<vmem>>, vector<1x16x16x4xf32>,
    %c1_117 = arith.constant 1 : index
    %c1_118 = arith.constant 1 : index
    %c0_119 = arith.constant 0 : index
    %94 = vector.load %arg7[%c1_117, %c1_118, %c0_119] : memref<18x18x4xf32, #tpu.memory_space<vmem>>, vector<16x16x4xf32>
    %95 = vector.shape_cast %94 : vector<16x16x4xf32> to vector<256x4xf32>
    %c3_120 = arith.constant 3 : index
    %c0_121 = arith.constant 0 : index
    %c0_122 = arith.constant 0 : index
    %c0_123 = arith.constant 0 : index
    %96 = vector.load %arg4[%c3_120, %c0_121, %c0_122, %c0_123] : memref<4x4x4x4xf32, #tpu.memory_space<vmem>>, vector<1x1x4x4xf32>
    %97 = vector.shape_cast %96 : vector<1x1x4x4xf32> to vector<4x4xf32>
    %cst_124 = arith.constant dense<0.000000e+00> : vector<256x4xf32>
    %98 = tpu.matmul %95, %97, %cst_124 {dimension_numbers = #tpu.dot_dimension_numbers<[1], [0], [0], [1], [0, 0, 1, 1], [], []>} : vector<256x4xf32>, vector<4x4xf32>, vector<256x4xf32> -> vector<256x4xf32>
    %c1_125 = arith.constant 1 : index
    %c2_126 = arith.constant 2 : index
    %c0_127 = arith.constant 0 : index
    %99 = vector.load %arg7[%c1_125, %c2_126, %c0_127] : memref<18x18x4xf32, #tpu.memory_space<vmem>>, vector<16x16x4xf32>
    %100 = vector.shape_cast %99 : vector<16x16x4xf32> to vector<256x4xf32>
    %c3_128 = arith.constant 3 : index
    %c1_129 = arith.constant 1 : index
    %c0_130 = arith.constant 0 : index
    %c0_131 = arith.constant 0 : index
    %101 = vector.load %arg4[%c3_128, %c1_129, %c0_130, %c0_131] : memref<4x4x4x4xf32, #tpu.memory_space<vmem>>, vector<1x1x4x4xf32>
    %102 = vector.shape_cast %101 : vector<1x1x4x4xf32> to vector<4x4xf32>
    %cst_132 = arith.constant dense<0.000000e+00> : vector<256x4xf32>
    %103 = tpu.matmul %100, %102, %cst_132 {dimension_numbers = #tpu.dot_dimension_numbers<[1], [0], [0], [1], [0, 0, 1, 1], [], []>} : vector<256x4xf32>, vector<4x4xf32>, vector<256x4xf32> -> vector<256x4xf32>
    %104 = arith.addf %98, %103 : vector<256x4xf32>
    %c2_133 = arith.constant 2 : index
    %c1_134 = arith.constant 1 : index
    %c0_135 = arith.constant 0 : index
    %105 = vector.load %arg7[%c2_133, %c1_134, %c0_135] : memref<18x18x4xf32, #tpu.memory_space<vmem>>, vector<16x16x4xf32>
    %106 = vector.shape_cast %105 : vector<16x16x4xf32> to vector<256x4xf32>
    %c3_136 = arith.constant 3 : index
    %c2_137 = arith.constant 2 : index
    %c0_138 = arith.constant 0 : index
    %c0_139 = arith.constant 0 : index
    %107 = vector.load %arg4[%c3_136, %c2_137, %c0_138, %c0_139] : memref<4x4x4x4xf32, #tpu.memory_space<vmem>>, vector<1x1x4x4xf32>
    %108 = vector.shape_cast %107 : vector<1x1x4x4xf32> to vector<4x4xf32>
    %cst_140 = arith.constant dense<0.000000e+00> : vector<256x4xf32>
    %109 = tpu.matmul %106, %108, %cst_140 {dimension_numbers = #tpu.dot_dimension_numbers<[1], [0], [0], [1], [0, 0, 1, 1], [], []>} : vector<256x4xf32>, vector<4x4xf32>, vector<256x4xf32> -> vector<256x4xf32>
    %110 = arith.addf %104, %109 : vector<256x4xf32>
    %c2_141 = arith.constant 2 : index
    %c2_142 = arith.constant 2 : index
    %c0_143 = arith.constant 0 : index
    %111 = vector.load %arg7[%c2_141, %c2_142, %c0_143] : memref<18x18x4xf32, #tpu.memory_space<vmem>>, vector<16x16x4xf32>
    %112 = vector.shape_cast %111 : vector<16x16x4xf32> to vector<256x4xf32>
    %c3_144 = arith.constant 3 : index
    %c3_145 = arith.constant 3 : index
    %c0_146 = arith.constant 0 : index
    %c0_147 = arith.constant 0 : index
    %113 = vector.load %arg4[%c3_144, %c3_145, %c0_146, %c0_147] : memref<4x4x4x4xf32, #tpu.memory_space<vmem>>, vector<1x1x4x4xf32>
    %114 = vector.shape_cast %113 : vector<1x1x4x4xf32> to vector<4x4xf32>
    %cst_148 = arith.constant dense<0.000000e+00> : vector<256x4xf32>
    %115 = tpu.matmul %112, %114, %cst_148 {dimension_numbers = #tpu.dot_dimension_numbers<[1], [0], [0], [1], [0, 0, 1, 1], [], []>} : vector<256x4xf32>, vector<4x4xf32>, vector<256x4xf32> -> vector<256x4xf32>
    %116 = arith.addf %110, %115 : vector<256x4xf32>
    %117 = vector.broadcast %6 : vector<1x4xf32> to vector<256x4xf32>
    %118 = arith.addf %116, %117 : vector<256x4xf32>
    %119 = vector.shape_cast %118 : vector<256x4xf32> to vector<16x16x4xf32>
    %c0_149 = arith.constant 0 : index
    %c0_150 = arith.constant 0 : index
    %c16_151 = arith.constant 16 : index
    %c4_152 = arith.constant 4 : index
    %120 = vector.load %arg6[%c0_149, %c0_150, %c16_151, %c4_152] : memref<1x16x32x8xf32, #tpu.memory_space<vmem>>, vector<1x16x16x4xf32>
    %121 = vector.shape_cast %120 : vector<1x16x16x4xf32> to vector<16x16x4xf32>
    %122 = vector.shape_cast %119 : vector<16x16x4xf32> to vector<1x16x16x4xf32>
    tpu.vector_store %arg6[%c0_149, %c0_150, %c16_151, %c4_152], %122 {strides = array<i32>} : memref<1x16x32x8xf32, #tpu.memory_space<vmem>>, vector<1x16x16x4xf32>,
    return
  }
  func.func @transform_0(%arg0: i32, %arg1: i32) -> (i32, i32, i32, i32) {
    %c0_i32 = arith.constant 0 : i32
    %c0_i32_0 = arith.constant 0 : i32
    %c0_i32_1 = arith.constant 0 : i32
    return %arg0, %arg1, %c0_i32, %c0_i32_0 : i32, i32, i32, i32
  }
  func.func @transform_1(%arg0: i32, %arg1: i32) -> (i32, i32, i32, i32) {
    %c1_i32 = arith.constant 1 : i32
    %0 = arith.addi %arg1, %c1_i32 : i32
    %c8_i32 = arith.constant 8 : i32
    %1 = arith.muli %0, %c8_i32 : i32
    %c0_i32 = arith.constant 0 : i32
    %c0_i32_0 = arith.constant 0 : i32
    %c0_i32_1 = arith.constant 0 : i32
    return %arg0, %1, %c0_i32, %c0_i32_0 : i32, i32, i32, i32
  }
  func.func @transform_2(%arg0: i32, %arg1: i32) -> (i32, i32, i32, i32) {
    %c0_i32 = arith.constant 0 : i32
    %c0_i32_0 = arith.constant 0 : i32
    %c0_i32_1 = arith.constant 0 : i32
    %c0_i32_2 = arith.constant 0 : i32
    %c0_i32_3 = arith.constant 0 : i32
    return %c0_i32, %c0_i32_0, %c0_i32_1, %c0_i32_2 : i32, i32, i32, i32
  }
  func.func @transform_3(%arg0: i32, %arg1: i32) -> (i32, i32) {
    %c0_i32 = arith.constant 0 : i32
    %c0_i32_0 = arith.constant 0 : i32
    %c0_i32_1 = arith.constant 0 : i32
    return %c0_i32, %c0_i32_0 : i32, i32
  }
  func.func @transform_4(%arg0: i32, %arg1: i32) -> (i32, i32, i32, i32) {
    %c0_i32 = arith.constant 0 : i32
    %c0_i32_0 = arith.constant 0 : i32
    %c0_i32_1 = arith.constant 0 : i32
    return %arg0, %arg1, %c0_i32, %c0_i32_0 : i32, i32, i32, i32
  }
}

</mosaic_0001>

<bundles_post_ra>
// kernel: upsample.1
= control target key start
LH: loop header
LB: loop body
LE: loop exit
PB: predicated region body
PF: predicated region fallthrough
CT: control target
= control target key end

     0   :  { %s5898_s15 = smov 0   ;;  %s5900_s16 = smov 0   ;;  %s7110_s0 = inlined_call_operand.vmem [shape: f32[2,18,18,4], index: 0, kind: input, shape index: {}, may-alias: {0,1}]   ;;  %s7111_s1 = inlined_call_operand.vmem [shape: f32[2,18,18,4], index: 1, kind: input, shape index: {}, may-alias: {0,1}]   ;;  %s7112_s2 = inlined_call_operand.vmem [shape: f32[4,4,4,4], index: 2, kind: input, shape index: {}]   ;;  %s7113_s3 = inlined_call_operand.vmem [shape: f32[1,4], index: 3, kind: input, shape index: {}]   ;;  %s7114_s4 = inlined_call_operand.vmem [shape: f32[2,16,32,8], index: 4, kind: output, shape index: {}]  }
   0x1   :  { %s5902_s17 = smov 0  }
   0x2 LB: > { %s26_s18 = sadd.s32 1, %s5866_s16  ;;  %p5263_p0 = scmp.ge.s32.totalorder %s5870_s17, 1  ;;  %s5870_s17 = sphi %s5902_s17, %s14_s17   ;;  %s5866_s16 = sphi %s5900_s16, %s7116_s16   ;;  %s5862_s15 = sphi %s5898_s15, %s7115_s15  }
   0x3   : > { %p28_p1 = scmp.ge.s32.totalorder %s26_s18, 2  ;;  %p220_p2 = scmp.lt.s32.totalorder %s5870_s17, 3 }
   0x5   : > { %s7118_s18 = smov (%p28_p1, %s26_s18), 0  ;;  %p221_p3 = pnand %p5263_p0, %p220_p2 }
   0x6   : > { %p279_p4 = scmp.lt.s32.totalorder (!%p221_p3), %s5862_s15, 1  ;;  %s5872_s10 = smov (!%p221_p3), 4  }
   0x7   : > { %224 = sbr.rel (%p221_p3) target bundleno = 1297 (0x511), region = 36 }
   0xc   : > { %vm595_vm0 = vcmask 1043456   ;;  %v5335_v0 = vld [vmem:[%s7112_s2 + $0x8] sm:$0xf]  ;;  %v5471_v1 = vld [vmem:[%s7112_s2 + $0x18] sm:$0xf]  ;;  %s7120_s15 = smov (!%p279_p4, %s5862_s15), 1 }
   0xd   : > { %5336 = vmatpush.msk.msra.mxu2 %vm595_vm0, %v5335_v0  ;;  %v5369_v2 = vld [vmem:[%s7112_s2 + $0xc] sm:$0xf]  ;;  %v5505_v3 = vld [vmem:[%s7112_s2 + $0x1c] sm:$0xf]  ;;  %v5268_v4 = vld [vmem:[%s7112_s2 + $0x4] sm:$0xf] }
   0xe   : > { %5370 = vmatpush.msk.msra.mxu3 %vm595_vm0, %v5369_v2  ;;  %v464_v5 = vld [vmem:[%s7112_s2] sm:$0xf]  ;;  %5269 = vmatpush.msk.msra.mxu0 %vm595_vm0, %v5268_v4  ;;  %v5404_v6 = vld [vmem:[%s7112_s2 + $0x14] sm:$0xf]  ;;  %v5403_v7 = vld [vmem:[%s7112_s2 + $0x10] sm:$0xf] }
   0xf   : > { %5472 = vmatpush.msk.msrb.mxu2 %vm595_vm0, %v5471_v1  ;;  %s5816_s9 = smul.u32 432, %s7120_s15  ;;  %5302 = vmatpush.msk.msra.mxu1 %vm595_vm0, %v464_v5  ;;  %vm368_vm1 = vcmask 31744   ;;  %vm371_vm2 = vcmask 25600   ;;  %s5815_s13 = sshll.u32 %s7120_s15, 9  ;;  %vm2756_vm3 = vcmask 64544  }
  0x10   : > { %5506 = vmatpush.msk.msrb.mxu3 %vm595_vm0, %v5505_v3  ;;  %5405 = vmatpush.msk.msrb.mxu0 %vm595_vm0, %v5404_v6  ;;  %s6115_s22 = scalar_lea.vmem %s7114_s4, %s5815_s13 }
  0x11   : > { %5438 = vmatpush.msk.msrb.mxu1 %vm595_vm0, %v5403_v7  ;;  %s5956_s12 = scalar_lea.vmem %s7110_s0, %s5816_s9  ;;  %s5814_s23 = sadd.s32 384, %s5816_s9 }
  0x12   : > { %v323_v8 = vld [vmem:[%s5956_s12 + $0x18] sm:$0xff]  ;;  %v324_v9 = vld [vmem:[%s5956_s12 + $0x20] sm:$0xff]  ;;  %v321_v11 = vld [vmem:[%s5956_s12 + $0x8] sm:$0xff]  ;;  %s6202_s26 = scalar_lea.vmem %s7111_s1, %s5814_s23 }
  0x13   : > { %v320_v10 = vld [vmem:[%s5956_s12] sm:$0xff]  ;;  %373 = vst.msk [vmem:[#allocation2 + $0x18] sm:$0xff] %vm368_vm1, %v323_v8  ;;  %v325_v12 = vld [vmem:[%s5956_s12 + $0x28] sm:$0x3]  ;;  %v322_v13 = vld [vmem:[%s5956_s12 + $0x10] sm:$0x3] }
  0x14   : > { %374 = vst.msk [vmem:[#allocation2 + $0x20] sm:$0xff] %vm368_vm1, %v324_v9  ;;  %v326_v14 = vld [vmem:[%s5956_s12 + $0x30] sm:$0xff]  ;;  %v327_v15 = vld [vmem:[%s5956_s12 + $0x38] sm:$0xff]  ;;  %v328_v16 = vld [vmem:[%s5956_s12 + $0x40] sm:$0x3] }
  0x15   : > { %369 = vst.msk [vmem:[#allocation2] sm:$0xff] %vm368_vm1, %v320_v10  ;;  %v329_v17 = vld [vmem:[%s5956_s12 + $0x48] sm:$0xff]  ;;  %v330_v19 = vld [vmem:[%s5956_s12 + $0x50] sm:$0xff]  ;;  %v331_v22 = vld [vmem:[%s5956_s12 + $0x58] sm:$0x3] }
  0x16   : > { %370 = vst.msk [vmem:[#allocation2 + $0x8] sm:$0xff] %vm368_vm1, %v321_v11  ;;  %v332_v27 = vld [vmem:[%s5956_s12 + $0x60] sm:$0xff]  ;;  %v333_v29 = vld [vmem:[%s5956_s12 + $0x68] sm:$0xff]  ;;  %v334_v32 = vld [vmem:[%s5956_s12 + $0x70] sm:$0x3] }
  0x17   : > { %375 = vst.msk [vmem:[#allocation2 + $0x28] sm:$0x3] %vm371_vm2, %v325_v12  ;;  %v335_v35 = vld [vmem:[%s5956_s12 + $0x78] sm:$0xff]  ;;  %v336_v36 = vld [vmem:[%s5956_s12 + $0x80] sm:$0xff]  ;;  %v337_v39 = vld [vmem:[%s5956_s12 + $0x88] sm:$0x3] }
  0x18   : > { %372 = vst.msk [vmem:[#allocation2 + $0x10] sm:$0x3] %vm371_vm2, %v322_v13  ;;  %v338_v42 = vld [vmem:[%s5956_s12 + $0x90] sm:$0xff]  ;;  %v339_v43 = vld [vmem:[%s5956_s12 + $0x98] sm:$0xff]  ;;  %v340_v46 = vld [vmem:[%s5956_s12 + $0xa0] sm:$0x3] }
  0x19   : > { %376 = vst.msk [vmem:[#allocation2 + $0x30] sm:$0xff] %vm368_vm1, %v326_v14  ;;  %v341_v49 = vld [vmem:[%s5956_s12 + $0xa8] sm:$0xff]  ;;  %v342_v50 = vld [vmem:[%s5956_s12 + $0xb0] sm:$0xff]  ;;  %v343_v53 = vld [vmem:[%s5956_s12 + $0xb8] sm:$0x3] }
  0x1a   : > { %v925_v18 = vld [vmem:[#allocation2 + $0x18] sm:$0xff]  ;;  %377 = vst.msk [vmem:[#allocation2 + $0x38] sm:$0xff] %vm368_vm1, %v327_v15  ;;  %v344_v56 = vld [vmem:[%s5956_s12 + $0xc0] sm:$0xff]  ;;  %v345_v57 = vld [vmem:[%s5956_s12 + $0xc8] sm:$0xff] }
  0x1b   : > { %5337 = vmatmul.msk.f32.vlgmr.msra.gmra.mxu2 %vm368_vm1, %v925_v18  ;;  %v5978_v20 = vld [vmem:[#allocation2 + $0x19] sm:$0xff]  ;;  %378 = vst.msk [vmem:[#allocation2 + $0x40] sm:$0x3] %vm371_vm2, %v328_v16  ;;  %v346_v60 = vld [vmem:[%s5956_s12 + $0xd0] sm:$0x3]  ;;  %v353_v13 = vld [vmem:[%s5956_s12 + $0x108] sm:$0xff] }
  0x1c   : > { %5371 = vmatmul.msk.f32.vlgmr.msra.gmra.mxu3 %vm368_vm1, %v5978_v20  ;;  %v432_v21 = vld [vmem:[#allocation2] sm:$0xff]  ;;  %379 = vst.msk [vmem:[#allocation2 + $0x48] sm:$0xff] %vm368_vm1, %v329_v17  ;;  %v347_v63 = vld [vmem:[%s5956_s12 + $0xd8] sm:$0xff]  ;;  %v349_v3 = vld [vmem:[%s5956_s12 + $0xe8] sm:$0x3] }
  0x1d   : > { %v465_v23 = vld [vmem:[#allocation2 + $0x1] sm:$0xff]  ;;  %5303 = vmatmul.msk.f32.vlgmr.msra.gmra.mxu1 %vm368_vm1, %v432_v21  ;;  %380 = vst.msk [vmem:[#allocation2 + $0x50] sm:$0xff] %vm368_vm1, %v330_v19  ;;  %v350_v6 = vld [vmem:[%s5956_s12 + $0xf0] sm:$0xff]  ;;  %v351_v7 = vld [vmem:[%s5956_s12 + $0xf8] sm:$0xff] }
  0x1e   : > { %5270 = vmatmul.msk.f32.vlgmr.msra.gmra.mxu0 %vm368_vm1, %v465_v23  ;;  %381 = vst.msk [vmem:[#allocation2 + $0x58] sm:$0x3] %vm371_vm2, %v331_v22  ;;  %v926_v24 = vld [vmem:[#allocation2 + $0x20] sm:$0xff]  ;;  %v433_v26 = vld [vmem:[#allocation2 + $0x8] sm:$0xff]  ;;  %v354_v14 = vld [vmem:[%s5956_s12 + $0x110] sm:$0xff] }
  0x1f   : > { %v5989_v25 = vld [vmem:[#allocation2 + $0x21] sm:$0xff]  ;;  %v466_v28 = vld [vmem:[#allocation2 + $0x9] sm:$0xff]  ;;  %382 = vst.msk [vmem:[#allocation2 + $0x60] sm:$0xff] %vm368_vm1, %v332_v27  ;;  %v355_v21 = vld [vmem:[%s5956_s12 + $0x118] sm:$0x3] }
  0x20   : > { %383 = vst.msk [vmem:[#allocation2 + $0x68] sm:$0xff] %vm368_vm1, %v333_v29  ;;  %v927_v30 = vld [vmem:[#allocation2 + $0x30] sm:$0xff]  ;;  %v348_v0 = vld [vmem:[%s5956_s12 + $0xe0] sm:$0xff] }
  0x21   : > { %v1205_v31 = vld [vmem:[#allocation2 + $0x31] sm:$0xff]  ;;  %384 = vst.msk [vmem:[#allocation2 + $0x70] sm:$0x3] %vm371_vm2, %v334_v32  ;;  %v352_v10 = vld [vmem:[%s5956_s12 + $0x100] sm:$0x3] }
  0x22   : > { %v928_v33 = vld [vmem:[#allocation2 + $0x38] sm:$0xff]  ;;  %385 = vst.msk [vmem:[#allocation2 + $0x78] sm:$0xff] %vm368_vm1, %v335_v35  ;;  %v357_v35 = vld [vmem:[%s5956_s12 + $0x128] sm:$0xff] }
  0x23   : > { %5338 = vmatmul.msk.f32.gmra.mxu2 %vm368_vm1, %v926_v24  ;;  %v1206_v34 = vld [vmem:[#allocation2 + $0x39] sm:$0xff]  ;;  %386 = vst.msk [vmem:[#allocation2 + $0x80] sm:$0xff] %vm368_vm1, %v336_v36  ;;  %v929_v37 = vld [vmem:[#allocation2 + $0x48] sm:$0xff] }
  0x24   : > { %5372 = vmatmul.msk.f32.gmra.mxu3 %vm368_vm1, %v5989_v25  ;;  %v1207_v38 = vld [vmem:[#allocation2 + $0x49] sm:$0xff]  ;;  %387 = vst.msk [vmem:[#allocation2 + $0x88] sm:$0x3] %vm371_vm2, %v337_v39 }
  0x25   : > { %5304 = vmatmul.msk.f32.gmra.mxu1 %vm368_vm1, %v433_v26  ;;  %v930_v40 = vld [vmem:[#allocation2 + $0x50] sm:$0xff]  ;;  %388 = vst.msk [vmem:[#allocation2 + $0x90] sm:$0xff] %vm368_vm1, %v338_v42  ;;  %v6110_v26 = vld [vmem:[%s7113_s3] ss:$0 sm:$0xff] }
  0x26   : > { %5271 = vmatmul.msk.f32.gmra.mxu0 %vm368_vm1, %v466_v28  ;;  %v1208_v41 = vld [vmem:[#allocation2 + $0x51] sm:$0xff]  ;;  %389 = vst.msk [vmem:[#allocation2 + $0x98] sm:$0xff] %vm368_vm1, %v339_v43  ;;  %v931_v44 = vld [vmem:[#allocation2 + $0x60] sm:$0xff] }
  0x27   : > { %v1209_v45 = vld [vmem:[#allocation2 + $0x61] sm:$0xff]  ;;  %390 = vst.msk [vmem:[#allocation2 + $0xa0] sm:$0x3] %vm371_vm2, %v340_v46  ;;  %v358_v46 = vld [vmem:[%s5956_s12 + $0x130] sm:$0x3] }
  0x28   : > { %v932_v47 = vld [vmem:[#allocation2 + $0x68] sm:$0xff]  ;;  %391 = vst.msk [vmem:[#allocation2 + $0xa8] sm:$0xff] %vm368_vm1, %v341_v49 }
  0x29   : > { %v1210_v48 = vld [vmem:[#allocation2 + $0x69] sm:$0xff]  ;;  %392 = vst.msk [vmem:[#allocation2 + $0xb0] sm:$0xff] %vm368_vm1, %v342_v50  ;;  %v933_v51 = vld [vmem:[#allocation2 + $0x78] sm:$0xff] }
  0x2a   : > { %v1211_v52 = vld [vmem:[#allocation2 + $0x79] sm:$0xff]  ;;  %393 = vst.msk [vmem:[#allocation2 + $0xb8] sm:$0x3] %vm371_vm2, %v343_v53 }
  0x2b   : > { %5339 = vmatmul.msk.f32.gmra.mxu2 %vm368_vm1, %v927_v30  ;;  %v934_v54 = vld [vmem:[#allocation2 + $0x80] sm:$0xff]  ;;  %394 = vst.msk [vmem:[#allocation2 + $0xc0] sm:$0xff] %vm368_vm1, %v344_v56 }
  0x2c   : > { %5373 = vmatmul.msk.f32.gmra.mxu3 %vm368_vm1, %v1205_v31  ;;  %v1212_v55 = vld [vmem:[#allocation2 + $0x81] sm:$0xff]  ;;  %395 = vst.msk [vmem:[#allocation2 + $0xc8] sm:$0xff] %vm368_vm1, %v345_v57  ;;  %v935_v58 = vld [vmem:[#allocation2 + $0x90] sm:$0xff] }
  0x2d   : > { %5305 = vmatmul.msk.f32.gmra.mxu1 %vm368_vm1, %v925_v18  ;;  %v1213_v59 = vld [vmem:[#allocation2 + $0x91] sm:$0xff]  ;;  %396 = vst.msk [vmem:[#allocation2 + $0xd0] sm:$0x3] %vm371_vm2, %v346_v60 }
  0x2e   : > { %5272 = vmatmul.msk.f32.gmra.mxu0 %vm368_vm1, %v5978_v20  ;;  %v936_v61 = vld [vmem:[#allocation2 + $0x98] sm:$0xff]  ;;  %397 = vst.msk [vmem:[#allocation2 + $0xd8] sm:$0xff] %vm368_vm1, %v347_v63 }
  0x2f   : > { %v1214_v62 = vld [vmem:[#allocation2 + $0x99] sm:$0xff]  ;;  %398 = vst.msk [vmem:[#allocation2 + $0xe0] sm:$0xff] %vm368_vm1, %v348_v0  ;;  %v937_v1 = vld [vmem:[#allocation2 + $0xa8] sm:$0xff] }
  0x30   : > { %v1215_v2 = vld [vmem:[#allocation2 + $0xa9] sm:$0xff]  ;;  %399 = vst.msk [vmem:[#allocation2 + $0xe8] sm:$0x3] %vm371_vm2, %v349_v3 }
  0x31   : > { %v938_v4 = vld [vmem:[#allocation2 + $0xb0] sm:$0xff]  ;;  %400 = vst.msk [vmem:[#allocation2 + $0xf0] sm:$0xff] %vm368_vm1, %v350_v6 }
  0x32   : > { %v1216_v5 = vld [vmem:[#allocation2 + $0xb1] sm:$0xff]  ;;  %401 = vst.msk [vmem:[#allocation2 + $0xf8] sm:$0xff] %vm368_vm1, %v351_v7  ;;  %v939_v8 = vld [vmem:[#allocation2 + $0xc0] sm:$0xff] }
  0x33   : > { %5340 = vmatmul.msk.f32.gmra.mxu2 %vm368_vm1, %v928_v33  ;;  %v1217_v9 = vld [vmem:[#allocation2 + $0xc1] sm:$0xff]  ;;  %402 = vst.msk [vmem:[#allocation2 + $0x100] sm:$0x3] %vm371_vm2, %v352_v10 }
  0x34   : > { %5374 = vmatmul.msk.f32.gmra.mxu3 %vm368_vm1, %v1206_v34  ;;  %v940_v11 = vld [vmem:[#allocation2 + $0xc8] sm:$0xff]  ;;  %403 = vst.msk [vmem:[#allocation2 + $0x108] sm:$0xff] %vm368_vm1, %v353_v13  ;;  %v362_v13 = vld [vmem:[%s5956_s12 + $0x150] sm:$0xff] }
  0x35   : > { %5306 = vmatmul.msk.f32.gmra.mxu1 %vm368_vm1, %v926_v24  ;;  %v1218_v12 = vld [vmem:[#allocation2 + $0xc9] sm:$0xff]  ;;  %404 = vst.msk [vmem:[#allocation2 + $0x110] sm:$0xff] %vm368_vm1, %v354_v14  ;;  %v941_v15 = vld [vmem:[#allocation2 + $0xd8] sm:$0xff] }
  0x36   : > { %5273 = vmatmul.msk.f32.gmra.mxu0 %vm368_vm1, %v5989_v25  ;;  %v1219_v16 = vld [vmem:[#allocation2 + $0xd9] sm:$0xff]  ;;  %405 = vst.msk [vmem:[#allocation2 + $0x118] sm:$0x3] %vm371_vm2, %v355_v21 }
  0x37   : > { %v942_v27 = vld [vmem:[#allocation2 + $0xe0] sm:$0xff]  ;;  %407 = vst.msk [vmem:[#allocation2 + $0x128] sm:$0xff] %vm368_vm1, %v357_v35 }
  0x38   : > { %v1220_v29 = vld [vmem:[#allocation2 + $0xe1] sm:$0xff]  ;;  %v943_v39 = vld [vmem:[#allocation2 + $0xf0] sm:$0xff]  ;;  %408 = vst.msk [vmem:[#allocation2 + $0x130] sm:$0x3] %vm371_vm2, %v358_v46 }
  0x39   : > { %v944_v50 = vld [vmem:[#allocation2 + $0xf8] sm:$0xff]  ;;  %412 = vst.msk [vmem:[#allocation2 + $0x150] sm:$0xff] %vm368_vm1, %v362_v13  ;;  %v420_v13 = vld [vmem:[%s6202_s26 + $0x10] sm:$0x3] }
  0x3a   : > { %427 = vst.msk [vmem:[#allocation2 + $0x190] sm:$0x3] %vm371_vm2, %v420_v13  ;;  %v1548_v13 = vld [vmem:[#allocation2 + $0x1] sm:$0xff] }
  0x3b   : > { %5341 = vmatmul.msk.f32.gmra.mxu2 %vm368_vm1, %v929_v37 }
  0x3c   : > { %5375 = vmatmul.msk.f32.gmra.mxu3 %vm368_vm1, %v1207_v38  ;;  %v1223_v0 = vld [vmem:[#allocation2 + $0x109] sm:$0xff] }
  0x3d   : > { %5307 = vmatmul.msk.f32.gmra.mxu1 %vm368_vm1, %v927_v30 }
  0x3e   : > { %5274 = vmatmul.msk.f32.gmra.mxu0 %vm368_vm1, %v1205_v31  ;;  %v356_v31 = vld [vmem:[%s5956_s12 + $0x120] sm:$0xff]  ;;  %v948_v35 = vld [vmem:[#allocation2 + $0x128] sm:$0xff] }
  0x3f   : > { %406 = vst.msk [vmem:[#allocation2 + $0x120] sm:$0xff] %vm368_vm1, %v356_v31  ;;  %v364_v31 = vld [vmem:[%s5956_s12 + $0x160] sm:$0x3] }
  0x40   : > { %414 = vst.msk [vmem:[#allocation2 + $0x160] sm:$0x3] %vm371_vm2, %v364_v31 }
  0x43   : > { %5342 = vmatmul.msk.f32.gmra.mxu2 %vm368_vm1, %v930_v40 }
  0x44   : > { %5376 = vmatmul.msk.f32.gmra.mxu3 %vm368_vm1, %v1208_v41 }
  0x45   : > { %5308 = vmatmul.msk.f32.gmra.mxu1 %vm368_vm1, %v928_v33 }
  0x46   : > { %5275 = vmatmul.msk.f32.gmra.mxu0 %vm368_vm1, %v1206_v34 }
  0x4b   : > { %5343 = vmatmul.msk.f32.gmra.mxu2 %vm368_vm1, %v931_v44 }
  0x4c   : > { %5377 = vmatmul.msk.f32.gmra.mxu3 %vm368_vm1, %v1209_v45 }
  0x4d   : > { %5309 = vmatmul.msk.f32.gmra.mxu1 %vm368_vm1, %v929_v37 }
  0x4e   : > { %5276 = vmatmul.msk.f32.gmra.mxu0 %vm368_vm1, %v1207_v38 }
  0x53   : > { %5344 = vmatmul.msk.f32.gmra.mxu2 %vm368_vm1, %v932_v47 }
  0x54   : > { %5378 = vmatmul.msk.f32.gmra.mxu3 %vm368_vm1, %v1210_v48 }
  0x55   : > { %5310 = vmatmul.msk.f32.gmra.mxu1 %vm368_vm1, %v930_v40 }
  0x56   : > { %5277 = vmatmul.msk.f32.gmra.mxu0 %vm368_vm1, %v1208_v41  ;;  %v1221_v41 = vld [vmem:[#allocation2 + $0xf1] sm:$0xff] }
  0x5b   : > { %5345 = vmatmul.msk.f32.gmra.mxu2 %vm368_vm1, %v933_v51 }
  0x5c   : > { %5379 = vmatmul.msk.f32.gmra.mxu3 %vm368_vm1, %v1211_v52 }
  0x5d   : > { %5311 = vmatmul.msk.f32.gmra.mxu1 %vm368_vm1, %v931_v44 }
  0x5e   : > { %5278 = vmatmul.msk.f32.gmra.mxu0 %vm368_vm1, %v1209_v45 }
  0x63   : > { %5346 = vmatmul.msk.f32.gmra.mxu2 %vm368_vm1, %v934_v54 }
  0x64   : > { %5380 = vmatmul.msk.f32.gmra.mxu3 %vm368_vm1, %v1212_v55 }
  0x65   : > { %5312 = vmatmul.msk.f32.gmra.mxu1 %vm368_vm1, %v932_v47 }
  0x66   : > { %5279 = vmatmul.msk.f32.gmra.mxu0 %vm368_vm1, %v1210_v48 }
  0x6b   : > { %5347 = vmatmul.msk.f32.gmra.mxu2 %vm368_vm1, %v935_v58 }
  0x6c   : > { %5381 = vmatmul.msk.f32.gmra.mxu3 %vm368_vm1, %v1213_v59 }
  0x6d   : > { %5313 = vmatmul.msk.f32.gmra.mxu1 %vm368_vm1, %v933_v51 }
  0x6e   : > { %5280 = vmatmul.msk.f32.gmra.mxu0 %vm368_vm1, %v1211_v52  ;;  %v1222_v52 = vld [vmem:[#allocation2 + $0xf9] sm:$0xff] }
  0x73   : > { %5348 = vmatmul.msk.f32.gmra.mxu2 %vm368_vm1, %v936_v61 }
  0x74   : > { %5382 = vmatmul.msk.f32.gmra.mxu3 %vm368_vm1, %v1214_v62 }
  0x75   : > { %5314 = vmatmul.msk.f32.gmra.mxu1 %vm368_vm1, %v934_v54  ;;  %v359_v54 = vld [vmem:[%s5956_s12 + $0x138] sm:$0xff] }
  0x76   : > { %5281 = vmatmul.msk.f32.gmra.mxu0 %vm368_vm1, %v1212_v55  ;;  %409 = vst.msk [vmem:[#allocation2 + $0x138] sm:$0xff] %vm368_vm1, %v359_v54  ;;  %v367_v54 = vld [vmem:[%s5956_s12 + $0x178] sm:$0x3] }
  0x77   : > { %417 = vst.msk [vmem:[#allocation2 + $0x178] sm:$0x3] %vm371_vm2, %v367_v54 }
  0x7b   : > { %5349 = vmatmul.msk.f32.gmra.mxu2 %vm368_vm1, %v937_v1 }
  0x7c   : > { %5383 = vmatmul.msk.f32.gmra.mxu3 %vm368_vm1, %v1215_v2 }
  0x7d   : > { %5315 = vmatmul.msk.f32.gmra.mxu1 %vm368_vm1, %v935_v58  ;;  %v360_v58 = vld [vmem:[%s5956_s12 + $0x140] sm:$0xff] }
  0x7e   : > { %5282 = vmatmul.msk.f32.gmra.mxu0 %vm368_vm1, %v1213_v59  ;;  %410 = vst.msk [vmem:[#allocation2 + $0x140] sm:$0xff] %vm368_vm1, %v360_v58 }
  0x83   : > { %5350 = vmatmul.msk.f32.gmra.mxu2 %vm368_vm1, %v938_v4 }
  0x84   : > { %5384 = vmatmul.msk.f32.gmra.mxu3 %vm368_vm1, %v1216_v5 }
  0x85   : > { %5316 = vmatmul.msk.f32.gmra.mxu1 %vm368_vm1, %v936_v61  ;;  %v950_v58 = vld [vmem:[#allocation2 + $0x140] sm:$0xff] }
  0x86   : > { %5283 = vmatmul.msk.f32.gmra.mxu0 %vm368_vm1, %v1214_v62  ;;  %v945_v62 = vld [vmem:[#allocation2 + $0x108] sm:$0xff] }
  0x8b   : > { %5351 = vmatmul.msk.f32.gmra.mxu2 %vm368_vm1, %v939_v8 }
  0x8c   : > { %5385 = vmatmul.msk.f32.gmra.mxu3 %vm368_vm1, %v1217_v9 }
  0x8d   : > { %5317 = vmatmul.msk.f32.gmra.mxu1 %vm368_vm1, %v937_v1 }
  0x8e   : > { %5284 = vmatmul.msk.f32.gmra.mxu0 %vm368_vm1, %v1215_v2 }
  0x93   : > { %5352 = vmatmul.msk.f32.gmra.mxu2 %vm368_vm1, %v940_v11 }
  0x94   : > { %5386 = vmatmul.msk.f32.gmra.mxu3 %vm368_vm1, %v1218_v12 }
  0x95   : > { %5318 = vmatmul.msk.f32.gmra.mxu1 %vm368_vm1, %v938_v4 }
  0x96   : > { %5285 = vmatmul.msk.f32.gmra.mxu0 %vm368_vm1, %v1216_v5  ;;  %v361_v5 = vld [vmem:[%s5956_s12 + $0x148] sm:$0x3] }
  0x97   : > { %411 = vst.msk [vmem:[#allocation2 + $0x148] sm:$0x3] %vm371_vm2, %v361_v5 }
  0x9a   : > { %v828_v17 = vpop.f32.mrf.mxu1 }
  0x9b   : > { %5353 = vmatmul.msk.f32.gmra.mxu2 %vm368_vm1, %v941_v15  ;;  %v616_v18 = vpop.f32.mrf.mxu0 }
  0x9c   : > { %v829_v19 = vadd.f32 %v828_v17, %v616_v18  ;;  %5387 = vmatmul.msk.f32.gmra.mxu3 %vm368_vm1, %v1219_v16  ;;  %v363_v17 = vld [vmem:[%s5956_s12 + $0x158] sm:$0xff] }
  0x9d   : > { %5319 = vmatmul.msk.f32.gmra.mxu1 %vm368_vm1, %v939_v8  ;;  %413 = vst.msk [vmem:[#allocation2 + $0x158] sm:$0xff] %vm368_vm1, %v363_v17 }
  0x9e   : > { %v1075_v22 = vpop.f32.mrf.mxu2  ;;  %5286 = vmatmul.msk.f32.gmra.mxu0 %vm368_vm1, %v1217_v9  ;;  %v946_v9 = vld [vmem:[#allocation2 + $0x110] sm:$0xff] }
  0x9f   : > { %v1171_v23 = vadd.f32 %v1075_v22, %v829_v19  ;;  %v1353_v24 = vpop.f32.mrf.mxu3  ;;  %v947_v22 = vld [vmem:[#allocation2 + $0x120] sm:$0xff] }
  0xa1   : > { %v1449_v28 = vadd.f32 %v1353_v24, %v1171_v23  ;;  %v1225_v24 = vld [vmem:[#allocation2 + $0x121] sm:$0xff] }
  0xa2   : > { %v831_v30 = vpop.f32.mrf.mxu1 }
  0xa3   : > { %v1484_v32 = vadd.f32 %v6110_v26, %v1449_v28  ;;  %5354 = vmatmul.msk.f32.gmra.mxu2 %vm368_vm1, %v942_v27  ;;  %v619_v33 = vpop.f32.mrf.mxu0 }
  0xa4   : > { %v832_v34 = vadd.f32 %v831_v30, %v619_v33  ;;  %5388 = vmatmul.msk.f32.gmra.mxu3 %vm368_vm1, %v1220_v29  ;;  %v952_v17 = vld [vmem:[#allocation2 + $0x158] sm:$0xff] }
  0xa5   : > { %1516 = vst.msk [vmem:[%s6115_s22] sm:$0xff] %vm368_vm1, %v1484_v32  ;;  %5320 = vmatmul.msk.f32.gmra.mxu1 %vm368_vm1, %v940_v11  ;;  %v1224_v11 = vld [vmem:[#allocation2 + $0x111] sm:$0xff] }
  0xa6   : > { %v1078_v36 = vpop.f32.mrf.mxu2  ;;  %5287 = vmatmul.msk.f32.gmra.mxu0 %vm368_vm1, %v1218_v12 }
  0xa7   : > { %v1172_v37 = vadd.f32 %v1078_v36, %v832_v34  ;;  %v1356_v38 = vpop.f32.mrf.mxu3 }
  0xa9   : > { %v1450_v40 = vadd.f32 %v1356_v38, %v1172_v37  ;;  %v1226_v37 = vld [vmem:[#allocation2 + $0x129] sm:$0xff] }
  0xaa   : > { %v834_v42 = vpop.f32.mrf.mxu1 }
  0xab   : > { %v1485_v43 = vadd.f32 %v6110_v26, %v1450_v40  ;;  %5355 = vmatmul.msk.f32.gmra.mxu2 %vm368_vm1, %v943_v39  ;;  %v622_v44 = vpop.f32.mrf.mxu0 }
  0xac   : > { %v835_v45 = vadd.f32 %v834_v42, %v622_v44  ;;  %5389 = vmatmul.msk.f32.gmra.mxu3 %vm368_vm1, %v1221_v41 }
  0xad   : > { %1517 = vst.msk [vmem:[%s6115_s22 + $0x8] sm:$0xff] %vm368_vm1, %v1485_v43  ;;  %5321 = vmatmul.msk.f32.gmra.mxu1 %vm368_vm1, %v941_v15  ;;  %v366_v43 = vld [vmem:[%s5956_s12 + $0x170] sm:$0xff] }
  0xae   : > { %v1081_v47 = vpop.f32.mrf.mxu2  ;;  %5288 = vmatmul.msk.f32.gmra.mxu0 %vm368_vm1, %v1219_v16  ;;  %416 = vst.msk [vmem:[#allocation2 + $0x170] sm:$0xff] %vm368_vm1, %v366_v43  ;;  %v5539_v43 = vld [vmem:[%s7112_s2 + $0x20] sm:$0xf] }
  0xaf   : > { %v1173_v48 = vadd.f32 %v1081_v47, %v835_v45  ;;  %v1359_v49 = vpop.f32.mrf.mxu3  ;;  %v949_v47 = vld [vmem:[#allocation2 + $0x138] sm:$0xff]  ;;  %5574 = vmatpush.msk.msra.mxu1 %vm595_vm0, %v5539_v43 }
  0xb1   : > { %v1451_v51 = vadd.f32 %v1359_v49, %v1173_v48  ;;  %v1227_v49 = vld [vmem:[#allocation2 + $0x139] sm:$0xff] }
  0xb2   : > { %v837_v53 = vpop.f32.mrf.mxu1 }
  0xb3   : > { %v1486_v55 = vadd.f32 %v6110_v26, %v1451_v51  ;;  %5356 = vmatmul.msk.f32.gmra.mxu2 %vm368_vm1, %v944_v50  ;;  %v625_v56 = vpop.f32.mrf.mxu0 }
  0xb4   : > { %v838_v57 = vadd.f32 %v837_v53, %v625_v56  ;;  %5390 = vmatmul.msk.f32.gmra.mxu3 %vm368_vm1, %v1222_v52 }
  0xb5   : > { %1518 = vst.msk [vmem:[%s6115_s22 + $0x20] sm:$0xff] %vm368_vm1, %v1486_v55  ;;  %5322 = vmatmul.msk.f32.gmra.mxu1 %vm368_vm1, %v942_v27 }
  0xb6   : > { %v1084_v59 = vpop.f32.mrf.mxu2  ;;  %5289 = vmatmul.msk.f32.gmra.mxu0 %vm368_vm1, %v1220_v29 }
  0xb7   : > { %v1174_v60 = vadd.f32 %v1084_v59, %v838_v57  ;;  %v1362_v61 = vpop.f32.mrf.mxu3 }
  0xb9   : > { %v1452_v63 = vadd.f32 %v1362_v61, %v1174_v60  ;;  %v1228_v60 = vld [vmem:[#allocation2 + $0x141] sm:$0xff] }
  0xba   : > { %v840_v1 = vpop.f32.mrf.mxu1 }
  0xbb   : > { %v1487_v2 = vadd.f32 %v6110_v26, %v1452_v63  ;;  %5357 = vmatmul.msk.f32.gmra.mxu2 %vm368_vm1, %v945_v62  ;;  %v628_v3 = vpop.f32.mrf.mxu0 }
  0xbc   : > { %v841_v4 = vadd.f32 %v840_v1, %v628_v3  ;;  %5391 = vmatmul.msk.f32.gmra.mxu3 %vm368_vm1, %v1223_v0 }
  0xbd   : > { %1519 = vst.msk [vmem:[%s6115_s22 + $0x28] sm:$0xff] %vm368_vm1, %v1487_v2  ;;  %5323 = vmatmul.msk.f32.gmra.mxu1 %vm368_vm1, %v943_v39  ;;  %v365_v39 = vld [vmem:[%s5956_s12 + $0x168] sm:$0xff] }
  0xbe   : > { %v1087_v6 = vpop.f32.mrf.mxu2  ;;  %5290 = vmatmul.msk.f32.gmra.mxu0 %vm368_vm1, %v1221_v41  ;;  %415 = vst.msk [vmem:[#allocation2 + $0x168] sm:$0xff] %vm368_vm1, %v365_v39  ;;  %v419_v2 = vld [vmem:[%s6202_s26 + $0x8] sm:$0xff] }
  0xbf   : > { %v1175_v7 = vadd.f32 %v1087_v6, %v841_v4  ;;  %v1365_v8 = vpop.f32.mrf.mxu3  ;;  %426 = vst.msk [vmem:[#allocation2 + $0x188] sm:$0xff] %vm368_vm1, %v419_v2  ;;  %v951_v6 = vld [vmem:[#allocation2 + $0x150] sm:$0xff] }
  0xc1   : > { %v1453_v10 = vadd.f32 %v1365_v8, %v1175_v7  ;;  %v1229_v8 = vld [vmem:[#allocation2 + $0x151] sm:$0xff] }
  0xc2   : > { %v843_v12 = vpop.f32.mrf.mxu1 }
  0xc3   : > { %v1488_v14 = vadd.f32 %v6110_v26, %v1453_v10  ;;  %5358 = vmatmul.msk.f32.gmra.mxu2 %vm368_vm1, %v946_v9  ;;  %v631_v15 = vpop.f32.mrf.mxu0 }
  0xc4   : > { %v844_v16 = vadd.f32 %v843_v12, %v631_v15  ;;  %5392 = vmatmul.msk.f32.gmra.mxu3 %vm368_vm1, %v1224_v11 }
  0xc5   : > { %1520 = vst.msk [vmem:[%s6115_s22 + $0x40] sm:$0xff] %vm368_vm1, %v1488_v14  ;;  %5324 = vmatmul.msk.f32.gmra.mxu1 %vm368_vm1, %v944_v50 }
  0xc6   : > { %v1090_v18 = vpop.f32.mrf.mxu2  ;;  %5291 = vmatmul.msk.f32.gmra.mxu0 %vm368_vm1, %v1222_v52  ;;  %v1234_v2 = vld [vmem:[#allocation2 + $0x189] sm:$0xff] }
  0xc7   : > { %v1176_v19 = vadd.f32 %v1090_v18, %v844_v16  ;;  %v1368_v21 = vpop.f32.mrf.mxu3 }
  0xc9   : > { %v1454_v23 = vadd.f32 %v1368_v21, %v1176_v19  ;;  %v1230_v19 = vld [vmem:[#allocation2 + $0x159] sm:$0xff] }
  0xca   : > { %v846_v27 = vpop.f32.mrf.mxu1 }
  0xcb   : > { %v1489_v28 = vadd.f32 %v6110_v26, %v1454_v23  ;;  %5359 = vmatmul.msk.f32.gmra.mxu2 %vm368_vm1, %v947_v22  ;;  %v634_v29 = vpop.f32.mrf.mxu0 }
  0xcc   : > { %v847_v30 = vadd.f32 %v846_v27, %v634_v29  ;;  %5393 = vmatmul.msk.f32.gmra.mxu3 %vm368_vm1, %v1225_v24 }
  0xcd   : > { %1521 = vst.msk [vmem:[%s6115_s22 + $0x48] sm:$0xff] %vm368_vm1, %v1489_v28  ;;  %5325 = vmatmul.msk.f32.gmra.mxu1 %vm368_vm1, %v945_v62  ;;  %v418_v62 = vld [vmem:[%s6202_s26] sm:$0xff] }
  0xce   : > { %v1093_v32 = vpop.f32.mrf.mxu2  ;;  %5292 = vmatmul.msk.f32.gmra.mxu0 %vm368_vm1, %v1223_v0  ;;  %425 = vst.msk [vmem:[#allocation2 + $0x180] sm:$0xff] %vm368_vm1, %v418_v62 }
  0xcf   : > { %v1177_v33 = vadd.f32 %v1093_v32, %v847_v30  ;;  %v1371_v34 = vpop.f32.mrf.mxu3  ;;  %v953_v30 = vld [vmem:[#allocation2 + $0x168] sm:$0xff] }
  0xd0   : > { %v1231_v32 = vld [vmem:[#allocation2 + $0x169] sm:$0xff] }
  0xd1   : > { %v1455_v36 = vadd.f32 %v1371_v34, %v1177_v33 }
  0xd2   : > { %v849_v38 = vpop.f32.mrf.mxu1 }
  0xd3   : > { %v1490_v40 = vadd.f32 %v6110_v26, %v1455_v36  ;;  %5360 = vmatmul.msk.f32.gmra.mxu2 %vm368_vm1, %v948_v35  ;;  %v637_v41 = vpop.f32.mrf.mxu0 }
  0xd4   : > { %v850_v42 = vadd.f32 %v849_v38, %v637_v41  ;;  %5394 = vmatmul.msk.f32.gmra.mxu3 %vm368_vm1, %v1226_v37  ;;  %v5641_v38 = vld [vmem:[%s7112_s2 + $0x2c] sm:$0xf] }
  0xd5   : > { %1522 = vst.msk [vmem:[%s6115_s22 + $0x60] sm:$0xff] %vm368_vm1, %v1490_v40  ;;  %5326 = vmatmul.msk.f32.gmra.mxu1 %vm368_vm1, %v946_v9  ;;  %5642 = vmatpush.msk.msra.mxu3 %vm595_vm0, %v5641_v38  ;;  %v955_v54 = vld [vmem:[#allocation2 + $0x180] sm:$0xff] }
  0xd6   : > { %v1096_v44 = vpop.f32.mrf.mxu2  ;;  %5293 = vmatmul.msk.f32.gmra.mxu0 %vm368_vm1, %v1224_v11 }
  0xd7   : > { %v1178_v45 = vadd.f32 %v1096_v44, %v850_v42  ;;  %v1374_v46 = vpop.f32.mrf.mxu3  ;;  %v5540_v42 = vld [vmem:[%s7112_s2 + $0x24] sm:$0xf]  ;;  %v954_v44 = vld [vmem:[#allocation2 + $0x170] sm:$0xff] }
  0xd8   : > { %5541 = vmatpush.msk.msra.mxu0 %vm595_vm0, %v5540_v42 }
  0xd9   : > { %v1456_v48 = vadd.f32 %v1374_v46, %v1178_v45  ;;  %v1232_v46 = vld [vmem:[#allocation2 + $0x171] sm:$0xff] }
  0xda   : > { %v852_v50 = vpop.f32.mrf.mxu1 }
  0xdb   : > { %v1491_v51 = vadd.f32 %v6110_v26, %v1456_v48  ;;  %5361 = vmatmul.msk.f32.gmra.mxu2 %vm368_vm1, %v949_v47  ;;  %v640_v52 = vpop.f32.mrf.mxu0 }
  0xdc   : > { %v853_v53 = vadd.f32 %v852_v50, %v640_v52  ;;  %5395 = vmatmul.msk.f32.gmra.mxu3 %vm368_vm1, %v1227_v49 }
  0xdd   : > { %1523 = vst.msk [vmem:[%s6115_s22 + $0x68] sm:$0xff] %vm368_vm1, %v1491_v51  ;;  %5327 = vmatmul.msk.f32.gmra.mxu1 %vm368_vm1, %v947_v22 }
  0xde   : > { %v1099_v55 = vpop.f32.mrf.mxu2  ;;  %5294 = vmatmul.msk.f32.gmra.mxu0 %vm368_vm1, %v1225_v24 }
  0xdf   : > { %v1179_v56 = vadd.f32 %v1099_v55, %v853_v53  ;;  %v1377_v57 = vpop.f32.mrf.mxu3 }
  0xe1   : > { %v1457_v59 = vadd.f32 %v1377_v57, %v1179_v56  ;;  %v1233_v56 = vld [vmem:[#allocation2 + $0x181] sm:$0xff] }
  0xe2   : > { %v855_v61 = vpop.f32.mrf.mxu1 }
  0xe3   : > { %v1492_v63 = vadd.f32 %v6110_v26, %v1457_v59  ;;  %5362 = vmatmul.msk.f32.gmra.mxu2 %vm368_vm1, %v950_v58  ;;  %v643_v0 = vpop.f32.mrf.mxu0 }
  0xe4   : > { %v856_v1 = vadd.f32 %v855_v61, %v643_v0  ;;  %5396 = vmatmul.msk.f32.gmra.mxu3 %vm368_vm1, %v1228_v60  ;;  %v956_v0 = vld [vmem:[#allocation2 + $0x188] sm:$0xff] }
  0xe5   : > { %1524 = vst.msk [vmem:[%s6115_s22 + $0x80] sm:$0xff] %vm368_vm1, %v1492_v63  ;;  %5328 = vmatmul.msk.f32.gmra.mxu1 %vm368_vm1, %v948_v35 }
  0xe6   : > { %v1102_v3 = vpop.f32.mrf.mxu2  ;;  %5295 = vmatmul.msk.f32.gmra.mxu0 %vm368_vm1, %v1226_v37  ;;  %v5607_v37 = vld [vmem:[%s7112_s2 + $0x28] sm:$0xf] }
  0xe7   : > { %v1180_v4 = vadd.f32 %v1102_v3, %v856_v1  ;;  %v1380_v5 = vpop.f32.mrf.mxu3  ;;  %5608 = vmatpush.msk.msra.mxu2 %vm595_vm0, %v5607_v37 }
  0xe9   : > { %v1458_v7 = vadd.f32 %v1380_v5, %v1180_v4 }
  0xea   : > { %v858_v9 = vpop.f32.mrf.mxu1 }
  0xeb   : > { %v1493_v10 = vadd.f32 %v6110_v26, %v1458_v7  ;;  %5363 = vmatmul.msk.f32.gmra.mxu2 %vm368_vm1, %v951_v6  ;;  %v646_v11 = vpop.f32.mrf.mxu0 }
  0xec   : > { %v859_v12 = vadd.f32 %v858_v9, %v646_v11  ;;  %5397 = vmatmul.msk.f32.gmra.mxu3 %vm368_vm1, %v1229_v8  ;;  %v2318_v11 = vld [vmem:[#allocation2 + $0x1a] sm:$0xff] }
  0xed   : > { %1525 = vst.msk [vmem:[%s6115_s22 + $0x88] sm:$0xff] %vm368_vm1, %v1493_v10  ;;  %5329 = vmatmul.msk.f32.gmra.mxu1 %vm368_vm1, %v949_v47 }
  0xee   : > { %v1105_v14 = vpop.f32.mrf.mxu2  ;;  %5296 = vmatmul.msk.f32.gmra.mxu0 %vm368_vm1, %v1227_v49 }
  0xef   : > { %v1181_v15 = vadd.f32 %v1105_v14, %v859_v12  ;;  %v1383_v16 = vpop.f32.mrf.mxu3 }
  0xf1   : > { %v1459_v18 = vadd.f32 %v1383_v16, %v1181_v15  ;;  %v1582_v16 = vld [vmem:[#allocation2 + $0x2] sm:$0xff] }
  0xf2   : > { %v861_v21 = vpop.f32.mrf.mxu1 }
  0xf3   : > { %v1494_v22 = vadd.f32 %v6110_v26, %v1459_v18  ;;  %5364 = vmatmul.msk.f32.gmra.mxu2 %vm368_vm1, %v952_v17  ;;  %v649_v23 = vpop.f32.mrf.mxu0 }
  0xf4   : > { %v862_v24 = vadd.f32 %v861_v21, %v649_v23  ;;  %5398 = vmatmul.msk.f32.gmra.mxu3 %vm368_vm1, %v1230_v19  ;;  %v2319_v23 = vld [vmem:[#allocation2 + $0x22] sm:$0xff] }
  0xf5   : > { %1526 = vst.msk [vmem:[%s6115_s22 + $0xa0] sm:$0xff] %vm368_vm1, %v1494_v22  ;;  %5330 = vmatmul.msk.f32.gmra.mxu1 %vm368_vm1, %v950_v58 }
  0xf6   : > { %v1108_v27 = vpop.f32.mrf.mxu2  ;;  %5297 = vmatmul.msk.f32.gmra.mxu0 %vm368_vm1, %v1228_v60 }
  0xf7   : > { %v1182_v28 = vadd.f32 %v1108_v27, %v862_v24  ;;  %v1386_v29 = vpop.f32.mrf.mxu3  ;;  %v1549_v27 = vld [vmem:[#allocation2 + $0x9] sm:$0xff] }
  0xf9   : > { %v1460_v31 = vadd.f32 %v1386_v29, %v1182_v28  ;;  %v1583_v29 = vld [vmem:[#allocation2 + $0xa] sm:$0xff] }
  0xfa   : > { %v864_v33 = vpop.f32.mrf.mxu1 }
  0xfb   : > { %v1495_v34 = vadd.f32 %v6110_v26, %v1460_v31  ;;  %5365 = vmatmul.msk.f32.gmra.mxu2 %vm368_vm1, %v953_v30  ;;  %v652_v35 = vpop.f32.mrf.mxu0 }
  0xfc   : > { %v865_v36 = vadd.f32 %v864_v33, %v652_v35  ;;  %5399 = vmatmul.msk.f32.gmra.mxu3 %vm368_vm1, %v1231_v32 }
  0xfd   : > { %1527 = vst.msk [vmem:[%s6115_s22 + $0xa8] sm:$0xff] %vm368_vm1, %v1495_v34  ;;  %5331 = vmatmul.msk.f32.gmra.mxu1 %vm368_vm1, %v951_v6  ;;  %v2042_v34 = vld [vmem:[#allocation2 + $0x31] sm:$0xff] }
  0xfe   : > { %v1111_v39 = vpop.f32.mrf.mxu2  ;;  %5298 = vmatmul.msk.f32.gmra.mxu0 %vm368_vm1, %v1229_v8 }
  0xff   : > { %v1183_v40 = vadd.f32 %v1111_v39, %v865_v36  ;;  %v1389_v41 = vpop.f32.mrf.mxu3  ;;  %v2320_v36 = vld [vmem:[#allocation2 + $0x32] sm:$0xff] }
 0x101   : > { %v1461_v45 = vadd.f32 %v1389_v41, %v1183_v40 }
 0x102   : > { %v867_v47 = vpop.f32.mrf.mxu1 }
 0x103   : > { %v1496_v48 = vadd.f32 %v6110_v26, %v1461_v45  ;;  %5366 = vmatmul.msk.f32.gmra.mxu2 %vm368_vm1, %v954_v44  ;;  %v655_v49 = vpop.f32.mrf.mxu0 }
 0x104   : > { %v868_v50 = vadd.f32 %v867_v47, %v655_v49  ;;  %5400 = vmatmul.msk.f32.gmra.mxu3 %vm368_vm1, %v1232_v46 }
 0x105   : > { %1528 = vst.msk [vmem:[%s6115_s22 + $0xc0] sm:$0xff] %vm368_vm1, %v1496_v48  ;;  %5332 = vmatmul.msk.f32.gmra.mxu1 %vm368_vm1, %v952_v17  ;;  %v1551_v48 = vld [vmem:[#allocation2 + $0x21] sm:$0xff] }
 0x106   : > { %v1114_v51 = vpop.f32.mrf.mxu2  ;;  %5299 = vmatmul.msk.f32.gmra.mxu0 %vm368_vm1, %v1230_v19 }
 0x107   : > { %v1184_v52 = vadd.f32 %v1114_v51, %v868_v50  ;;  %v1392_v53 = vpop.f32.mrf.mxu3 }
 0x109   : > { %v1462_v55 = vadd.f32 %v1392_v53, %v1184_v52 }
 0x10a   : > { %v870_v57 = vpop.f32.mrf.mxu1 }
 0x10b   : > { %v1497_v58 = vadd.f32 %v6110_v26, %v1462_v55  ;;  %5367 = vmatmul.msk.f32.gmra.mxu2 %vm368_vm1, %v955_v54  ;;  %v658_v59 = vpop.f32.mrf.mxu0  ;;  %v2044_v55 = vld [vmem:[#allocation2 + $0x49] sm:$0xff] }
 0x10c   : > { %v871_v60 = vadd.f32 %v870_v57, %v658_v59  ;;  %5401 = vmatmul.msk.f32.gmra.mxu3 %vm368_vm1, %v1233_v56  ;;  %v2322_v57 = vld [vmem:[#allocation2 + $0x4a] sm:$0xff] }
 0x10d   : > { %1529 = vst.msk [vmem:[%s6115_s22 + $0xc8] sm:$0xff] %vm368_vm1, %v1497_v58  ;;  %5333 = vmatmul.msk.f32.gmra.mxu1 %vm368_vm1, %v953_v30 }
 0x10e   : > { %v1117_v61 = vpop.f32.mrf.mxu2  ;;  %5300 = vmatmul.msk.f32.gmra.mxu0 %vm368_vm1, %v1231_v32 }
 0x10f   : > { %v1185_v62 = vadd.f32 %v1117_v61, %v871_v60  ;;  %v1395_v63 = vpop.f32.mrf.mxu3 }
 0x111   : > { %v1463_v1 = vadd.f32 %v1395_v63, %v1185_v62 }
 0x112   : > { %v873_v3 = vpop.f32.mrf.mxu1 }
 0x113   : > { %v1498_v4 = vadd.f32 %v6110_v26, %v1463_v1  ;;  %5368 = vmatmul.msk.f32.gmra.mxu2 %vm368_vm1, %v956_v0  ;;  %v661_v5 = vpop.f32.mrf.mxu0  ;;  %v2045_v1 = vld [vmem:[#allocation2 + $0x51] sm:$0xff] }
 0x114   : > { %v874_v6 = vadd.f32 %v873_v3, %v661_v5  ;;  %5402 = vmatmul.msk.f32.gmra.mxu3 %vm368_vm1, %v1234_v2  ;;  %v2323_v3 = vld [vmem:[#allocation2 + $0x52] sm:$0xff] }
 0x115   : > { %1530 = vst.msk [vmem:[%s6115_s22 + $0xe0] sm:$0xff] %vm368_vm1, %v1498_v4  ;;  %5334 = vmatmul.msk.f32.gmra.mxu1 %vm368_vm1, %v954_v44  ;;  %v2043_v44 = vld [vmem:[#allocation2 + $0x39] sm:$0xff] }
 0x116   : > { %v1120_v7 = vpop.f32.mrf.mxu2  ;;  %5301 = vmatmul.msk.f32.gmra.mxu0 %vm368_vm1, %v1232_v46  ;;  %v2321_v46 = vld [vmem:[#allocation2 + $0x3a] sm:$0xff] }
 0x117   : > { %v1186_v8 = vadd.f32 %v1120_v7, %v874_v6  ;;  %v1398_v9 = vpop.f32.mrf.mxu3 }
 0x119   : > { %v1464_v10 = vadd.f32 %v1398_v9, %v1186_v8 }
 0x11a   : > { %v876_v12 = vpop.f32.mrf.mxu1 }
 0x11b   : > { %v1499_v14 = vadd.f32 %v6110_v26, %v1464_v10  ;;  %5473 = vmatmul.msk.f32.vlgmr.msrb.gmra.mxu2 %vm368_vm1, %v5978_v20  ;;  %v664_v15 = vpop.f32.mrf.mxu0 }
 0x11c   : > { %v877_v17 = vadd.f32 %v876_v12, %v664_v15  ;;  %5507 = vmatmul.msk.f32.vlgmr.msrb.gmra.mxu3 %vm368_vm1, %v2318_v11 }
 0x11d   : > { %1531 = vst.msk [vmem:[%s6115_s22 + $0xe8] sm:$0xff] %vm368_vm1, %v1499_v14  ;;  %5439 = vmatmul.msk.f32.vlgmr.msrb.gmra.mxu1 %vm368_vm1, %v1548_v13  ;;  %v2324_v13 = vld [vmem:[#allocation2 + $0x62] sm:$0xff] }
 0x11e   : > { %v1123_v18 = vpop.f32.mrf.mxu2  ;;  %5406 = vmatmul.msk.f32.vlgmr.msrb.gmra.mxu0 %vm368_vm1, %v1582_v16 }
 0x11f   : > { %v1187_v19 = vadd.f32 %v1123_v18, %v877_v17  ;;  %v1401_v21 = vpop.f32.mrf.mxu3 }
 0x121   : > { %v1465_v22 = vadd.f32 %v1401_v21, %v1187_v19 }
 0x122   : > { %v879_v24 = vpop.f32.mrf.mxu1 }
 0x123   : > { %v1500_v20 = vadd.f32 %v6110_v26, %v1465_v22  ;;  %5474 = vmatmul.msk.f32.gmra.mxu2 %vm368_vm1, %v5989_v25  ;;  %v667_v28 = vpop.f32.mrf.mxu0  ;;  %v1550_v25 = vld [vmem:[#allocation2 + $0x19] sm:$0xff]  ;;  %v2047_v22 = vld [vmem:[#allocation2 + $0x69] sm:$0xff] }
 0x124   : > { %v880_v30 = vadd.f32 %v879_v24, %v667_v28  ;;  %5508 = vmatmul.msk.f32.gmra.mxu3 %vm368_vm1, %v2319_v23  ;;  %v2325_v24 = vld [vmem:[#allocation2 + $0x6a] sm:$0xff] }
 0x125   : > { %1532 = vst.msk [vmem:[%s6115_s22 + $0x100] sm:$0xff] %vm368_vm1, %v1500_v20  ;;  %5440 = vmatmul.msk.f32.gmra.mxu1 %vm368_vm1, %v1549_v27 }
 0x126   : > { %v1126_v31 = vpop.f32.mrf.mxu2  ;;  %5407 = vmatmul.msk.f32.gmra.mxu0 %vm368_vm1, %v1583_v29 }
 0x127   : > { %v1188_v32 = vadd.f32 %v1126_v31, %v880_v30  ;;  %v1404_v33 = vpop.f32.mrf.mxu3 }
 0x129   : > { %v1466_v35 = vadd.f32 %v1404_v33, %v1188_v32  ;;  %v2048_v33 = vld [vmem:[#allocation2 + $0x79] sm:$0xff] }
 0x12a   : > { %v882_v37 = vpop.f32.mrf.mxu1 }
 0x12b   : > { %v1501_v38 = vadd.f32 %v6110_v26, %v1466_v35  ;;  %5475 = vmatmul.msk.f32.gmra.mxu2 %vm368_vm1, %v2042_v34  ;;  %v670_v39 = vpop.f32.mrf.mxu0  ;;  %v2326_v35 = vld [vmem:[#allocation2 + $0x7a] sm:$0xff] }
 0x12c   : > { %v883_v40 = vadd.f32 %v882_v37, %v670_v39  ;;  %5509 = vmatmul.msk.f32.gmra.mxu3 %vm368_vm1, %v2320_v36 }
 0x12d   : > { %1533 = vst.msk [vmem:[%s6115_s22 + $0x108] sm:$0xff] %vm368_vm1, %v1501_v38  ;;  %5441 = vmatmul.msk.f32.gmra.mxu1 %vm368_vm1, %v1550_v25 }
 0x12e   : > { %v1129_v41 = vpop.f32.mrf.mxu2  ;;  %5408 = vmatmul.msk.f32.gmra.mxu0 %vm368_vm1, %v2318_v11  ;;  %v2046_v11 = vld [vmem:[#allocation2 + $0x61] sm:$0xff] }
 0x12f   : > { %v1189_v42 = vadd.f32 %v1129_v41, %v883_v40  ;;  %v1407_v43 = vpop.f32.mrf.mxu3 }
 0x131   : > { %v1467_v45 = vadd.f32 %v1407_v43, %v1189_v42  ;;  %v2049_v42 = vld [vmem:[#allocation2 + $0x81] sm:$0xff] }
 0x132   : > { %v885_v47 = vpop.f32.mrf.mxu1 }
 0x133   : > { %v1502_v49 = vadd.f32 %v6110_v26, %v1467_v45  ;;  %5476 = vmatmul.msk.f32.gmra.mxu2 %vm368_vm1, %v2043_v44  ;;  %v673_v50 = vpop.f32.mrf.mxu0 }
 0x134   : > { %v886_v51 = vadd.f32 %v885_v47, %v673_v50  ;;  %5510 = vmatmul.msk.f32.gmra.mxu3 %vm368_vm1, %v2321_v46 }
 0x135   : > { %1534 = vst.msk [vmem:[%s6115_s22 + $0x120] sm:$0xff] %vm368_vm1, %v1502_v49  ;;  %5442 = vmatmul.msk.f32.gmra.mxu1 %vm368_vm1, %v1551_v48 }
 0x136   : > { %v1132_v52 = vpop.f32.mrf.mxu2  ;;  %5409 = vmatmul.msk.f32.gmra.mxu0 %vm368_vm1, %v2319_v23 }
 0x137   : > { %v1190_v53 = vadd.f32 %v1132_v52, %v886_v51  ;;  %v1410_v54 = vpop.f32.mrf.mxu3  ;;  %v2050_v52 = vld [vmem:[#allocation2 + $0x91] sm:$0xff] }
 0x139   : > { %v1468_v56 = vadd.f32 %v1410_v54, %v1190_v53  ;;  %v2328_v54 = vld [vmem:[#allocation2 + $0x92] sm:$0xff] }
 0x13a   : > { %v888_v58 = vpop.f32.mrf.mxu1 }
 0x13b   : > { %v1503_v59 = vadd.f32 %v6110_v26, %v1468_v56  ;;  %5477 = vmatmul.msk.f32.gmra.mxu2 %vm368_vm1, %v2044_v55  ;;  %v676_v60 = vpop.f32.mrf.mxu0 }
 0x13c   : > { %v889_v61 = vadd.f32 %v888_v58, %v676_v60  ;;  %5511 = vmatmul.msk.f32.gmra.mxu3 %vm368_vm1, %v2322_v57 }
 0x13d   : > { %1535 = vst.msk [vmem:[%s6115_s22 + $0x128] sm:$0xff] %vm368_vm1, %v1503_v59  ;;  %5443 = vmatmul.msk.f32.gmra.mxu1 %vm368_vm1, %v2042_v34 }
 0x13e   : > { %v1135_v62 = vpop.f32.mrf.mxu2  ;;  %5410 = vmatmul.msk.f32.gmra.mxu0 %vm368_vm1, %v2320_v36 }
 0x13f   : > { %v1191_v63 = vadd.f32 %v1135_v62, %v889_v61  ;;  %v1413_v0 = vpop.f32.mrf.mxu3  ;;  %v2051_v62 = vld [vmem:[#allocation2 + $0x99] sm:$0xff] }
 0x141   : > { %v1469_v2 = vadd.f32 %v1413_v0, %v1191_v63  ;;  %v2329_v0 = vld [vmem:[#allocation2 + $0x9a] sm:$0xff] }
 0x142   : > { %v891_v4 = vpop.f32.mrf.mxu1 }
 0x143   : > { %v1504_v5 = vadd.f32 %v6110_v26, %v1469_v2  ;;  %5478 = vmatmul.msk.f32.gmra.mxu2 %vm368_vm1, %v2045_v1  ;;  %v679_v6 = vpop.f32.mrf.mxu0 }
 0x144   : > { %v892_v7 = vadd.f32 %v891_v4, %v679_v6  ;;  %5512 = vmatmul.msk.f32.gmra.mxu3 %vm368_vm1, %v2323_v3 }
 0x145   : > { %1536 = vst.msk [vmem:[%s6115_s22 + $0x140] sm:$0xff] %vm368_vm1, %v1504_v5  ;;  %5444 = vmatmul.msk.f32.gmra.mxu1 %vm368_vm1, %v2043_v44  ;;  %v2327_v44 = vld [vmem:[#allocation2 + $0x82] sm:$0xff] }
 0x146   : > { %v1138_v8 = vpop.f32.mrf.mxu2  ;;  %5411 = vmatmul.msk.f32.gmra.mxu0 %vm368_vm1, %v2321_v46 }
 0x147   : > { %v1192_v9 = vadd.f32 %v1138_v8, %v892_v7  ;;  %v1416_v10 = vpop.f32.mrf.mxu3  ;;  %v2052_v8 = vld [vmem:[#allocation2 + $0xa9] sm:$0xff] }
 0x149   : > { %v1470_v12 = vadd.f32 %v1416_v10, %v1192_v9  ;;  %v2330_v10 = vld [vmem:[#allocation2 + $0xaa] sm:$0xff] }
 0x14a   : > { %v894_v14 = vpop.f32.mrf.mxu1 }
 0x14b   : > { %v1505_v15 = vadd.f32 %v6110_v26, %v1470_v12  ;;  %5479 = vmatmul.msk.f32.gmra.mxu2 %vm368_vm1, %v2046_v11  ;;  %v682_v16 = vpop.f32.mrf.mxu0 }
 0x14c   : > { %v895_v17 = vadd.f32 %v894_v14, %v682_v16  ;;  %5513 = vmatmul.msk.f32.gmra.mxu3 %vm368_vm1, %v2324_v13 }
 0x14d   : > { %1537 = vst.msk [vmem:[%s6115_s22 + $0x148] sm:$0xff] %vm368_vm1, %v1505_v15  ;;  %5445 = vmatmul.msk.f32.gmra.mxu1 %vm368_vm1, %v2044_v55 }
 0x14e   : > { %v1141_v18 = vpop.f32.mrf.mxu2  ;;  %5412 = vmatmul.msk.f32.gmra.mxu0 %vm368_vm1, %v2322_v57 }
 0x14f   : > { %v1193_v19 = vadd.f32 %v1141_v18, %v895_v17  ;;  %v1419_v21 = vpop.f32.mrf.mxu3  ;;  %v2053_v18 = vld [vmem:[#allocation2 + $0xb1] sm:$0xff] }
 0x151   : > { %v1471_v23 = vadd.f32 %v1419_v21, %v1193_v19  ;;  %v2331_v21 = vld [vmem:[#allocation2 + $0xb2] sm:$0xff] }
 0x152   : > { %v897_v27 = vpop.f32.mrf.mxu1 }
 0x153   : > { %v1506_v20 = vadd.f32 %v6110_v26, %v1471_v23  ;;  %5480 = vmatmul.msk.f32.gmra.mxu2 %vm368_vm1, %v2047_v22  ;;  %v685_v28 = vpop.f32.mrf.mxu0 }
 0x154   : > { %v898_v29 = vadd.f32 %v897_v27, %v685_v28  ;;  %5514 = vmatmul.msk.f32.gmra.mxu3 %vm368_vm1, %v2325_v24 }
 0x155   : > { %1538 = vst.msk [vmem:[%s6115_s22 + $0x160] sm:$0xff] %vm368_vm1, %v1506_v20  ;;  %5446 = vmatmul.msk.f32.gmra.mxu1 %vm368_vm1, %v2045_v1 }
 0x156   : > { %v1144_v30 = vpop.f32.mrf.mxu2  ;;  %5413 = vmatmul.msk.f32.gmra.mxu0 %vm368_vm1, %v2323_v3 }
 0x157   : > { %v1194_v31 = vadd.f32 %v1144_v30, %v898_v29  ;;  %v1422_v32 = vpop.f32.mrf.mxu3  ;;  %v2054_v30 = vld [vmem:[#allocation2 + $0xc1] sm:$0xff] }
 0x159   : > { %v1472_v34 = vadd.f32 %v1422_v32, %v1194_v31  ;;  %v2332_v32 = vld [vmem:[#allocation2 + $0xc2] sm:$0xff] }
 0x15a   : > { %v900_v36 = vpop.f32.mrf.mxu1 }
 0x15b   : > { %v1507_v37 = vadd.f32 %v6110_v26, %v1472_v34  ;;  %5481 = vmatmul.msk.f32.gmra.mxu2 %vm368_vm1, %v2048_v33  ;;  %v688_v25 = vpop.f32.mrf.mxu0 }
 0x15c   : > { %v901_v38 = vadd.f32 %v900_v36, %v688_v25  ;;  %5515 = vmatmul.msk.f32.gmra.mxu3 %vm368_vm1, %v2326_v35 }
 0x15d   : > { %1539 = vst.msk [vmem:[%s6115_s22 + $0x168] sm:$0xff] %vm368_vm1, %v1507_v37  ;;  %5447 = vmatmul.msk.f32.gmra.mxu1 %vm368_vm1, %v2046_v11 }
 0x15e   : > { %v1147_v39 = vpop.f32.mrf.mxu2  ;;  %5414 = vmatmul.msk.f32.gmra.mxu0 %vm368_vm1, %v2324_v13 }
 0x15f   : > { %v1195_v40 = vadd.f32 %v1147_v39, %v901_v38  ;;  %v1425_v41 = vpop.f32.mrf.mxu3  ;;  %v2055_v39 = vld [vmem:[#allocation2 + $0xc9] sm:$0xff] }
 0x161   : > { %v1473_v43 = vadd.f32 %v1425_v41, %v1195_v40  ;;  %v2333_v41 = vld [vmem:[#allocation2 + $0xca] sm:$0xff] }
 0x162   : > { %v903_v45 = vpop.f32.mrf.mxu1 }
 0x163   : > { %v1508_v46 = vadd.f32 %v6110_v26, %v1473_v43  ;;  %5482 = vmatmul.msk.f32.gmra.mxu2 %vm368_vm1, %v2049_v42  ;;  %v691_v47 = vpop.f32.mrf.mxu0 }
 0x164   : > { %v904_v48 = vadd.f32 %v903_v45, %v691_v47  ;;  %5516 = vmatmul.msk.f32.gmra.mxu3 %vm368_vm1, %v2327_v44 }
 0x165   : > { %1540 = vst.msk [vmem:[%s6115_s22 + $0x180] sm:$0xff] %vm368_vm1, %v1508_v46  ;;  %5448 = vmatmul.msk.f32.gmra.mxu1 %vm368_vm1, %v2047_v22 }
 0x166   : > { %v1150_v49 = vpop.f32.mrf.mxu2  ;;  %5415 = vmatmul.msk.f32.gmra.mxu0 %vm368_vm1, %v2325_v24 }
 0x167   : > { %v1196_v50 = vadd.f32 %v1150_v49, %v904_v48  ;;  %v1428_v51 = vpop.f32.mrf.mxu3  ;;  %v2056_v49 = vld [vmem:[#allocation2 + $0xd9] sm:$0xff] }
 0x169   : > { %v1474_v53 = vadd.f32 %v1428_v51, %v1196_v50  ;;  %v2334_v51 = vld [vmem:[#allocation2 + $0xda] sm:$0xff] }
 0x16a   : > { %v906_v55 = vpop.f32.mrf.mxu1 }
 0x16b   : > { %v1509_v56 = vadd.f32 %v6110_v26, %v1474_v53  ;;  %5483 = vmatmul.msk.f32.gmra.mxu2 %vm368_vm1, %v2050_v52  ;;  %v694_v57 = vpop.f32.mrf.mxu0 }
 0x16c   : > { %v907_v58 = vadd.f32 %v906_v55, %v694_v57  ;;  %5517 = vmatmul.msk.f32.gmra.mxu3 %vm368_vm1, %v2328_v54 }
 0x16d   : > { %1541 = vst.msk [vmem:[%s6115_s22 + $0x188] sm:$0xff] %vm368_vm1, %v1509_v56  ;;  %5449 = vmatmul.msk.f32.gmra.mxu1 %vm368_vm1, %v2048_v33 }
 0x16e   : > { %v1153_v59 = vpop.f32.mrf.mxu2  ;;  %5416 = vmatmul.msk.f32.gmra.mxu0 %vm368_vm1, %v2326_v35 }
 0x16f   : > { %v1197_v60 = vadd.f32 %v1153_v59, %v907_v58  ;;  %v1431_v61 = vpop.f32.mrf.mxu3  ;;  %v2057_v59 = vld [vmem:[#allocation2 + $0xe1] sm:$0xff] }
 0x171   : > { %v1475_v63 = vadd.f32 %v1431_v61, %v1197_v60  ;;  %v2335_v61 = vld [vmem:[#allocation2 + $0xe2] sm:$0xff] }
 0x172   : > { %v909_v1 = vpop.f32.mrf.mxu1 }
 0x173   : > { %v1510_v2 = vadd.f32 %v6110_v26, %v1475_v63  ;;  %5484 = vmatmul.msk.f32.gmra.mxu2 %vm368_vm1, %v2051_v62  ;;  %v697_v3 = vpop.f32.mrf.mxu0 }
 0x174   : > { %v910_v4 = vadd.f32 %v909_v1, %v697_v3  ;;  %5518 = vmatmul.msk.f32.gmra.mxu3 %vm368_vm1, %v2329_v0 }
 0x175   : > { %1542 = vst.msk [vmem:[%s6115_s22 + $0x1a0] sm:$0xff] %vm368_vm1, %v1510_v2  ;;  %5450 = vmatmul.msk.f32.gmra.mxu1 %vm368_vm1, %v2049_v42 }
 0x176   : > { %v1156_v5 = vpop.f32.mrf.mxu2  ;;  %5417 = vmatmul.msk.f32.gmra.mxu0 %vm368_vm1, %v2327_v44 }
 0x177   : > { %v1198_v6 = vadd.f32 %v1156_v5, %v910_v4  ;;  %v1434_v7 = vpop.f32.mrf.mxu3  ;;  %v2058_v5 = vld [vmem:[#allocation2 + $0xf1] sm:$0xff] }
 0x179   : > { %v1476_v9 = vadd.f32 %v1434_v7, %v1198_v6  ;;  %v2336_v7 = vld [vmem:[#allocation2 + $0xf2] sm:$0xff] }
 0x17a   : > { %v912_v11 = vpop.f32.mrf.mxu1 }
 0x17b   : > { %v1511_v12 = vadd.f32 %v6110_v26, %v1476_v9  ;;  %5485 = vmatmul.msk.f32.gmra.mxu2 %vm368_vm1, %v2052_v8  ;;  %v700_v13 = vpop.f32.mrf.mxu0 }
 0x17c   : > { %v913_v14 = vadd.f32 %v912_v11, %v700_v13  ;;  %5519 = vmatmul.msk.f32.gmra.mxu3 %vm368_vm1, %v2330_v10 }
 0x17d   : > { %1543 = vst.msk [vmem:[%s6115_s22 + $0x1a8] sm:$0xff] %vm368_vm1, %v1511_v12  ;;  %5451 = vmatmul.msk.f32.gmra.mxu1 %vm368_vm1, %v2050_v52  ;;  %v6392_v52 = vld [vmem:[%s7113_s3] ss:$0 sm:$0xff] }
 0x17e   : > { %v1159_v15 = vpop.f32.mrf.mxu2  ;;  %5418 = vmatmul.msk.f32.gmra.mxu0 %vm368_vm1, %v2328_v54 }
 0x17f   : > { %v1199_v16 = vadd.f32 %v1159_v15, %v913_v14  ;;  %v1437_v17 = vpop.f32.mrf.mxu3  ;;  %v2059_v15 = vld [vmem:[#allocation2 + $0xf9] sm:$0xff] }
 0x181   : > { %v1477_v19 = vadd.f32 %v1437_v17, %v1199_v16  ;;  %v2337_v17 = vld [vmem:[#allocation2 + $0xfa] sm:$0xff] }
 0x182   : > { %v915_v22 = vpop.f32.mrf.mxu1 }
 0x183   : > { %v1512_v23 = vadd.f32 %v6110_v26, %v1477_v19  ;;  %5486 = vmatmul.msk.f32.gmra.mxu2 %vm368_vm1, %v2053_v18  ;;  %v703_v24 = vpop.f32.mrf.mxu0 }
 0x184   : > { %v916_v27 = vadd.f32 %v915_v22, %v703_v24  ;;  %5520 = vmatmul.msk.f32.gmra.mxu3 %vm368_vm1, %v2331_v21 }
 0x185   : > { %1544 = vst.msk [vmem:[%s6115_s22 + $0x1c0] sm:$0xff] %vm368_vm1, %v1512_v23  ;;  %5452 = vmatmul.msk.f32.gmra.mxu1 %vm368_vm1, %v2051_v62 }
 0x186   : > { %v1162_v20 = vpop.f32.mrf.mxu2  ;;  %5419 = vmatmul.msk.f32.gmra.mxu0 %vm368_vm1, %v2329_v0 }
 0x187   : > { %v1200_v28 = vadd.f32 %v1162_v20, %v916_v27  ;;  %v1440_v29 = vpop.f32.mrf.mxu3  ;;  %v2060_v20 = vld [vmem:[#allocation2 + $0x109] sm:$0xff] }
 0x189   : > { %v1478_v31 = vadd.f32 %v1440_v29, %v1200_v28  ;;  %v2338_v29 = vld [vmem:[#allocation2 + $0x10a] sm:$0xff] }
 0x18a   : > { %v918_v33 = vpop.f32.mrf.mxu1 }
 0x18b   : > { %v1513_v34 = vadd.f32 %v6110_v26, %v1478_v31  ;;  %5487 = vmatmul.msk.f32.gmra.mxu2 %vm368_vm1, %v2054_v30  ;;  %v706_v35 = vpop.f32.mrf.mxu0 }
 0x18c   : > { %v919_v36 = vadd.f32 %v918_v33, %v706_v35  ;;  %5521 = vmatmul.msk.f32.gmra.mxu3 %vm368_vm1, %v2332_v32 }
 0x18d   : > { %1545 = vst.msk [vmem:[%s6115_s22 + $0x1c8] sm:$0xff] %vm368_vm1, %v1513_v34  ;;  %5453 = vmatmul.msk.f32.gmra.mxu1 %vm368_vm1, %v2052_v8 }
 0x18e   : > { %v1165_v37 = vpop.f32.mrf.mxu2  ;;  %5420 = vmatmul.msk.f32.gmra.mxu0 %vm368_vm1, %v2330_v10 }
 0x18f   : > { %v1201_v25 = vadd.f32 %v1165_v37, %v919_v36  ;;  %v1443_v38 = vpop.f32.mrf.mxu3  ;;  %v2061_v37 = vld [vmem:[#allocation2 + $0x111] sm:$0xff] }
 0x191   : > { %v1479_v40 = vadd.f32 %v1443_v38, %v1201_v25  ;;  %v2339_v38 = vld [vmem:[#allocation2 + $0x112] sm:$0xff] }
 0x192   : > { %v921_v42 = vpop.f32.mrf.mxu1 }
 0x193   : > { %v1514_v43 = vadd.f32 %v6110_v26, %v1479_v40  ;;  %5488 = vmatmul.msk.f32.gmra.mxu2 %vm368_vm1, %v2055_v39  ;;  %v709_v44 = vpop.f32.mrf.mxu0 }
 0x194   : > { %v922_v45 = vadd.f32 %v921_v42, %v709_v44  ;;  %5522 = vmatmul.msk.f32.gmra.mxu3 %vm368_vm1, %v2333_v41 }
 0x195   : > { %1546 = vst.msk [vmem:[%s6115_s22 + $0x1e0] sm:$0xff] %vm368_vm1, %v1514_v43  ;;  %5454 = vmatmul.msk.f32.gmra.mxu1 %vm368_vm1, %v2053_v18 }
 0x196   : > { %v1168_v46 = vpop.f32.mrf.mxu2  ;;  %5421 = vmatmul.msk.f32.gmra.mxu0 %vm368_vm1, %v2331_v21 }
 0x197   : > { %v1202_v47 = vadd.f32 %v1168_v46, %v922_v45  ;;  %v1446_v48 = vpop.f32.mrf.mxu3  ;;  %v2062_v46 = vld [vmem:[#allocation2 + $0x121] sm:$0xff] }
 0x199   : > { %v1480_v50 = vadd.f32 %v1446_v48, %v1202_v47  ;;  %v2340_v48 = vld [vmem:[#allocation2 + $0x122] sm:$0xff] }
 0x19a   : > { %v1944_v26 = vpop.f32.mrf.mxu1 }
 0x19b   : > { %v1515_v53 = vadd.f32 %v6392_v52, %v1480_v50  ;;  %5489 = vmatmul.msk.f32.gmra.mxu2 %vm368_vm1, %v2056_v49  ;;  %v1732_v54 = vpop.f32.mrf.mxu0 }
 0x19c   : > { %v1945_v55 = vadd.f32 %v1944_v26, %v1732_v54  ;;  %5523 = vmatmul.msk.f32.gmra.mxu3 %vm368_vm1, %v2334_v51 }
 0x19d   : > { %1547 = vst.msk [vmem:[%s6115_s22 + $0x1e8] sm:$0xff] %vm368_vm1, %v1515_v53  ;;  %5455 = vmatmul.msk.f32.gmra.mxu1 %vm368_vm1, %v2054_v30 }
 0x19e   : > { %v2190_v56 = vpop.f32.mrf.mxu2  ;;  %5422 = vmatmul.msk.f32.gmra.mxu0 %vm368_vm1, %v2332_v32 }
 0x19f   : > { %v2286_v57 = vadd.f32 %v2190_v56, %v1945_v55  ;;  %v2468_v58 = vpop.f32.mrf.mxu3  ;;  %v2063_v56 = vld [vmem:[#allocation2 + $0x129] sm:$0xff] }
 0x1a1   : > { %v2564_v60 = vadd.f32 %v2468_v58, %v2286_v57  ;;  %v2341_v58 = vld [vmem:[#allocation2 + $0x12a] sm:$0xff] }
 0x1a2   : > { %v1947_v62 = vpop.f32.mrf.mxu1 }
 0x1a3   : > { %5490 = vmatmul.msk.f32.gmra.mxu2 %vm368_vm1, %v2057_v59  ;;  %v1735_v63 = vpop.f32.mrf.mxu0  ;;  %v2596_v0 = vadd.f32 %v6392_v52, %v2564_v60 }
 0x1a4   : > { %v1948_v1 = vadd.f32 %v1947_v62, %v1735_v63  ;;  %5524 = vmatmul.msk.f32.gmra.mxu3 %vm368_vm1, %v2335_v61 }
 0x1a5   : > { %2660 = vrot.lane.b32.xlu0 %v2596_v0, %s5872_s10  ;;  %5456 = vmatmul.msk.f32.gmra.mxu1 %vm368_vm1, %v2055_v39 }
 0x1a6   : > { %v2193_v2 = vpop.f32.mrf.mxu2  ;;  %5423 = vmatmul.msk.f32.gmra.mxu0 %vm368_vm1, %v2333_v41 }
 0x1a7   : > { %v2287_v3 = vadd.f32 %v2193_v2, %v1948_v1  ;;  %v2471_v4 = vpop.f32.mrf.mxu3  ;;  %v2064_v2 = vld [vmem:[#allocation2 + $0x139] sm:$0xff] }
 0x1a9   : > { %v2565_v6 = vadd.f32 %v2471_v4, %v2287_v3  ;;  %v2342_v4 = vld [vmem:[#allocation2 + $0x13a] sm:$0xff] }
 0x1aa   : > { %v1950_v8 = vpop.f32.mrf.mxu1 }
 0x1ab   : > { %v2597_v9 = vadd.f32 %v6392_v52, %v2565_v6  ;;  %5491 = vmatmul.msk.f32.gmra.mxu2 %vm368_vm1, %v2058_v5  ;;  %v1738_v10 = vpop.f32.mrf.mxu0 }
 0x1ac   : > { %v1951_v11 = vadd.f32 %v1950_v8, %v1738_v10  ;;  %5525 = vmatmul.msk.f32.gmra.mxu3 %vm368_vm1, %v2336_v7 }
 0x1ad   : > { %2662 = vrot.lane.b32.xlu0 %v2597_v9, %s5872_s10  ;;  %5457 = vmatmul.msk.f32.gmra.mxu1 %vm368_vm1, %v2056_v49 }
 0x1ae   : > { %v2196_v12 = vpop.f32.mrf.mxu2  ;;  %5424 = vmatmul.msk.f32.gmra.mxu0 %vm368_vm1, %v2334_v51 }
 0x1af   : > { %v2288_v13 = vadd.f32 %v2196_v12, %v1951_v11  ;;  %v2474_v14 = vpop.f32.mrf.mxu3  ;;  %v2065_v12 = vld [vmem:[#allocation2 + $0x141] sm:$0xff] }
 0x1b1   : > { %v2566_v16 = vadd.f32 %v2474_v14, %v2288_v13  ;;  %v2343_v14 = vld [vmem:[#allocation2 + $0x142] sm:$0xff] }
 0x1b2   : > { %v1953_v18 = vpop.f32.mrf.mxu1 }
 0x1b3   : > { %5492 = vmatmul.msk.f32.gmra.mxu2 %vm368_vm1, %v2059_v15  ;;  %v1741_v19 = vpop.f32.mrf.mxu0  ;;  %v2598_v21 = vadd.f32 %v6392_v52, %v2566_v16 }
 0x1b4   : > { %v1954_v22 = vadd.f32 %v1953_v18, %v1741_v19  ;;  %5526 = vmatmul.msk.f32.gmra.mxu3 %vm368_vm1, %v2337_v17 }
 0x1b5   : > { %2664 = vrot.lane.b32.xlu1 %v2598_v21, %s5872_s10  ;;  %5458 = vmatmul.msk.f32.gmra.mxu1 %vm368_vm1, %v2057_v59 }
 0x1b6   : > { %v2199_v23 = vpop.f32.mrf.mxu2  ;;  %5425 = vmatmul.msk.f32.gmra.mxu0 %vm368_vm1, %v2335_v61 }
 0x1b7   : > { %v2289_v24 = vadd.f32 %v2199_v23, %v1954_v22  ;;  %v2477_v27 = vpop.f32.mrf.mxu3  ;;  %v2066_v23 = vld [vmem:[#allocation2 + $0x151] sm:$0xff] }
 0x1b9   : > { %v2567_v28 = vadd.f32 %v2477_v27, %v2289_v24  ;;  %v2344_v27 = vld [vmem:[#allocation2 + $0x152] sm:$0xff] }
 0x1ba   : > { %v1956_v30 = vpop.f32.mrf.mxu1 }
 0x1bb   : > { %v2599_v31 = vadd.f32 %v6392_v52, %v2567_v28  ;;  %5493 = vmatmul.msk.f32.gmra.mxu2 %vm368_vm1, %v2060_v20  ;;  %v1744_v32 = vpop.f32.mrf.mxu0 }
 0x1bc   : > { %v1957_v33 = vadd.f32 %v1956_v30, %v1744_v32  ;;  %5527 = vmatmul.msk.f32.gmra.mxu3 %vm368_vm1, %v2338_v29 }
 0x1bd   : > { %2666 = vrot.lane.b32.xlu1 %v2599_v31, %s5872_s10  ;;  %5459 = vmatmul.msk.f32.gmra.mxu1 %vm368_vm1, %v2058_v5 }
 0x1be   : > { %v2202_v34 = vpop.f32.mrf.mxu2  ;;  %5426 = vmatmul.msk.f32.gmra.mxu0 %vm368_vm1, %v2336_v7 }
 0x1bf   : > { %v2290_v35 = vadd.f32 %v2202_v34, %v1957_v33  ;;  %v2480_v36 = vpop.f32.mrf.mxu3  ;;  %v2067_v34 = vld [vmem:[#allocation2 + $0x159] sm:$0xff] }
 0x1c1   : > { %v2568_v25 = vadd.f32 %v2480_v36, %v2290_v35  ;;  %v2345_v36 = vld [vmem:[#allocation2 + $0x15a] sm:$0xff] }
 0x1c2   : > { %v1959_v39 = vpop.f32.mrf.mxu1 }
 0x1c3   : > { %5494 = vmatmul.msk.f32.gmra.mxu2 %vm368_vm1, %v2061_v37  ;;  %v1747_v40 = vpop.f32.mrf.mxu0  ;;  %v2600_v41 = vadd.f32 %v6392_v52, %v2568_v25 }
 0x1c4   : > { %v1960_v42 = vadd.f32 %v1959_v39, %v1747_v40  ;;  %5528 = vmatmul.msk.f32.gmra.mxu3 %vm368_vm1, %v2339_v38 }
 0x1c5   : > { %2668 = vrot.lane.b32.xlu2 %v2600_v41, %s5872_s10  ;;  %5460 = vmatmul.msk.f32.gmra.mxu1 %vm368_vm1, %v2059_v15 }
 0x1c6   : > { %v2205_v43 = vpop.f32.mrf.mxu2  ;;  %5427 = vmatmul.msk.f32.gmra.mxu0 %vm368_vm1, %v2337_v17 }
 0x1c7   : > { %v2291_v44 = vadd.f32 %v2205_v43, %v1960_v42  ;;  %v2483_v45 = vpop.f32.mrf.mxu3  ;;  %v2068_v43 = vld [vmem:[#allocation2 + $0x169] sm:$0xff] }
 0x1c9   : > { %v2569_v47 = vadd.f32 %v2483_v45, %v2291_v44  ;;  %v2346_v45 = vld [vmem:[#allocation2 + $0x16a] sm:$0xff] }
 0x1ca   : > { %v1962_v49 = vpop.f32.mrf.mxu1 }
 0x1cb   : > { %v2601_v50 = vadd.f32 %v6392_v52, %v2569_v47  ;;  %5495 = vmatmul.msk.f32.gmra.mxu2 %vm368_vm1, %v2062_v46  ;;  %v1750_v51 = vpop.f32.mrf.mxu0 }
 0x1cc   : > { %v1963_v26 = vadd.f32 %v1962_v49, %v1750_v51  ;;  %5529 = vmatmul.msk.f32.gmra.mxu3 %vm368_vm1, %v2340_v48  ;;  %v5743_v49 = vld [vmem:[%s7112_s2 + $0x38] sm:$0xf]  ;;  %v5777_v51 = vld [vmem:[%s7112_s2 + $0x3c] sm:$0xf] }
 0x1cd   : > { %2670 = vrot.lane.b32.xlu2 %v2601_v50, %s5872_s10  ;;  %5461 = vmatmul.msk.f32.gmra.mxu1 %vm368_vm1, %v2060_v20 }
 0x1ce   : > { %v2208_v53 = vpop.f32.mrf.mxu2  ;;  %5428 = vmatmul.msk.f32.gmra.mxu0 %vm368_vm1, %v2338_v29  ;;  %5744 = vmatpush.msk.msrb.mxu2 %vm595_vm0, %v5743_v49 }
 0x1cf   : > { %v2292_v54 = vadd.f32 %v2208_v53, %v1963_v26  ;;  %v2486_v55 = vpop.f32.mrf.mxu3  ;;  %5778 = vmatpush.msk.msrb.mxu3 %vm595_vm0, %v5777_v51 }
 0x1d1   : > { %v2570_v57 = vadd.f32 %v2486_v55, %v2292_v54  ;;  %v5676_v55 = vld [vmem:[%s7112_s2 + $0x34] sm:$0xf] }
 0x1d2   : > { %v1965_v59 = vpop.f32.mrf.mxu1  ;;  %5677 = vmatpush.msk.msrb.mxu0 %vm595_vm0, %v5676_v55  ;;  %v3562_v55 = vld [vmem:[#allocation2 + $0x49] sm:$0xff] }
 0x1d3   : > { %v2602_v60 = vadd.f32 %v6392_v52, %v2570_v57  ;;  %5496 = vmatmul.msk.f32.gmra.mxu2 %vm368_vm1, %v2063_v56  ;;  %v1753_v61 = vpop.f32.mrf.mxu0  ;;  %v2069_v57 = vld [vmem:[#allocation2 + $0x171] sm:$0xff] }
 0x1d4   : > { %v1966_v62 = vadd.f32 %v1965_v59, %v1753_v61  ;;  %5530 = vmatmul.msk.f32.gmra.mxu3 %vm368_vm1, %v2341_v58  ;;  %v2347_v59 = vld [vmem:[#allocation2 + $0x172] sm:$0xff] }
 0x1d5   : > { %2672 = vrot.lane.b32.xlu0 %v2602_v60, %s5872_s10  ;;  %5462 = vmatmul.msk.f32.gmra.mxu1 %vm368_vm1, %v2061_v37 }
 0x1d6   : > { %v2211_v63 = vpop.f32.mrf.mxu2  ;;  %5429 = vmatmul.msk.f32.gmra.mxu0 %vm368_vm1, %v2339_v38 }
 0x1d7   : > { %v2293_v0 = vadd.f32 %v2211_v63, %v1966_v62  ;;  %v2489_v1 = vpop.f32.mrf.mxu3 }
 0x1d9   : > { %v2571_v3 = vadd.f32 %v2489_v1, %v2293_v0 }
 0x1da   : > { %v1968_v5 = vpop.f32.mrf.mxu1 }
 0x1db   : > { %v2603_v6 = vadd.f32 %v6392_v52, %v2571_v3  ;;  %5497 = vmatmul.msk.f32.gmra.mxu2 %vm368_vm1, %v2064_v2  ;;  %v1756_v7 = vpop.f32.mrf.mxu0  ;;  %v2070_v3 = vld [vmem:[#allocation2 + $0x181] sm:$0xff] }
 0x1dc   : > { %v1969_v8 = vadd.f32 %v1968_v5, %v1756_v7  ;;  %5531 = vmatmul.msk.f32.gmra.mxu3 %vm368_vm1, %v2342_v4  ;;  %v2348_v5 = vld [vmem:[#allocation2 + $0x182] sm:$0xff] }
 0x1dd   : > { %2674 = vrot.lane.b32.xlu1 %v2603_v6, %s5872_s10  ;;  %5463 = vmatmul.msk.f32.gmra.mxu1 %vm368_vm1, %v2062_v46 }
 0x1de   : > { %v2214_v9 = vpop.f32.mrf.mxu2  ;;  %5430 = vmatmul.msk.f32.gmra.mxu0 %vm368_vm1, %v2340_v48 }
 0x1df   : > { %v2294_v10 = vadd.f32 %v2214_v9, %v1969_v8  ;;  %v2492_v11 = vpop.f32.mrf.mxu3 }
 0x1e1   : > { %v2572_v13 = vadd.f32 %v2492_v11, %v2294_v10 }
 0x1e2   : > { %v1971_v15 = vpop.f32.mrf.mxu1 }
 0x1e3   : > { %v2604_v16 = vadd.f32 %v6392_v52, %v2572_v13  ;;  %5498 = vmatmul.msk.f32.gmra.mxu2 %vm368_vm1, %v2065_v12  ;;  %v1759_v17 = vpop.f32.mrf.mxu0  ;;  %v2071_v13 = vld [vmem:[#allocation2 + $0x189] sm:$0xff] }
 0x1e4   : > { %v1972_v18 = vadd.f32 %v1971_v15, %v1759_v17  ;;  %5532 = vmatmul.msk.f32.gmra.mxu3 %vm368_vm1, %v2343_v14  ;;  %v2349_v15 = vld [vmem:[#allocation2 + $0x18a] sm:$0xff] }
 0x1e5   : > { %2676 = vrot.lane.b32.xlu2 %v2604_v16, %s5872_s10  ;;  %5464 = vmatmul.msk.f32.gmra.mxu1 %vm368_vm1, %v2063_v56  ;;  %v5675_v56 = vld [vmem:[%s7112_s2 + $0x30] sm:$0xf] }
 0x1e6   : > { %v2217_v19 = vpop.f32.mrf.mxu2  ;;  %5431 = vmatmul.msk.f32.gmra.mxu0 %vm368_vm1, %v2341_v58  ;;  %5710 = vmatpush.msk.msrb.mxu1 %vm595_vm0, %v5675_v56 }
 0x1e7   : > { %v2295_v21 = vadd.f32 %v2217_v19, %v1972_v18  ;;  %v2495_v22 = vpop.f32.mrf.mxu3 }
 0x1e9   : > { %v2573_v24 = vadd.f32 %v2495_v22, %v2295_v21 }
 0x1ea   : > { %v1974_v20 = vpop.f32.mrf.mxu1 }
 0x1eb   : > { %v2605_v28 = vadd.f32 %v6392_v52, %v2573_v24  ;;  %5499 = vmatmul.msk.f32.gmra.mxu2 %vm368_vm1, %v2066_v23  ;;  %v1762_v29 = vpop.f32.mrf.mxu0 }
 0x1ec   : > { %v1975_v30 = vadd.f32 %v1974_v20, %v1762_v29  ;;  %5533 = vmatmul.msk.f32.gmra.mxu3 %vm368_vm1, %v2344_v27 }
 0x1ed   : > { %2678 = vrot.lane.b32.xlu0 %v2605_v28, %s5872_s10  ;;  %5465 = vmatmul.msk.f32.gmra.mxu1 %vm368_vm1, %v2064_v2  ;;  %v3560_v28 = vld [vmem:[#allocation2 + $0x31] sm:$0xff] }
 0x1ee   : > { %v2220_v31 = vpop.f32.mrf.mxu2  ;;  %5432 = vmatmul.msk.f32.gmra.mxu0 %vm368_vm1, %v2342_v4 }
 0x1ef   : > { %v2296_v32 = vadd.f32 %v2220_v31, %v1975_v30  ;;  %v2498_v33 = vpop.f32.mrf.mxu3  ;;  %v2789_v30 = vld [vmem:[#allocation2 + $0x18] sm:$0xff] }
 0x1f1   : > { %v2574_v35 = vadd.f32 %v2498_v33, %v2296_v32  ;;  %v2823_v33 = vld [vmem:[#allocation2 + $0x19] sm:$0xff] }
 0x1f2   : > { %v1977_v37 = vpop.f32.mrf.mxu1 }
 0x1f3   : > { %v2606_v25 = vadd.f32 %v6392_v52, %v2574_v35  ;;  %5500 = vmatmul.msk.f32.gmra.mxu2 %vm368_vm1, %v2067_v34  ;;  %v1765_v38 = vpop.f32.mrf.mxu0 }
 0x1f4   : > { %v1978_v39 = vadd.f32 %v1977_v37, %v1765_v38  ;;  %5534 = vmatmul.msk.f32.gmra.mxu3 %vm368_vm1, %v2345_v36 }
 0x1f5   : > { %2680 = vrot.lane.b32.xlu1 %v2606_v25, %s5872_s10  ;;  %5466 = vmatmul.msk.f32.gmra.mxu1 %vm368_vm1, %v2065_v12 }
 0x1f6   : > { %v2223_v40 = vpop.f32.mrf.mxu2  ;;  %5433 = vmatmul.msk.f32.gmra.mxu0 %vm368_vm1, %v2343_v14 }
 0x1f7   : > { %v2297_v41 = vadd.f32 %v2223_v40, %v1978_v39  ;;  %v2501_v42 = vpop.f32.mrf.mxu3  ;;  %v3283_v39 = vld [vmem:[#allocation2 + $0x38] sm:$0xff] }
 0x1f9   : > { %v2575_v44 = vadd.f32 %v2501_v42, %v2297_v41  ;;  %v3561_v41 = vld [vmem:[#allocation2 + $0x39] sm:$0xff] }
 0x1fa   : > { %v1980_v46 = vpop.f32.mrf.mxu1 }
 0x1fb   : > { %v2607_v47 = vadd.f32 %v6392_v52, %v2575_v44  ;;  %5501 = vmatmul.msk.f32.gmra.mxu2 %vm368_vm1, %v2068_v43  ;;  %v1768_v48 = vpop.f32.mrf.mxu0 }
 0x1fc   : > { %v1981_v50 = vadd.f32 %v1980_v46, %v1768_v48  ;;  %5535 = vmatmul.msk.f32.gmra.mxu3 %vm368_vm1, %v2346_v45  ;;  %v2824_v46 = vld [vmem:[#allocation2 + $0x21] sm:$0xff] }
 0x1fd   : > { %2682 = vrot.lane.b32.xlu2 %v2607_v47, %s5872_s10  ;;  %5467 = vmatmul.msk.f32.gmra.mxu1 %vm368_vm1, %v2066_v23 }
 0x1fe   : > { %v2226_v26 = vpop.f32.mrf.mxu2  ;;  %5434 = vmatmul.msk.f32.gmra.mxu0 %vm368_vm1, %v2344_v27  ;;  %v3282_v27 = vld [vmem:[#allocation2 + $0x30] sm:$0xff] }
 0x1ff   : > { %v2298_v53 = vadd.f32 %v2226_v26, %v1981_v50  ;;  %v2504_v54 = vpop.f32.mrf.mxu3 }
 0x201   : > { %v2576_v58 = vadd.f32 %v2504_v54, %v2298_v53  ;;  %v3284_v53 = vld [vmem:[#allocation2 + $0x48] sm:$0xff] }
 0x202   : > { %v1983_v60 = vpop.f32.mrf.mxu1 }
 0x203   : > { %v2608_v61 = vadd.f32 %v6392_v52, %v2576_v58  ;;  %5502 = vmatmul.msk.f32.gmra.mxu2 %vm368_vm1, %v2069_v57  ;;  %v1771_v62 = vpop.f32.mrf.mxu0 }
 0x204   : > { %v1984_v63 = vadd.f32 %v1983_v60, %v1771_v62  ;;  %5536 = vmatmul.msk.f32.gmra.mxu3 %vm368_vm1, %v2347_v59 }
 0x205   : > { %2684 = vrot.lane.b32.xlu0 %v2608_v61, %s5872_s10  ;;  %5468 = vmatmul.msk.f32.gmra.mxu1 %vm368_vm1, %v2067_v34 }
 0x206   : > { %v2229_v0 = vpop.f32.mrf.mxu2  ;;  %5435 = vmatmul.msk.f32.gmra.mxu0 %vm368_vm1, %v2345_v36 }
 0x207   : > { %v2299_v1 = vadd.f32 %v2229_v0, %v1984_v63  ;;  %v2507_v2 = vpop.f32.mrf.mxu3  ;;  %v3285_v0 = vld [vmem:[#allocation2 + $0x50] sm:$0xff] }
 0x209   : > { %v2577_v4 = vadd.f32 %v2507_v2, %v2299_v1  ;;  %v3563_v2 = vld [vmem:[#allocation2 + $0x51] sm:$0xff] }
 0x20a   : > { %v1986_v6 = vpop.f32.mrf.mxu1 }
 0x20b   : > { %v2609_v7 = vadd.f32 %v6392_v52, %v2577_v4  ;;  %5503 = vmatmul.msk.f32.gmra.mxu2 %vm368_vm1, %v2070_v3  ;;  %v1774_v8 = vpop.f32.mrf.mxu0 }
 0x20c   : > { %v1987_v9 = vadd.f32 %v1986_v6, %v1774_v8  ;;  %5537 = vmatmul.msk.f32.gmra.mxu3 %vm368_vm1, %v2348_v5 }
 0x20d   : > { %2686 = vrot.lane.b32.xlu1 %v2609_v7, %s5872_s10  ;;  %5469 = vmatmul.msk.f32.gmra.mxu1 %vm368_vm1, %v2068_v43  ;;  %v2790_v43 = vld [vmem:[#allocation2 + $0x20] sm:$0xff] }
 0x20e   : > { %v2232_v10 = vpop.f32.mrf.mxu2  ;;  %5436 = vmatmul.msk.f32.gmra.mxu0 %vm368_vm1, %v2346_v45 }
 0x20f   : > { %v2300_v11 = vadd.f32 %v2232_v10, %v1987_v9  ;;  %v2510_v12 = vpop.f32.mrf.mxu3  ;;  %v3286_v10 = vld [vmem:[#allocation2 + $0x60] sm:$0xff] }
 0x211   : > { %v2578_v14 = vadd.f32 %v2510_v12, %v2300_v11  ;;  %v3564_v12 = vld [vmem:[#allocation2 + $0x61] sm:$0xff] }
 0x212   : > { %v1989_v16 = vpop.f32.mrf.mxu1 }
 0x213   : > { %v2610_v17 = vadd.f32 %v6392_v52, %v2578_v14  ;;  %5504 = vmatmul.msk.f32.gmra.mxu2 %vm368_vm1, %v2071_v13  ;;  %v1777_v18 = vpop.f32.mrf.mxu0 }
 0x214   : > { %v1990_v19 = vadd.f32 %v1989_v16, %v1777_v18  ;;  %5538 = vmatmul.msk.f32.gmra.mxu3 %vm368_vm1, %v2349_v15 }
 0x215   : > { %2688 = vrot.lane.b32.xlu2 %v2610_v17, %s5872_s10  ;;  %5470 = vmatmul.msk.f32.gmra.mxu1 %vm368_vm1, %v2069_v57 }
 0x216   : > { %v2235_v21 = vpop.f32.mrf.mxu2  ;;  %5437 = vmatmul.msk.f32.gmra.mxu0 %vm368_vm1, %v2347_v59 }
 0x217   : > { %v2301_v22 = vadd.f32 %v2235_v21, %v1990_v19  ;;  %v2661_v23 = vpop.permute.xlu0 %2660  ;;  %v2513_v24 = vpop.f32.mrf.mxu3 }
 0x218   : > { %2757 = vst.msk [vmem:[%s6115_s22] sm:$0xff] %vm2756_vm3, %v2661_v23 }
 0x219   : > { %v2579_v20 = vadd.f32 %v2513_v24, %v2301_v22  ;;  %v3287_v22 = vld [vmem:[#allocation2 + $0x68] sm:$0xff] }
 0x21a   : > { %v1992_v29 = vpop.f32.mrf.mxu1  ;;  %v3565_v24 = vld [vmem:[#allocation2 + $0x69] sm:$0xff] }
 0x21b   : > { %v2611_v31 = vadd.f32 %v6392_v52, %v2579_v20  ;;  %5609 = vmatmul.msk.f32.vlgmr.msra.gmra.mxu2 %vm368_vm1, %v3282_v27  ;;  %v1780_v32 = vpop.f32.mrf.mxu0 }
 0x21c   : > { %v1993_v34 = vadd.f32 %v1992_v29, %v1780_v32  ;;  %5643 = vmatmul.msk.f32.vlgmr.msra.gmra.mxu3 %vm368_vm1, %v3560_v28 }
 0x21d   : > { %2690 = vrot.lane.b32.xlu0 %v2611_v31, %s5872_s10  ;;  %5575 = vmatmul.msk.f32.vlgmr.msra.gmra.mxu1 %vm368_vm1, %v2789_v30 }
 0x21e   : > { %v2238_v35 = vpop.f32.mrf.mxu2  ;;  %5542 = vmatmul.msk.f32.vlgmr.msra.gmra.mxu0 %vm368_vm1, %v2823_v33 }
 0x21f   : > { %v2302_v36 = vadd.f32 %v2238_v35, %v1993_v34  ;;  %v2669_v37 = vpop.permute.xlu2 %2668  ;;  %v2663_v25 = vpop.permute.xlu0 %2662  ;;  %v3288_v34 = vld [vmem:[#allocation2 + $0x78] sm:$0xff] }
 0x220   : > { %2761 = vst.msk [vmem:[%s6115_s22 + $0x40] sm:$0xff] %vm2756_vm3, %v2669_v37  ;;  %v2516_v38 = vpop.f32.mrf.mxu3 }
 0x221   : > { %2758 = vst.msk [vmem:[%s6115_s22 + $0x8] sm:$0xff] %vm2756_vm3, %v2663_v25  ;;  %v2580_v40 = vadd.f32 %v2516_v38, %v2302_v36  ;;  %v3566_v36 = vld [vmem:[#allocation2 + $0x79] sm:$0xff] }
 0x222   : > { %v1995_v42 = vpop.f32.mrf.mxu1 }
 0x223   : > { %v2612_v44 = vadd.f32 %v6392_v52, %v2580_v40  ;;  %5610 = vmatmul.msk.f32.gmra.mxu2 %vm368_vm1, %v3283_v39  ;;  %v1783_v45 = vpop.f32.mrf.mxu0 }
 0x224   : > { %v1996_v47 = vadd.f32 %v1995_v42, %v1783_v45  ;;  %5644 = vmatmul.msk.f32.gmra.mxu3 %vm368_vm1, %v3561_v41 }
 0x225   : > { %2692 = vrot.lane.b32.xlu1 %v2612_v44, %s5872_s10  ;;  %5576 = vmatmul.msk.f32.gmra.mxu1 %vm368_vm1, %v2790_v43  ;;  %v3289_v44 = vld [vmem:[#allocation2 + $0x80] sm:$0xff] }
 0x226   : > { %v2241_v48 = vpop.f32.mrf.mxu2  ;;  %5543 = vmatmul.msk.f32.gmra.mxu0 %vm368_vm1, %v2824_v46  ;;  %v3567_v46 = vld [vmem:[#allocation2 + $0x81] sm:$0xff] }
 0x227   : > { %v2303_v49 = vadd.f32 %v2241_v48, %v1996_v47  ;;  %v2671_v50 = vpop.permute.xlu2 %2670  ;;  %v2665_v51 = vpop.permute.xlu1 %2664 }
 0x228   : > { %2762 = vst.msk [vmem:[%s6115_s22 + $0x48] sm:$0xff] %vm2756_vm3, %v2671_v50  ;;  %v2519_v26 = vpop.f32.mrf.mxu3 }
 0x229   : > { %2759 = vst.msk [vmem:[%s6115_s22 + $0x20] sm:$0xff] %vm2756_vm3, %v2665_v51  ;;  %v2581_v54 = vadd.f32 %v2519_v26, %v2303_v49 }
 0x22a   : > { %v1998_v56 = vpop.f32.mrf.mxu1 }
 0x22b   : > { %v2613_v57 = vadd.f32 %v6392_v52, %v2581_v54  ;;  %5611 = vmatmul.msk.f32.gmra.mxu2 %vm368_vm1, %v3284_v53  ;;  %v1786_v58 = vpop.f32.mrf.mxu0 }
 0x22c   : > { %v1999_v59 = vadd.f32 %v1998_v56, %v1786_v58  ;;  %5645 = vmatmul.msk.f32.gmra.mxu3 %vm368_vm1, %v3562_v55 }
 0x22d   : > { %2694 = vrot.lane.b32.xlu2 %v2613_v57, %s5872_s10  ;;  %5577 = vmatmul.msk.f32.gmra.mxu1 %vm368_vm1, %v3282_v27  ;;  %v3568_v57 = vld [vmem:[#allocation2 + $0x91] sm:$0xff] }
 0x22e   : > { %v2244_v60 = vpop.f32.mrf.mxu2  ;;  %5544 = vmatmul.msk.f32.gmra.mxu0 %vm368_vm1, %v3560_v28 }
 0x22f   : > { %v2304_v61 = vadd.f32 %v2244_v60, %v1999_v59  ;;  %v2667_v62 = vpop.permute.xlu1 %2666 }
 0x230   : > { %2760 = vst.msk [vmem:[%s6115_s22 + $0x28] sm:$0xff] %vm2756_vm3, %v2667_v62  ;;  %v2522_v63 = vpop.f32.mrf.mxu3 }
 0x231   : > { %v2582_v1 = vadd.f32 %v2522_v63, %v2304_v61 }
 0x232   : > { %v2001_v3 = vpop.f32.mrf.mxu1 }
 0x233   : > { %v2614_v4 = vadd.f32 %v6392_v52, %v2582_v1  ;;  %5612 = vmatmul.msk.f32.gmra.mxu2 %vm368_vm1, %v3285_v0  ;;  %v1789_v5 = vpop.f32.mrf.mxu0 }
 0x234   : > { %v2002_v6 = vadd.f32 %v2001_v3, %v1789_v5  ;;  %5646 = vmatmul.msk.f32.gmra.mxu3 %vm368_vm1, %v3563_v2 }
 0x235   : > { %2696 = vrot.lane.b32.xlu0 %v2614_v4, %s5872_s10  ;;  %5578 = vmatmul.msk.f32.gmra.mxu1 %vm368_vm1, %v3283_v39  ;;  %v3569_v4 = vld [vmem:[#allocation2 + $0x99] sm:$0xff] }
 0x236   : > { %v2247_v7 = vpop.f32.mrf.mxu2  ;;  %5545 = vmatmul.msk.f32.gmra.mxu0 %vm368_vm1, %v3561_v41 }
 0x237   : > { %v2305_v8 = vadd.f32 %v2247_v7, %v2002_v6 }
 0x238   : > { %v2525_v9 = vpop.f32.mrf.mxu3 }
 0x239   : > { %v2583_v11 = vadd.f32 %v2525_v9, %v2305_v8 }
 0x23a   : > { %v2004_v13 = vpop.f32.mrf.mxu1 }
 0x23b   : > { %v2615_v14 = vadd.f32 %v6392_v52, %v2583_v11  ;;  %5613 = vmatmul.msk.f32.gmra.mxu2 %vm368_vm1, %v3286_v10  ;;  %v1792_v15 = vpop.f32.mrf.mxu0 }
 0x23c   : > { %v2005_v16 = vadd.f32 %v2004_v13, %v1792_v15  ;;  %5647 = vmatmul.msk.f32.gmra.mxu3 %vm368_vm1, %v3564_v12  ;;  %v3292_v13 = vld [vmem:[#allocation2 + $0xa8] sm:$0xff] }
 0x23d   : > { %2698 = vrot.lane.b32.xlu1 %v2615_v14, %s5872_s10  ;;  %5579 = vmatmul.msk.f32.gmra.mxu1 %vm368_vm1, %v3284_v53  ;;  %v3570_v15 = vld [vmem:[#allocation2 + $0xa9] sm:$0xff] }
 0x23e   : > { %v2250_v17 = vpop.f32.mrf.mxu2  ;;  %5546 = vmatmul.msk.f32.gmra.mxu0 %vm368_vm1, %v3562_v55  ;;  %v3290_v55 = vld [vmem:[#allocation2 + $0x90] sm:$0xff] }
 0x23f   : > { %v2306_v18 = vadd.f32 %v2250_v17, %v2005_v16  ;;  %v2677_v19 = vpop.permute.xlu2 %2676 }
 0x240   : > { %2765 = vst.msk [vmem:[%s6115_s22 + $0x80] sm:$0xff] %vm2756_vm3, %v2677_v19  ;;  %v2528_v21 = vpop.f32.mrf.mxu3 }
 0x241   : > { %v2584_v23 = vadd.f32 %v2528_v21, %v2306_v18 }
 0x242   : > { %v2007_v27 = vpop.f32.mrf.mxu1 }
 0x243   : > { %v2616_v20 = vadd.f32 %v6392_v52, %v2584_v23  ;;  %5614 = vmatmul.msk.f32.gmra.mxu2 %vm368_vm1, %v3287_v22  ;;  %v1795_v28 = vpop.f32.mrf.mxu0 }
 0x244   : > { %v2008_v29 = vadd.f32 %v2007_v27, %v1795_v28  ;;  %5648 = vmatmul.msk.f32.gmra.mxu3 %vm368_vm1, %v3565_v24  ;;  %v3293_v27 = vld [vmem:[#allocation2 + $0xb0] sm:$0xff] }
 0x245   : > { %2700 = vrot.lane.b32.xlu2 %v2616_v20, %s5872_s10  ;;  %5580 = vmatmul.msk.f32.gmra.mxu1 %vm368_vm1, %v3285_v0  ;;  %v3571_v28 = vld [vmem:[#allocation2 + $0xb1] sm:$0xff] }
 0x246   : > { %v2253_v30 = vpop.f32.mrf.mxu2  ;;  %5547 = vmatmul.msk.f32.gmra.mxu0 %vm368_vm1, %v3563_v2  ;;  %v3291_v2 = vld [vmem:[#allocation2 + $0x98] sm:$0xff] }
 0x247   : > { %v2307_v31 = vadd.f32 %v2253_v30, %v2008_v29  ;;  %v2673_v32 = vpop.permute.xlu0 %2672 }
 0x248   : > { %2763 = vst.msk [vmem:[%s6115_s22 + $0x60] sm:$0xff] %vm2756_vm3, %v2673_v32  ;;  %v2531_v33 = vpop.f32.mrf.mxu3 }
 0x249   : > { %v2585_v35 = vadd.f32 %v2531_v33, %v2307_v31 }
 0x24a   : > { %v2010_v37 = vpop.f32.mrf.mxu1 }
 0x24b   : > { %v2617_v25 = vadd.f32 %v6392_v52, %v2585_v35  ;;  %5615 = vmatmul.msk.f32.gmra.mxu2 %vm368_vm1, %v3288_v34  ;;  %v1798_v38 = vpop.f32.mrf.mxu0 }
 0x24c   : > { %v2011_v39 = vadd.f32 %v2010_v37, %v1798_v38  ;;  %5649 = vmatmul.msk.f32.gmra.mxu3 %vm368_vm1, %v3566_v36  ;;  %v3294_v37 = vld [vmem:[#allocation2 + $0xc0] sm:$0xff] }
 0x24d   : > { %2702 = vrot.lane.b32.xlu0 %v2617_v25, %s5872_s10  ;;  %5581 = vmatmul.msk.f32.gmra.mxu1 %vm368_vm1, %v3286_v10  ;;  %v3572_v38 = vld [vmem:[#allocation2 + $0xc1] sm:$0xff] }
 0x24e   : > { %v2256_v40 = vpop.f32.mrf.mxu2  ;;  %5548 = vmatmul.msk.f32.gmra.mxu0 %vm368_vm1, %v3564_v12 }
 0x24f   : > { %v2308_v41 = vadd.f32 %v2256_v40, %v2011_v39  ;;  %v2675_v42 = vpop.permute.xlu1 %2674 }
 0x250   : > { %2764 = vst.msk [vmem:[%s6115_s22 + $0x68] sm:$0xff] %vm2756_vm3, %v2675_v42  ;;  %v2534_v43 = vpop.f32.mrf.mxu3 }
 0x251   : > { %v2586_v45 = vadd.f32 %v2534_v43, %v2308_v41 }
 0x252   : > { %v2013_v47 = vpop.f32.mrf.mxu1 }
 0x253   : > { %v2618_v48 = vadd.f32 %v6392_v52, %v2586_v45  ;;  %5616 = vmatmul.msk.f32.gmra.mxu2 %vm368_vm1, %v3289_v44  ;;  %v1801_v49 = vpop.f32.mrf.mxu0 }
 0x254   : > { %v2014_v50 = vadd.f32 %v2013_v47, %v1801_v49  ;;  %5650 = vmatmul.msk.f32.gmra.mxu3 %vm368_vm1, %v3567_v46  ;;  %v3295_v47 = vld [vmem:[#allocation2 + $0xc8] sm:$0xff] }
 0x255   : > { %2704 = vrot.lane.b32.xlu1 %v2618_v48, %s5872_s10  ;;  %5582 = vmatmul.msk.f32.gmra.mxu1 %vm368_vm1, %v3287_v22  ;;  %v3573_v49 = vld [vmem:[#allocation2 + $0xc9] sm:$0xff] }
 0x256   : > { %v2259_v51 = vpop.f32.mrf.mxu2  ;;  %5549 = vmatmul.msk.f32.gmra.mxu0 %vm368_vm1, %v3565_v24 }
 0x257   : > { %v2309_v26 = vadd.f32 %v2259_v51, %v2014_v50  ;;  %v2683_v53 = vpop.permute.xlu2 %2682 }
 0x258   : > { %2768 = vst.msk [vmem:[%s6115_s22 + $0xa8] sm:$0xff] %vm2756_vm3, %v2683_v53  ;;  %v2537_v54 = vpop.f32.mrf.mxu3 }
 0x259   : > { %v2587_v56 = vadd.f32 %v2537_v54, %v2309_v26 }
 0x25a   : > { %v2016_v58 = vpop.f32.mrf.mxu1 }
 0x25b   : > { %v2619_v59 = vadd.f32 %v6392_v52, %v2587_v56  ;;  %5617 = vmatmul.msk.f32.gmra.mxu2 %vm368_vm1, %v3290_v55  ;;  %v1804_v60 = vpop.f32.mrf.mxu0 }
 0x25c   : > { %v2017_v61 = vadd.f32 %v2016_v58, %v1804_v60  ;;  %5651 = vmatmul.msk.f32.gmra.mxu3 %vm368_vm1, %v3568_v57  ;;  %v3296_v58 = vld [vmem:[#allocation2 + $0xd8] sm:$0xff] }
 0x25d   : > { %2706 = vrot.lane.b32.xlu2 %v2619_v59, %s5872_s10  ;;  %5583 = vmatmul.msk.f32.gmra.mxu1 %vm368_vm1, %v3288_v34  ;;  %v3574_v60 = vld [vmem:[#allocation2 + $0xd9] sm:$0xff] }
 0x25e   : > { %v2262_v62 = vpop.f32.mrf.mxu2  ;;  %5550 = vmatmul.msk.f32.gmra.mxu0 %vm368_vm1, %v3566_v36 }
 0x25f   : > { %v2310_v63 = vadd.f32 %v2262_v62, %v2017_v61  ;;  %v2679_v0 = vpop.permute.xlu0 %2678 }
 0x260   : > { %2766 = vst.msk [vmem:[%s6115_s22 + $0x88] sm:$0xff] %vm2756_vm3, %v2679_v0  ;;  %v2540_v1 = vpop.f32.mrf.mxu3 }
 0x261   : > { %v2588_v3 = vadd.f32 %v2540_v1, %v2310_v63 }
 0x262   : > { %v2019_v5 = vpop.f32.mrf.mxu1 }
 0x263   : > { %v2620_v6 = vadd.f32 %v6392_v52, %v2588_v3  ;;  %5618 = vmatmul.msk.f32.gmra.mxu2 %vm368_vm1, %v3291_v2  ;;  %v1807_v7 = vpop.f32.mrf.mxu0 }
 0x264   : > { %v2020_v8 = vadd.f32 %v2019_v5, %v1807_v7  ;;  %5652 = vmatmul.msk.f32.gmra.mxu3 %vm368_vm1, %v3569_v4  ;;  %v3297_v5 = vld [vmem:[#allocation2 + $0xe0] sm:$0xff] }
 0x265   : > { %2708 = vrot.lane.b32.xlu0 %v2620_v6, %s5872_s10  ;;  %5584 = vmatmul.msk.f32.gmra.mxu1 %vm368_vm1, %v3289_v44  ;;  %v3575_v6 = vld [vmem:[#allocation2 + $0xe1] sm:$0xff] }
 0x266   : > { %v2265_v9 = vpop.f32.mrf.mxu2  ;;  %5551 = vmatmul.msk.f32.gmra.mxu0 %vm368_vm1, %v3567_v46 }
 0x267   : > { %v2311_v10 = vadd.f32 %v2265_v9, %v2020_v8  ;;  %v2681_v11 = vpop.permute.xlu1 %2680  ;;  %v6634_v8 = vld [vmem:[%s7113_s3] ss:$0 sm:$0xff] }
 0x268   : > { %2767 = vst.msk [vmem:[%s6115_s22 + $0xa0] sm:$0xff] %vm2756_vm3, %v2681_v11  ;;  %v2543_v12 = vpop.f32.mrf.mxu3 }
 0x269   : > { %v2589_v14 = vadd.f32 %v2543_v12, %v2311_v10 }
 0x26a   : > { %v2022_v16 = vpop.f32.mrf.mxu1 }
 0x26b   : > { %v2621_v17 = vadd.f32 %v6392_v52, %v2589_v14  ;;  %5619 = vmatmul.msk.f32.gmra.mxu2 %vm368_vm1, %v3292_v13  ;;  %v1810_v18 = vpop.f32.mrf.mxu0 }
 0x26c   : > { %v2023_v19 = vadd.f32 %v2022_v16, %v1810_v18  ;;  %5653 = vmatmul.msk.f32.gmra.mxu3 %vm368_vm1, %v3570_v15  ;;  %v3298_v16 = vld [vmem:[#allocation2 + $0xf0] sm:$0xff] }
 0x26d   : > { %2710 = vrot.lane.b32.xlu1 %v2621_v17, %s5872_s10  ;;  %5585 = vmatmul.msk.f32.gmra.mxu1 %vm368_vm1, %v3290_v55  ;;  %v3576_v18 = vld [vmem:[#allocation2 + $0xf1] sm:$0xff] }
 0x26e   : > { %v2268_v21 = vpop.f32.mrf.mxu2  ;;  %5552 = vmatmul.msk.f32.gmra.mxu0 %vm368_vm1, %v3568_v57 }
 0x26f   : > { %v2312_v22 = vadd.f32 %v2268_v21, %v2023_v19  ;;  %v2689_v23 = vpop.permute.xlu2 %2688 }
 0x270   : > { %2771 = vst.msk [vmem:[%s6115_s22 + $0xe0] sm:$0xff] %vm2756_vm3, %v2689_v23  ;;  %v2546_v24 = vpop.f32.mrf.mxu3 }
 0x271   : > { %v2590_v20 = vadd.f32 %v2546_v24, %v2312_v22 }
 0x272   : > { %v2025_v29 = vpop.f32.mrf.mxu1 }
 0x273   : > { %v2622_v30 = vadd.f32 %v6392_v52, %v2590_v20  ;;  %5620 = vmatmul.msk.f32.gmra.mxu2 %vm368_vm1, %v3293_v27  ;;  %v1813_v31 = vpop.f32.mrf.mxu0 }
 0x274   : > { %v2026_v32 = vadd.f32 %v2025_v29, %v1813_v31  ;;  %5654 = vmatmul.msk.f32.gmra.mxu3 %vm368_vm1, %v3571_v28  ;;  %v3299_v29 = vld [vmem:[#allocation2 + $0xf8] sm:$0xff] }
 0x275   : > { %2712 = vrot.lane.b32.xlu2 %v2622_v30, %s5872_s10  ;;  %5586 = vmatmul.msk.f32.gmra.mxu1 %vm368_vm1, %v3291_v2  ;;  %v3577_v31 = vld [vmem:[#allocation2 + $0xf9] sm:$0xff] }
 0x276   : > { %v2271_v33 = vpop.f32.mrf.mxu2  ;;  %5553 = vmatmul.msk.f32.gmra.mxu0 %vm368_vm1, %v3569_v4 }
 0x277   : > { %v2313_v34 = vadd.f32 %v2271_v33, %v2026_v32  ;;  %v2685_v35 = vpop.permute.xlu0 %2684 }
 0x278   : > { %2769 = vst.msk [vmem:[%s6115_s22 + $0xc0] sm:$0xff] %vm2756_vm3, %v2685_v35  ;;  %v2549_v36 = vpop.f32.mrf.mxu3 }
 0x279   : > { %v2591_v25 = vadd.f32 %v2549_v36, %v2313_v34 }
 0x27a   : > { %v2028_v39 = vpop.f32.mrf.mxu1 }
 0x27b   : > { %v2623_v40 = vadd.f32 %v6392_v52, %v2591_v25  ;;  %5621 = vmatmul.msk.f32.gmra.mxu2 %vm368_vm1, %v3294_v37  ;;  %v1816_v41 = vpop.f32.mrf.mxu0 }
 0x27c   : > { %v2029_v42 = vadd.f32 %v2028_v39, %v1816_v41  ;;  %5655 = vmatmul.msk.f32.gmra.mxu3 %vm368_vm1, %v3572_v38  ;;  %v3300_v39 = vld [vmem:[#allocation2 + $0x108] sm:$0xff] }
 0x27d   : > { %2714 = vrot.lane.b32.xlu0 %v2623_v40, %s5872_s10  ;;  %5587 = vmatmul.msk.f32.gmra.mxu1 %vm368_vm1, %v3292_v13  ;;  %v3578_v41 = vld [vmem:[#allocation2 + $0x109] sm:$0xff] }
 0x27e   : > { %v2274_v43 = vpop.f32.mrf.mxu2  ;;  %5554 = vmatmul.msk.f32.gmra.mxu0 %vm368_vm1, %v3570_v15 }
 0x27f   : > { %v2314_v44 = vadd.f32 %v2274_v43, %v2029_v42  ;;  %v2687_v45 = vpop.permute.xlu1 %2686 }
 0x280   : > { %2770 = vst.msk [vmem:[%s6115_s22 + $0xc8] sm:$0xff] %vm2756_vm3, %v2687_v45  ;;  %v2552_v46 = vpop.f32.mrf.mxu3 }
 0x281   : > { %v2592_v48 = vadd.f32 %v2552_v46, %v2314_v44 }
 0x282   : > { %v2031_v50 = vpop.f32.mrf.mxu1 }
 0x283   : > { %v2624_v51 = vadd.f32 %v6392_v52, %v2592_v48  ;;  %5622 = vmatmul.msk.f32.gmra.mxu2 %vm368_vm1, %v3295_v47  ;;  %v1819_v26 = vpop.f32.mrf.mxu0 }
 0x284   : > { %v2032_v53 = vadd.f32 %v2031_v50, %v1819_v26  ;;  %5656 = vmatmul.msk.f32.gmra.mxu3 %vm368_vm1, %v3573_v49  ;;  %v3301_v50 = vld [vmem:[#allocation2 + $0x110] sm:$0xff] }
 0x285   : > { %2716 = vrot.lane.b32.xlu1 %v2624_v51, %s5872_s10  ;;  %5588 = vmatmul.msk.f32.gmra.mxu1 %vm368_vm1, %v3293_v27  ;;  %v3579_v26 = vld [vmem:[#allocation2 + $0x111] sm:$0xff] }
 0x286   : > { %v2277_v54 = vpop.f32.mrf.mxu2  ;;  %5555 = vmatmul.msk.f32.gmra.mxu0 %vm368_vm1, %v3571_v28 }
 0x287   : > { %v2315_v55 = vadd.f32 %v2277_v54, %v2032_v53  ;;  %v2695_v56 = vpop.permute.xlu2 %2694 }
 0x288   : > { %2774 = vst.msk [vmem:[%s6115_s22 + $0x108] sm:$0xff] %vm2756_vm3, %v2695_v56  ;;  %v2555_v57 = vpop.f32.mrf.mxu3 }
 0x289   : > { %v2593_v59 = vadd.f32 %v2555_v57, %v2315_v55 }
 0x28a   : > { %v2034_v61 = vpop.f32.mrf.mxu1 }
 0x28b   : > { %v2625_v62 = vadd.f32 %v6392_v52, %v2593_v59  ;;  %5623 = vmatmul.msk.f32.gmra.mxu2 %vm368_vm1, %v3296_v58  ;;  %v1822_v63 = vpop.f32.mrf.mxu0 }
 0x28c   : > { %v2035_v0 = vadd.f32 %v2034_v61, %v1822_v63  ;;  %5657 = vmatmul.msk.f32.gmra.mxu3 %vm368_vm1, %v3574_v60  ;;  %v3302_v61 = vld [vmem:[#allocation2 + $0x120] sm:$0xff] }
 0x28d   : > { %2718 = vrot.lane.b32.xlu2 %v2625_v62, %s5872_s10  ;;  %5589 = vmatmul.msk.f32.gmra.mxu1 %vm368_vm1, %v3294_v37  ;;  %v3580_v63 = vld [vmem:[#allocation2 + $0x121] sm:$0xff] }
 0x28e   : > { %v2280_v1 = vpop.f32.mrf.mxu2  ;;  %5556 = vmatmul.msk.f32.gmra.mxu0 %vm368_vm1, %v3572_v38 }
 0x28f   : > { %v2316_v2 = vadd.f32 %v2280_v1, %v2035_v0  ;;  %v2691_v3 = vpop.permute.xlu0 %2690 }
 0x290   : > { %2772 = vst.msk [vmem:[%s6115_s22 + $0xe8] sm:$0xff] %vm2756_vm3, %v2691_v3  ;;  %v2558_v4 = vpop.f32.mrf.mxu3 }
 0x291   : > { %v2594_v52 = vadd.f32 %v2558_v4, %v2316_v2 }
 0x292   : > { %v2037_v7 = vpop.f32.mrf.mxu1 }
 0x293   : > { %v2626_v9 = vadd.f32 %v6634_v8, %v2594_v52  ;;  %5624 = vmatmul.msk.f32.gmra.mxu2 %vm368_vm1, %v3297_v5  ;;  %v1825_v10 = vpop.f32.mrf.mxu0 }
 0x294   : > { %v2038_v11 = vadd.f32 %v2037_v7, %v1825_v10  ;;  %5658 = vmatmul.msk.f32.gmra.mxu3 %vm368_vm1, %v3575_v6  ;;  %v3303_v7 = vld [vmem:[#allocation2 + $0x128] sm:$0xff] }
 0x295   : > { %2720 = vrot.lane.b32.xlu0 %v2626_v9, %s5872_s10  ;;  %5590 = vmatmul.msk.f32.gmra.mxu1 %vm368_vm1, %v3295_v47  ;;  %v3581_v10 = vld [vmem:[#allocation2 + $0x129] sm:$0xff] }
 0x296   : > { %v2283_v12 = vpop.f32.mrf.mxu2  ;;  %5557 = vmatmul.msk.f32.gmra.mxu0 %vm368_vm1, %v3573_v49 }
 0x297   : > { %v2317_v13 = vadd.f32 %v2283_v12, %v2038_v11  ;;  %v2693_v14 = vpop.permute.xlu1 %2692 }
 0x298   : > { %2773 = vst.msk [vmem:[%s6115_s22 + $0x100] sm:$0xff] %vm2756_vm3, %v2693_v14  ;;  %v2561_v15 = vpop.f32.mrf.mxu3 }
 0x299   : > { %v2595_v17 = vadd.f32 %v2561_v15, %v2317_v13 }
 0x29a   : > { %v3185_v19 = vpop.f32.mrf.mxu1 }
 0x29b   : > { %v2627_v21 = vadd.f32 %v6634_v8, %v2595_v17  ;;  %5625 = vmatmul.msk.f32.gmra.mxu2 %vm368_vm1, %v3298_v16  ;;  %v2973_v22 = vpop.f32.mrf.mxu0 }
 0x29c   : > { %v3186_v23 = vadd.f32 %v3185_v19, %v2973_v22  ;;  %5659 = vmatmul.msk.f32.gmra.mxu3 %vm368_vm1, %v3576_v18  ;;  %v3304_v19 = vld [vmem:[#allocation2 + $0x138] sm:$0xff] }
 0x29d   : > { %2722 = vrot.lane.b32.xlu1 %v2627_v21, %s5872_s10  ;;  %5591 = vmatmul.msk.f32.gmra.mxu1 %vm368_vm1, %v3296_v58  ;;  %v3582_v22 = vld [vmem:[#allocation2 + $0x139] sm:$0xff] }
 0x29e   : > { %v3432_v24 = vpop.f32.mrf.mxu2  ;;  %5558 = vmatmul.msk.f32.gmra.mxu0 %vm368_vm1, %v3574_v60 }
 0x29f   : > { %v3528_v27 = vadd.f32 %v3432_v24, %v3186_v23  ;;  %v2701_v20 = vpop.permute.xlu2 %2700 }
 0x2a0   : > { %2777 = vst.msk [vmem:[%s6115_s22 + $0x140] sm:$0xff] %vm2756_vm3, %v2701_v20  ;;  %v3710_v28 = vpop.f32.mrf.mxu3 }
 0x2a1   : > { %v3806_v30 = vadd.f32 %v3710_v28, %v3528_v27 }
 0x2a2   : > { %v3188_v32 = vpop.f32.mrf.mxu1 }
 0x2a3   : > { %v3838_v33 = vadd.f32 %v6634_v8, %v3806_v30  ;;  %5626 = vmatmul.msk.f32.gmra.mxu2 %vm368_vm1, %v3299_v29  ;;  %v2976_v34 = vpop.f32.mrf.mxu0 }
 0x2a4   : > { %v3189_v35 = vadd.f32 %v3188_v32, %v2976_v34  ;;  %5660 = vmatmul.msk.f32.gmra.mxu3 %vm368_vm1, %v3577_v31  ;;  %v3305_v32 = vld [vmem:[#allocation2 + $0x140] sm:$0xff] }
 0x2a5   : > { %3870 = vst.msk [vmem:[%s6115_s22 + $0x10] sm:$0xff] %vm368_vm1, %v3838_v33  ;;  %5592 = vmatmul.msk.f32.gmra.mxu1 %vm368_vm1, %v3297_v5  ;;  %v3583_v34 = vld [vmem:[#allocation2 + $0x141] sm:$0xff] }
 0x2a6   : > { %v3435_v36 = vpop.f32.mrf.mxu2  ;;  %5559 = vmatmul.msk.f32.gmra.mxu0 %vm368_vm1, %v3575_v6 }
 0x2a7   : > { %v3529_v37 = vadd.f32 %v3435_v36, %v3189_v35  ;;  %v2697_v25 = vpop.permute.xlu0 %2696 }
 0x2a8   : > { %2775 = vst.msk [vmem:[%s6115_s22 + $0x120] sm:$0xff] %vm2756_vm3, %v2697_v25  ;;  %v3713_v38 = vpop.f32.mrf.mxu3 }
 0x2a9   : > { %v3807_v40 = vadd.f32 %v3713_v38, %v3529_v37 }
 0x2aa   : > { %v3191_v42 = vpop.f32.mrf.mxu1 }
 0x2ab   : > { %v3839_v43 = vadd.f32 %v6634_v8, %v3807_v40  ;;  %5627 = vmatmul.msk.f32.gmra.mxu2 %vm368_vm1, %v3300_v39  ;;  %v2979_v44 = vpop.f32.mrf.mxu0 }
 0x2ac   : > { %v3192_v45 = vadd.f32 %v3191_v42, %v2979_v44  ;;  %5661 = vmatmul.msk.f32.gmra.mxu3 %vm368_vm1, %v3578_v41  ;;  %v3306_v42 = vld [vmem:[#allocation2 + $0x150] sm:$0xff] }
 0x2ad   : > { %3871 = vst.msk [vmem:[%s6115_s22 + $0x18] sm:$0xff] %vm368_vm1, %v3839_v43  ;;  %5593 = vmatmul.msk.f32.gmra.mxu1 %vm368_vm1, %v3298_v16  ;;  %v3584_v44 = vld [vmem:[#allocation2 + $0x151] sm:$0xff] }
 0x2ae   : > { %v3438_v46 = vpop.f32.mrf.mxu2  ;;  %5560 = vmatmul.msk.f32.gmra.mxu0 %vm368_vm1, %v3576_v18 }
 0x2af   : > { %v3530_v47 = vadd.f32 %v3438_v46, %v3192_v45  ;;  %v2699_v48 = vpop.permute.xlu1 %2698 }
 0x2b0   : > { %2776 = vst.msk [vmem:[%s6115_s22 + $0x128] sm:$0xff] %vm2756_vm3, %v2699_v48  ;;  %v3716_v49 = vpop.f32.mrf.mxu3 }
 0x2b1   : > { %v3808_v51 = vadd.f32 %v3716_v49, %v3530_v47 }
 0x2b2   : > { %v3194_v53 = vpop.f32.mrf.mxu1 }
 0x2b3   : > { %v3840_v54 = vadd.f32 %v6634_v8, %v3808_v51  ;;  %5628 = vmatmul.msk.f32.gmra.mxu2 %vm368_vm1, %v3301_v50  ;;  %v2982_v55 = vpop.f32.mrf.mxu0 }
 0x2b4   : > { %v3195_v56 = vadd.f32 %v3194_v53, %v2982_v55  ;;  %5662 = vmatmul.msk.f32.gmra.mxu3 %vm368_vm1, %v3579_v26  ;;  %v3307_v53 = vld [vmem:[#allocation2 + $0x158] sm:$0xff] }
 0x2b5   : > { %3872 = vst.msk [vmem:[%s6115_s22 + $0x30] sm:$0xff] %vm368_vm1, %v3840_v54  ;;  %5594 = vmatmul.msk.f32.gmra.mxu1 %vm368_vm1, %v3299_v29  ;;  %v3585_v55 = vld [vmem:[#allocation2 + $0x159] sm:$0xff] }
 0x2b6   : > { %v3441_v57 = vpop.f32.mrf.mxu2  ;;  %5561 = vmatmul.msk.f32.gmra.mxu0 %vm368_vm1, %v3577_v31 }
 0x2b7   : > { %v3531_v58 = vadd.f32 %v3441_v57, %v3195_v56  ;;  %v2707_v59 = vpop.permute.xlu2 %2706 }
 0x2b8   : > { %2780 = vst.msk [vmem:[%s6115_s22 + $0x168] sm:$0xff] %vm2756_vm3, %v2707_v59  ;;  %v3719_v60 = vpop.f32.mrf.mxu3  ;;  %v421_v59 = vld [vmem:[%s6202_s26 + $0x18] sm:$0xff] }
 0x2b9   : > { %v3809_v62 = vadd.f32 %v3719_v60, %v3531_v58  ;;  %428 = vst.msk [vmem:[#allocation2 + $0x198] sm:$0xff] %vm368_vm1, %v421_v59 }
 0x2ba   : > { %v3197_v0 = vpop.f32.mrf.mxu1 }
 0x2bb   : > { %v3841_v1 = vadd.f32 %v6634_v8, %v3809_v62  ;;  %5629 = vmatmul.msk.f32.gmra.mxu2 %vm368_vm1, %v3302_v61  ;;  %v2985_v2 = vpop.f32.mrf.mxu0 }
 0x2bc   : > { %v3198_v3 = vadd.f32 %v3197_v0, %v2985_v2  ;;  %5663 = vmatmul.msk.f32.gmra.mxu3 %vm368_vm1, %v3580_v63  ;;  %v3308_v2 = vld [vmem:[#allocation2 + $0x168] sm:$0xff] }
 0x2bd   : > { %3873 = vst.msk [vmem:[%s6115_s22 + $0x38] sm:$0xff] %vm368_vm1, %v3841_v1  ;;  %5595 = vmatmul.msk.f32.gmra.mxu1 %vm368_vm1, %v3300_v39 }
 0x2be   : > { %v3444_v4 = vpop.f32.mrf.mxu2  ;;  %5562 = vmatmul.msk.f32.gmra.mxu0 %vm368_vm1, %v3578_v41 }
 0x2bf   : > { %v3532_v5 = vadd.f32 %v3444_v4, %v3198_v3  ;;  %v2703_v52 = vpop.permute.xlu0 %2702  ;;  %v3586_v4 = vld [vmem:[#allocation2 + $0x169] sm:$0xff] }
 0x2c0   : > { %2778 = vst.msk [vmem:[%s6115_s22 + $0x148] sm:$0xff] %vm2756_vm3, %v2703_v52  ;;  %v3722_v6 = vpop.f32.mrf.mxu3 }
 0x2c1   : > { %v3810_v9 = vadd.f32 %v3722_v6, %v3532_v5 }
 0x2c2   : > { %v3200_v11 = vpop.f32.mrf.mxu1 }
 0x2c3   : > { %v3842_v12 = vadd.f32 %v6634_v8, %v3810_v9  ;;  %5630 = vmatmul.msk.f32.gmra.mxu2 %vm368_vm1, %v3303_v7  ;;  %v2988_v13 = vpop.f32.mrf.mxu0  ;;  %v423_v9 = vld [vmem:[%s6202_s26 + $0x28] sm:$0x3] }
 0x2c4   : > { %v3201_v14 = vadd.f32 %v3200_v11, %v2988_v13  ;;  %5664 = vmatmul.msk.f32.gmra.mxu3 %vm368_vm1, %v3581_v10  ;;  %430 = vst.msk [vmem:[#allocation2 + $0x1a8] sm:$0x3] %vm371_vm2, %v423_v9 }
 0x2c5   : > { %3874 = vst.msk [vmem:[%s6115_s22 + $0x50] sm:$0xff] %vm368_vm1, %v3842_v12  ;;  %5596 = vmatmul.msk.f32.gmra.mxu1 %vm368_vm1, %v3301_v50 }
 0x2c6   : > { %v3447_v15 = vpop.f32.mrf.mxu2  ;;  %5563 = vmatmul.msk.f32.gmra.mxu0 %vm368_vm1, %v3579_v26 }
 0x2c7   : > { %v3533_v16 = vadd.f32 %v3447_v15, %v3201_v14  ;;  %v2705_v17 = vpop.permute.xlu1 %2704  ;;  %v3309_v14 = vld [vmem:[#allocation2 + $0x170] sm:$0xff] }
 0x2c8   : > { %2779 = vst.msk [vmem:[%s6115_s22 + $0x160] sm:$0xff] %vm2756_vm3, %v2705_v17  ;;  %v3725_v18 = vpop.f32.mrf.mxu3 }
 0x2c9   : > { %v3811_v21 = vadd.f32 %v3725_v18, %v3533_v16  ;;  %v3587_v16 = vld [vmem:[#allocation2 + $0x171] sm:$0xff] }
 0x2ca   : > { %v3203_v23 = vpop.f32.mrf.mxu1 }
 0x2cb   : > { %v3843_v24 = vadd.f32 %v6634_v8, %v3811_v21  ;;  %5631 = vmatmul.msk.f32.gmra.mxu2 %vm368_vm1, %v3304_v19  ;;  %v2991_v27 = vpop.f32.mrf.mxu0 }
 0x2cc   : > { %v3204_v20 = vadd.f32 %v3203_v23, %v2991_v27  ;;  %5665 = vmatmul.msk.f32.gmra.mxu3 %vm368_vm1, %v3582_v22 }
 0x2cd   : > { %3875 = vst.msk [vmem:[%s6115_s22 + $0x58] sm:$0xff] %vm368_vm1, %v3843_v24  ;;  %5597 = vmatmul.msk.f32.gmra.mxu1 %vm368_vm1, %v3302_v61  ;;  %v422_v61 = vld [vmem:[%s6202_s26 + $0x20] sm:$0xff] }
 0x2ce   : > { %v3450_v28 = vpop.f32.mrf.mxu2  ;;  %5564 = vmatmul.msk.f32.gmra.mxu0 %vm368_vm1, %v3580_v63  ;;  %429 = vst.msk [vmem:[#allocation2 + $0x1a0] sm:$0xff] %vm368_vm1, %v422_v61 }
 0x2cf   : > { %v3534_v29 = vadd.f32 %v3450_v28, %v3204_v20  ;;  %v2713_v30 = vpop.permute.xlu2 %2712  ;;  %v3310_v20 = vld [vmem:[#allocation2 + $0x180] sm:$0xff] }
 0x2d0   : > { %2783 = vst.msk [vmem:[%s6115_s22 + $0x1a0] sm:$0xff] %vm2756_vm3, %v2713_v30  ;;  %v3728_v31 = vpop.f32.mrf.mxu3 }
 0x2d1   : > { %v3812_v33 = vadd.f32 %v3728_v31, %v3534_v29  ;;  %v3588_v29 = vld [vmem:[#allocation2 + $0x181] sm:$0xff] }
 0x2d2   : > { %v3206_v35 = vpop.f32.mrf.mxu1 }
 0x2d3   : > { %v3844_v36 = vadd.f32 %v6634_v8, %v3812_v33  ;;  %5632 = vmatmul.msk.f32.gmra.mxu2 %vm368_vm1, %v3305_v32  ;;  %v2994_v37 = vpop.f32.mrf.mxu0 }
 0x2d4   : > { %v3207_v25 = vadd.f32 %v3206_v35, %v2994_v37  ;;  %5666 = vmatmul.msk.f32.gmra.mxu3 %vm368_vm1, %v3583_v34  ;;  %v3311_v37 = vld [vmem:[#allocation2 + $0x188] sm:$0xff] }
 0x2d5   : > { %3876 = vst.msk [vmem:[%s6115_s22 + $0x70] sm:$0xff] %vm368_vm1, %v3844_v36  ;;  %5598 = vmatmul.msk.f32.gmra.mxu1 %vm368_vm1, %v3303_v7 }
 0x2d6   : > { %v3453_v38 = vpop.f32.mrf.mxu2  ;;  %5565 = vmatmul.msk.f32.gmra.mxu0 %vm368_vm1, %v3581_v10 }
 0x2d7   : > { %v3535_v39 = vadd.f32 %v3453_v38, %v3207_v25  ;;  %v2709_v40 = vpop.permute.xlu0 %2708  ;;  %v3589_v38 = vld [vmem:[#allocation2 + $0x189] sm:$0xff] }
 0x2d8   : > { %2781 = vst.msk [vmem:[%s6115_s22 + $0x180] sm:$0xff] %vm2756_vm3, %v2709_v40  ;;  %v3731_v41 = vpop.f32.mrf.mxu3 }
 0x2d9   : > { %v3813_v43 = vadd.f32 %v3731_v41, %v3535_v39 }
 0x2da   : > { %v3209_v45 = vpop.f32.mrf.mxu1 }
 0x2db   : > { %v3845_v46 = vadd.f32 %v6634_v8, %v3813_v43  ;;  %5633 = vmatmul.msk.f32.gmra.mxu2 %vm368_vm1, %v3306_v42  ;;  %v2997_v47 = vpop.f32.mrf.mxu0 }
 0x2dc   : > { %v3210_v48 = vadd.f32 %v3209_v45, %v2997_v47  ;;  %5667 = vmatmul.msk.f32.gmra.mxu3 %vm368_vm1, %v3584_v44  ;;  %v3312_v47 = vld [vmem:[#allocation2 + $0x198] sm:$0xff] }
 0x2dd   : > { %3877 = vst.msk [vmem:[%s6115_s22 + $0x78] sm:$0xff] %vm368_vm1, %v3845_v46  ;;  %5599 = vmatmul.msk.f32.gmra.mxu1 %vm368_vm1, %v3304_v19 }
 0x2de   : > { %v3456_v49 = vpop.f32.mrf.mxu2  ;;  %5566 = vmatmul.msk.f32.gmra.mxu0 %vm368_vm1, %v3582_v22 }
 0x2df   : > { %v3536_v50 = vadd.f32 %v3456_v49, %v3210_v48  ;;  %v2711_v51 = vpop.permute.xlu1 %2710  ;;  %v3590_v49 = vld [vmem:[#allocation2 + $0x199] sm:$0xff] }
 0x2e0   : > { %2782 = vst.msk [vmem:[%s6115_s22 + $0x188] sm:$0xff] %vm2756_vm3, %v2711_v51  ;;  %v3734_v26 = vpop.f32.mrf.mxu3 }
 0x2e1   : > { %v3814_v54 = vadd.f32 %v3734_v26, %v3536_v50 }
 0x2e2   : > { %v3212_v56 = vpop.f32.mrf.mxu1 }
 0x2e3   : > { %v3846_v57 = vadd.f32 %v6634_v8, %v3814_v54  ;;  %5634 = vmatmul.msk.f32.gmra.mxu2 %vm368_vm1, %v3307_v53  ;;  %v3000_v58 = vpop.f32.mrf.mxu0 }
 0x2e4   : > { %v3213_v60 = vadd.f32 %v3212_v56, %v3000_v58  ;;  %5668 = vmatmul.msk.f32.gmra.mxu3 %vm368_vm1, %v3585_v55  ;;  %v3313_v58 = vld [vmem:[#allocation2 + $0x1a0] sm:$0xff] }
 0x2e5   : > { %3878 = vst.msk [vmem:[%s6115_s22 + $0x90] sm:$0xff] %vm368_vm1, %v3846_v57  ;;  %5600 = vmatmul.msk.f32.gmra.mxu1 %vm368_vm1, %v3305_v32 }
 0x2e6   : > { %v3459_v62 = vpop.f32.mrf.mxu2  ;;  %5567 = vmatmul.msk.f32.gmra.mxu0 %vm368_vm1, %v3583_v34 }
 0x2e7   : > { %v3537_v63 = vadd.f32 %v3459_v62, %v3213_v60  ;;  %v2719_v0 = vpop.permute.xlu2 %2718  ;;  %v3591_v60 = vld [vmem:[#allocation2 + $0x1a1] sm:$0xff] }
 0x2e8   : > { %2786 = vst.msk [vmem:[%s6115_s22 + $0x1c8] sm:$0xff] %vm2756_vm3, %v2719_v0  ;;  %v3737_v1 = vpop.f32.mrf.mxu3 }
 0x2e9   : > { %v3815_v3 = vadd.f32 %v3737_v1, %v3537_v63 }
 0x2ea   : > { %v3215_v5 = vpop.f32.mrf.mxu1 }
 0x2eb   : > { %v3847_v52 = vadd.f32 %v6634_v8, %v3815_v3  ;;  %5635 = vmatmul.msk.f32.gmra.mxu2 %vm368_vm1, %v3308_v2  ;;  %v3003_v6 = vpop.f32.mrf.mxu0 }
 0x2ec   : > { %v3216_v7 = vadd.f32 %v3215_v5, %v3003_v6  ;;  %5669 = vmatmul.msk.f32.gmra.mxu3 %vm368_vm1, %v3586_v4 }
 0x2ed   : > { %3879 = vst.msk [vmem:[%s6115_s22 + $0x98] sm:$0xff] %vm368_vm1, %v3847_v52  ;;  %5601 = vmatmul.msk.f32.gmra.mxu1 %vm368_vm1, %v3306_v42  ;;  %v4672_v52 = vld [vmem:[#allocation2 + $0x32] sm:$0xff] }
 0x2ee   : > { %v3462_v10 = vpop.f32.mrf.mxu2  ;;  %5568 = vmatmul.msk.f32.gmra.mxu0 %vm368_vm1, %v3584_v44 }
 0x2ef   : > { %v3538_v11 = vadd.f32 %v3462_v10, %v3216_v7  ;;  %v2715_v12 = vpop.permute.xlu0 %2714  ;;  %v3902_v7 = vld [vmem:[#allocation2 + $0x19] sm:$0xff] }
 0x2f0   : > { %2784 = vst.msk [vmem:[%s6115_s22 + $0x1a8] sm:$0xff] %vm2756_vm3, %v2715_v12  ;;  %v3740_v13 = vpop.f32.mrf.mxu3 }
 0x2f1   : > { %v3816_v15 = vadd.f32 %v3740_v13, %v3538_v11  ;;  %v3936_v11 = vld [vmem:[#allocation2 + $0x1a] sm:$0xff] }
 0x2f2   : > { %v3218_v17 = vpop.f32.mrf.mxu1 }
 0x2f3   : > { %v3848_v18 = vadd.f32 %v6634_v8, %v3816_v15  ;;  %5636 = vmatmul.msk.f32.gmra.mxu2 %vm368_vm1, %v3309_v14  ;;  %v3006_v19 = vpop.f32.mrf.mxu0 }
 0x2f4   : > { %v3219_v21 = vadd.f32 %v3218_v17, %v3006_v19  ;;  %5670 = vmatmul.msk.f32.gmra.mxu3 %vm368_vm1, %v3587_v16 }
 0x2f5   : > { %3880 = vst.msk [vmem:[%s6115_s22 + $0xb0] sm:$0xff] %vm368_vm1, %v3848_v18  ;;  %5602 = vmatmul.msk.f32.gmra.mxu1 %vm368_vm1, %v3307_v53  ;;  %v4673_v18 = vld [vmem:[#allocation2 + $0x3a] sm:$0xff] }
 0x2f6   : > { %v3465_v22 = vpop.f32.mrf.mxu2  ;;  %5569 = vmatmul.msk.f32.gmra.mxu0 %vm368_vm1, %v3585_v55 }
 0x2f7   : > { %v3539_v23 = vadd.f32 %v3465_v22, %v3219_v21  ;;  %v2717_v24 = vpop.permute.xlu1 %2716  ;;  %v3903_v21 = vld [vmem:[#allocation2 + $0x21] sm:$0xff] }
 0x2f8   : > { %2785 = vst.msk [vmem:[%s6115_s22 + $0x1c0] sm:$0xff] %vm2756_vm3, %v2717_v24  ;;  %v3743_v27 = vpop.f32.mrf.mxu3  ;;  %v3937_v24 = vld [vmem:[#allocation2 + $0x22] sm:$0xff] }
 0x2f9   : > { %v3817_v28 = vadd.f32 %v3743_v27, %v3539_v23 }
 0x2fa   : > { %v3221_v30 = vpop.f32.mrf.mxu1 }
 0x2fb   : > { %v3849_v31 = vadd.f32 %v6634_v8, %v3817_v28  ;;  %5637 = vmatmul.msk.f32.gmra.mxu2 %vm368_vm1, %v3310_v20  ;;  %v3009_v32 = vpop.f32.mrf.mxu0 }
 0x2fc   : > { %v3222_v33 = vadd.f32 %v3221_v30, %v3009_v32  ;;  %5671 = vmatmul.msk.f32.gmra.mxu3 %vm368_vm1, %v3588_v29  ;;  %v4396_v30 = vld [vmem:[#allocation2 + $0x49] sm:$0xff] }
 0x2fd   : > { %3881 = vst.msk [vmem:[%s6115_s22 + $0xb8] sm:$0xff] %vm368_vm1, %v3849_v31  ;;  %5603 = vmatmul.msk.f32.gmra.mxu1 %vm368_vm1, %v3308_v2  ;;  %v4674_v32 = vld [vmem:[#allocation2 + $0x4a] sm:$0xff] }
 0x2fe   : > { %v3468_v34 = vpop.f32.mrf.mxu2  ;;  %5570 = vmatmul.msk.f32.gmra.mxu0 %vm368_vm1, %v3586_v4  ;;  %v4394_v4 = vld [vmem:[#allocation2 + $0x31] sm:$0xff] }
 0x2ff   : > { %v3540_v35 = vadd.f32 %v3468_v34, %v3222_v33 }
 0x300   : > { %v3746_v36 = vpop.f32.mrf.mxu3 }
 0x301   : > { %v3818_v25 = vadd.f32 %v3746_v36, %v3540_v35 }
 0x302   : > { %v3224_v39 = vpop.f32.mrf.mxu1 }
 0x303   : > { %v3850_v40 = vadd.f32 %v6634_v8, %v3818_v25  ;;  %5638 = vmatmul.msk.f32.gmra.mxu2 %vm368_vm1, %v3311_v37  ;;  %v3012_v41 = vpop.f32.mrf.mxu0 }
 0x304   : > { %v3225_v42 = vadd.f32 %v3224_v39, %v3012_v41  ;;  %5672 = vmatmul.msk.f32.gmra.mxu3 %vm368_vm1, %v3589_v38  ;;  %v4397_v39 = vld [vmem:[#allocation2 + $0x51] sm:$0xff] }
 0x305   : > { %3882 = vst.msk [vmem:[%s6115_s22 + $0xd0] sm:$0xff] %vm368_vm1, %v3850_v40  ;;  %5604 = vmatmul.msk.f32.gmra.mxu1 %vm368_vm1, %v3309_v14  ;;  %v4675_v41 = vld [vmem:[#allocation2 + $0x52] sm:$0xff] }
 0x306   : > { %v3471_v43 = vpop.f32.mrf.mxu2  ;;  %5571 = vmatmul.msk.f32.gmra.mxu0 %vm368_vm1, %v3587_v16  ;;  %v4395_v16 = vld [vmem:[#allocation2 + $0x39] sm:$0xff] }
 0x307   : > { %v3541_v44 = vadd.f32 %v3471_v43, %v3225_v42  ;;  %v2721_v45 = vpop.permute.xlu0 %2720 }
 0x308   : > { %2787 = vst.msk [vmem:[%s6115_s22 + $0x1e0] sm:$0xff] %vm2756_vm3, %v2721_v45  ;;  %v3749_v46 = vpop.f32.mrf.mxu3 }
 0x309   : > { %v3819_v48 = vadd.f32 %v3749_v46, %v3541_v44 }
 0x30a   : > { %v3227_v50 = vpop.f32.mrf.mxu1 }
 0x30b   : > { %v3851_v51 = vadd.f32 %v6634_v8, %v3819_v48  ;;  %5639 = vmatmul.msk.f32.gmra.mxu2 %vm368_vm1, %v3312_v47  ;;  %v3015_v26 = vpop.f32.mrf.mxu0 }
 0x30c   : > { %v3228_v53 = vadd.f32 %v3227_v50, %v3015_v26  ;;  %5673 = vmatmul.msk.f32.gmra.mxu3 %vm368_vm1, %v3590_v49  ;;  %v4398_v49 = vld [vmem:[#allocation2 + $0x61] sm:$0xff] }
 0x30d   : > { %3883 = vst.msk [vmem:[%s6115_s22 + $0xd8] sm:$0xff] %vm368_vm1, %v3851_v51  ;;  %5605 = vmatmul.msk.f32.gmra.mxu1 %vm368_vm1, %v3310_v20  ;;  %v4676_v51 = vld [vmem:[#allocation2 + $0x62] sm:$0xff] }
 0x30e   : > { %v3474_v54 = vpop.f32.mrf.mxu2  ;;  %5572 = vmatmul.msk.f32.gmra.mxu0 %vm368_vm1, %v3588_v29 }
 0x30f   : > { %v3542_v55 = vadd.f32 %v3474_v54, %v3228_v53  ;;  %v2723_v56 = vpop.permute.xlu1 %2722 }
 0x310   : > { %2788 = vst.msk [vmem:[%s6115_s22 + $0x1e8] sm:$0xff] %vm2756_vm3, %v2723_v56  ;;  %v3752_v57 = vpop.f32.mrf.mxu3 }
 0x311   : > { %v3820_v59 = vadd.f32 %v3752_v57, %v3542_v55 }
 0x312   : > { %v3230_v61 = vpop.f32.mrf.mxu1 }
 0x313   : > { %v3852_v62 = vadd.f32 %v6634_v8, %v3820_v59  ;;  %5640 = vmatmul.msk.f32.gmra.mxu2 %vm368_vm1, %v3313_v58  ;;  %v3018_v63 = vpop.f32.mrf.mxu0  ;;  %v4399_v59 = vld [vmem:[#allocation2 + $0x69] sm:$0xff] }
 0x314   : > { %v3231_v0 = vadd.f32 %v3230_v61, %v3018_v63  ;;  %5674 = vmatmul.msk.f32.gmra.mxu3 %vm368_vm1, %v3591_v60  ;;  %v4677_v61 = vld [vmem:[#allocation2 + $0x6a] sm:$0xff] }
 0x315   : > { %3884 = vst.msk [vmem:[%s6115_s22 + $0xf0] sm:$0xff] %vm368_vm1, %v3852_v62  ;;  %5606 = vmatmul.msk.f32.gmra.mxu1 %vm368_vm1, %v3311_v37 }
 0x316   : > { %v3477_v1 = vpop.f32.mrf.mxu2  ;;  %5573 = vmatmul.msk.f32.gmra.mxu0 %vm368_vm1, %v3589_v38 }
 0x317   : > { %v3543_v2 = vadd.f32 %v3477_v1, %v3231_v0 }
 0x318   : > { %v3755_v3 = vpop.f32.mrf.mxu3 }
 0x319   : > { %v3821_v5 = vadd.f32 %v3755_v3, %v3543_v2 }
 0x31a   : > { %v3233_v6 = vpop.f32.mrf.mxu1 }
 0x31b   : > { %v3853_v9 = vadd.f32 %v6634_v8, %v3821_v5  ;;  %5745 = vmatmul.msk.f32.vlgmr.msrb.gmra.mxu2 %vm368_vm1, %v4394_v4  ;;  %v3021_v10 = vpop.f32.mrf.mxu0  ;;  %v4400_v5 = vld [vmem:[#allocation2 + $0x79] sm:$0xff] }
 0x31c   : > { %v3234_v12 = vadd.f32 %v3233_v6, %v3021_v10  ;;  %5779 = vmatmul.msk.f32.vlgmr.msrb.gmra.mxu3 %vm368_vm1, %v4672_v52  ;;  %v4678_v6 = vld [vmem:[#allocation2 + $0x7a] sm:$0xff] }
 0x31d   : > { %3885 = vst.msk [vmem:[%s6115_s22 + $0xf8] sm:$0xff] %vm368_vm1, %v3853_v9  ;;  %5711 = vmatmul.msk.f32.vlgmr.msrb.gmra.mxu1 %vm368_vm1, %v3902_v7 }
 0x31e   : > { %v3480_v13 = vpop.f32.mrf.mxu2  ;;  %5678 = vmatmul.msk.f32.vlgmr.msrb.gmra.mxu0 %vm368_vm1, %v3936_v11 }
 0x31f   : > { %v3544_v14 = vadd.f32 %v3480_v13, %v3234_v12 }
 0x320   : > { %v3758_v15 = vpop.f32.mrf.mxu3 }
 0x321   : > { %v3822_v17 = vadd.f32 %v3758_v15, %v3544_v14  ;;  %v4401_v15 = vld [vmem:[#allocation2 + $0x81] sm:$0xff] }
 0x322   : > { %v3236_v19 = vpop.f32.mrf.mxu1 }
 0x323   : > { %v3854_v22 = vadd.f32 %v6634_v8, %v3822_v17  ;;  %5746 = vmatmul.msk.f32.gmra.mxu2 %vm368_vm1, %v4395_v16  ;;  %v3024_v23 = vpop.f32.mrf.mxu0  ;;  %v4679_v17 = vld [vmem:[#allocation2 + $0x82] sm:$0xff] }
 0x324   : > { %v3237_v27 = vadd.f32 %v3236_v19, %v3024_v23  ;;  %5780 = vmatmul.msk.f32.gmra.mxu3 %vm368_vm1, %v4673_v18 }
 0x325   : > { %3886 = vst.msk [vmem:[%s6115_s22 + $0x110] sm:$0xff] %vm368_vm1, %v3854_v22  ;;  %5712 = vmatmul.msk.f32.gmra.mxu1 %vm368_vm1, %v3903_v21 }
 0x326   : > { %v3483_v20 = vpop.f32.mrf.mxu2  ;;  %5679 = vmatmul.msk.f32.gmra.mxu0 %vm368_vm1, %v3937_v24 }
 0x327   : > { %v3545_v28 = vadd.f32 %v3483_v20, %v3237_v27  ;;  %v4402_v20 = vld [vmem:[#allocation2 + $0x91] sm:$0xff] }
 0x328   : > { %v3761_v29 = vpop.f32.mrf.mxu3 }
 0x329   : > { %v3823_v31 = vadd.f32 %v3761_v29, %v3545_v28  ;;  %v4680_v29 = vld [vmem:[#allocation2 + $0x92] sm:$0xff] }
 0x32a   : > { %v3239_v33 = vpop.f32.mrf.mxu1 }
 0x32b   : > { %v3855_v34 = vadd.f32 %v6634_v8, %v3823_v31  ;;  %5747 = vmatmul.msk.f32.gmra.mxu2 %vm368_vm1, %v4396_v30  ;;  %v3027_v35 = vpop.f32.mrf.mxu0 }
 0x32c   : > { %v3240_v36 = vadd.f32 %v3239_v33, %v3027_v35  ;;  %5781 = vmatmul.msk.f32.gmra.mxu3 %vm368_vm1, %v4674_v32 }
 0x32d   : > { %3887 = vst.msk [vmem:[%s6115_s22 + $0x118] sm:$0xff] %vm368_vm1, %v3855_v34  ;;  %5713 = vmatmul.msk.f32.gmra.mxu1 %vm368_vm1, %v4394_v4 }
 0x32e   : > { %v3486_v37 = vpop.f32.mrf.mxu2  ;;  %5680 = vmatmul.msk.f32.gmra.mxu0 %vm368_vm1, %v4672_v52 }
 0x32f   : > { %v3546_v25 = vadd.f32 %v3486_v37, %v3240_v36  ;;  %v4403_v37 = vld [vmem:[#allocation2 + $0x99] sm:$0xff] }
 0x330   : > { %v3764_v38 = vpop.f32.mrf.mxu3 }
 0x331   : > { %v3824_v40 = vadd.f32 %v3764_v38, %v3546_v25  ;;  %v4681_v38 = vld [vmem:[#allocation2 + $0x9a] sm:$0xff] }
 0x332   : > { %v3242_v42 = vpop.f32.mrf.mxu1 }
 0x333   : > { %v3856_v43 = vadd.f32 %v6634_v8, %v3824_v40  ;;  %5748 = vmatmul.msk.f32.gmra.mxu2 %vm368_vm1, %v4397_v39  ;;  %v3030_v44 = vpop.f32.mrf.mxu0 }
 0x334   : > { %v3243_v45 = vadd.f32 %v3242_v42, %v3030_v44  ;;  %5782 = vmatmul.msk.f32.gmra.mxu3 %vm368_vm1, %v4675_v41 }
 0x335   : > { %3888 = vst.msk [vmem:[%s6115_s22 + $0x130] sm:$0xff] %vm368_vm1, %v3856_v43  ;;  %5714 = vmatmul.msk.f32.gmra.mxu1 %vm368_vm1, %v4395_v16 }
 0x336   : > { %v3489_v46 = vpop.f32.mrf.mxu2  ;;  %5681 = vmatmul.msk.f32.gmra.mxu0 %vm368_vm1, %v4673_v18 }
 0x337   : > { %v3547_v47 = vadd.f32 %v3489_v46, %v3243_v45  ;;  %v4404_v46 = vld [vmem:[#allocation2 + $0xa9] sm:$0xff] }
 0x338   : > { %v3767_v48 = vpop.f32.mrf.mxu3 }
 0x339   : > { %v3825_v50 = vadd.f32 %v3767_v48, %v3547_v47  ;;  %v4682_v48 = vld [vmem:[#allocation2 + $0xaa] sm:$0xff] }
 0x33a   : > { %v3245_v26 = vpop.f32.mrf.mxu1 }
 0x33b   : > { %v3857_v53 = vadd.f32 %v6634_v8, %v3825_v50  ;;  %5749 = vmatmul.msk.f32.gmra.mxu2 %vm368_vm1, %v4398_v49  ;;  %v3033_v54 = vpop.f32.mrf.mxu0 }
 0x33c   : > { %v3246_v55 = vadd.f32 %v3245_v26, %v3033_v54  ;;  %5783 = vmatmul.msk.f32.gmra.mxu3 %vm368_vm1, %v4676_v51 }
 0x33d   : > { %3889 = vst.msk [vmem:[%s6115_s22 + $0x138] sm:$0xff] %vm368_vm1, %v3857_v53  ;;  %5715 = vmatmul.msk.f32.gmra.mxu1 %vm368_vm1, %v4396_v30 }
 0x33e   : > { %v3492_v56 = vpop.f32.mrf.mxu2  ;;  %5682 = vmatmul.msk.f32.gmra.mxu0 %vm368_vm1, %v4674_v32 }
 0x33f   : > { %v3548_v57 = vadd.f32 %v3492_v56, %v3246_v55  ;;  %v4405_v56 = vld [vmem:[#allocation2 + $0xb1] sm:$0xff] }
 0x340   : > { %v3770_v58 = vpop.f32.mrf.mxu3 }
 0x341   : > { %v3826_v60 = vadd.f32 %v3770_v58, %v3548_v57  ;;  %v4683_v58 = vld [vmem:[#allocation2 + $0xb2] sm:$0xff] }
 0x342   : > { %v3248_v62 = vpop.f32.mrf.mxu1 }
 0x343   : > { %v3858_v63 = vadd.f32 %v6634_v8, %v3826_v60  ;;  %5750 = vmatmul.msk.f32.gmra.mxu2 %vm368_vm1, %v4399_v59  ;;  %v3036_v0 = vpop.f32.mrf.mxu0 }
 0x344   : > { %v3249_v1 = vadd.f32 %v3248_v62, %v3036_v0  ;;  %5784 = vmatmul.msk.f32.gmra.mxu3 %vm368_vm1, %v4677_v61 }
 0x345   : > { %3890 = vst.msk [vmem:[%s6115_s22 + $0x150] sm:$0xff] %vm368_vm1, %v3858_v63  ;;  %5716 = vmatmul.msk.f32.gmra.mxu1 %vm368_vm1, %v4397_v39 }
 0x346   : > { %v3495_v2 = vpop.f32.mrf.mxu2  ;;  %5683 = vmatmul.msk.f32.gmra.mxu0 %vm368_vm1, %v4675_v41 }
 0x347   : > { %v3549_v3 = vadd.f32 %v3495_v2, %v3249_v1  ;;  %v4406_v2 = vld [vmem:[#allocation2 + $0xc1] sm:$0xff] }
 0x348   : > { %v3773_v4 = vpop.f32.mrf.mxu3 }
 0x349   : > { %v3827_v52 = vadd.f32 %v3773_v4, %v3549_v3  ;;  %v4684_v4 = vld [vmem:[#allocation2 + $0xc2] sm:$0xff] }
 0x34a   : > { %v3251_v7 = vpop.f32.mrf.mxu1 }
 0x34b   : > { %v3859_v9 = vadd.f32 %v6634_v8, %v3827_v52  ;;  %5751 = vmatmul.msk.f32.gmra.mxu2 %vm368_vm1, %v4400_v5  ;;  %v3039_v10 = vpop.f32.mrf.mxu0 }
 0x34c   : > { %v3252_v11 = vadd.f32 %v3251_v7, %v3039_v10  ;;  %5785 = vmatmul.msk.f32.gmra.mxu3 %vm368_vm1, %v4678_v6 }
 0x34d   : > { %3891 = vst.msk [vmem:[%s6115_s22 + $0x158] sm:$0xff] %vm368_vm1, %v3859_v9  ;;  %5717 = vmatmul.msk.f32.gmra.mxu1 %vm368_vm1, %v4398_v49 }
 0x34e   : > { %v3498_v12 = vpop.f32.mrf.mxu2  ;;  %5684 = vmatmul.msk.f32.gmra.mxu0 %vm368_vm1, %v4676_v51 }
 0x34f   : > { %v3550_v13 = vadd.f32 %v3498_v12, %v3252_v11  ;;  %v4407_v12 = vld [vmem:[#allocation2 + $0xc9] sm:$0xff] }
 0x350   : > { %v3776_v14 = vpop.f32.mrf.mxu3 }
 0x351   : > { %v3828_v16 = vadd.f32 %v3776_v14, %v3550_v13  ;;  %v4685_v14 = vld [vmem:[#allocation2 + $0xca] sm:$0xff] }
 0x352   : > { %v3254_v18 = vpop.f32.mrf.mxu1 }
 0x353   : > { %v3860_v19 = vadd.f32 %v6634_v8, %v3828_v16  ;;  %5752 = vmatmul.msk.f32.gmra.mxu2 %vm368_vm1, %v4401_v15  ;;  %v3042_v21 = vpop.f32.mrf.mxu0 }
 0x354   : > { %v3255_v22 = vadd.f32 %v3254_v18, %v3042_v21  ;;  %5786 = vmatmul.msk.f32.gmra.mxu3 %vm368_vm1, %v4679_v17 }
 0x355   : > { %3892 = vst.msk [vmem:[%s6115_s22 + $0x170] sm:$0xff] %vm368_vm1, %v3860_v19  ;;  %5718 = vmatmul.msk.f32.gmra.mxu1 %vm368_vm1, %v4399_v59 }
 0x356   : > { %v3501_v23 = vpop.f32.mrf.mxu2  ;;  %5685 = vmatmul.msk.f32.gmra.mxu0 %vm368_vm1, %v4677_v61 }
 0x357   : > { %v3551_v24 = vadd.f32 %v3501_v23, %v3255_v22  ;;  %v4408_v23 = vld [vmem:[#allocation2 + $0xd9] sm:$0xff] }
 0x358   : > { %v3779_v27 = vpop.f32.mrf.mxu3 }
 0x359   : > { %v3829_v28 = vadd.f32 %v3779_v27, %v3551_v24  ;;  %v4686_v27 = vld [vmem:[#allocation2 + $0xda] sm:$0xff] }
 0x35a   : > { %v3257_v30 = vpop.f32.mrf.mxu1 }
 0x35b   : > { %v3861_v31 = vadd.f32 %v6634_v8, %v3829_v28  ;;  %5753 = vmatmul.msk.f32.gmra.mxu2 %vm368_vm1, %v4402_v20  ;;  %v3045_v32 = vpop.f32.mrf.mxu0 }
 0x35c   : > { %v3258_v33 = vadd.f32 %v3257_v30, %v3045_v32  ;;  %5787 = vmatmul.msk.f32.gmra.mxu3 %vm368_vm1, %v4680_v29 }
 0x35d   : > { %3893 = vst.msk [vmem:[%s6115_s22 + $0x178] sm:$0xff] %vm368_vm1, %v3861_v31  ;;  %5719 = vmatmul.msk.f32.gmra.mxu1 %vm368_vm1, %v4400_v5 }
 0x35e   : > { %v3504_v34 = vpop.f32.mrf.mxu2  ;;  %5686 = vmatmul.msk.f32.gmra.mxu0 %vm368_vm1, %v4678_v6 }
 0x35f   : > { %v3552_v35 = vadd.f32 %v3504_v34, %v3258_v33  ;;  %v4409_v34 = vld [vmem:[#allocation2 + $0xe1] sm:$0xff] }
 0x360   : > { %v3782_v36 = vpop.f32.mrf.mxu3 }
 0x361   : > { %v3830_v25 = vadd.f32 %v3782_v36, %v3552_v35  ;;  %v4687_v36 = vld [vmem:[#allocation2 + $0xe2] sm:$0xff] }
 0x362   : > { %v3260_v39 = vpop.f32.mrf.mxu1 }
 0x363   : > { %v3862_v40 = vadd.f32 %v6634_v8, %v3830_v25  ;;  %5754 = vmatmul.msk.f32.gmra.mxu2 %vm368_vm1, %v4403_v37  ;;  %v3048_v41 = vpop.f32.mrf.mxu0 }
 0x364   : > { %v3261_v42 = vadd.f32 %v3260_v39, %v3048_v41  ;;  %5788 = vmatmul.msk.f32.gmra.mxu3 %vm368_vm1, %v4681_v38 }
 0x365   : > { %3894 = vst.msk [vmem:[%s6115_s22 + $0x190] sm:$0xff] %vm368_vm1, %v3862_v40  ;;  %5720 = vmatmul.msk.f32.gmra.mxu1 %vm368_vm1, %v4401_v15 }
 0x366   : > { %v3507_v43 = vpop.f32.mrf.mxu2  ;;  %5687 = vmatmul.msk.f32.gmra.mxu0 %vm368_vm1, %v4679_v17 }
 0x367   : > { %v3553_v44 = vadd.f32 %v3507_v43, %v3261_v42  ;;  %v4410_v43 = vld [vmem:[#allocation2 + $0xf1] sm:$0xff] }
 0x368   : > { %v3785_v45 = vpop.f32.mrf.mxu3 }
 0x369   : > { %v3831_v47 = vadd.f32 %v3785_v45, %v3553_v44  ;;  %v4688_v45 = vld [vmem:[#allocation2 + $0xf2] sm:$0xff] }
 0x36a   : > { %v3263_v49 = vpop.f32.mrf.mxu1 }
 0x36b   : > { %v3863_v50 = vadd.f32 %v6634_v8, %v3831_v47  ;;  %5755 = vmatmul.msk.f32.gmra.mxu2 %vm368_vm1, %v4404_v46  ;;  %v3051_v51 = vpop.f32.mrf.mxu0 }
 0x36c   : > { %v3264_v26 = vadd.f32 %v3263_v49, %v3051_v51  ;;  %5789 = vmatmul.msk.f32.gmra.mxu3 %vm368_vm1, %v4682_v48 }
 0x36d   : > { %3895 = vst.msk [vmem:[%s6115_s22 + $0x198] sm:$0xff] %vm368_vm1, %v3863_v50  ;;  %5721 = vmatmul.msk.f32.gmra.mxu1 %vm368_vm1, %v4402_v20 }
 0x36e   : > { %v3510_v53 = vpop.f32.mrf.mxu2  ;;  %5688 = vmatmul.msk.f32.gmra.mxu0 %vm368_vm1, %v4680_v29 }
 0x36f   : > { %v3554_v54 = vadd.f32 %v3510_v53, %v3264_v26  ;;  %v4411_v53 = vld [vmem:[#allocation2 + $0xf9] sm:$0xff] }
 0x370   : > { %v3788_v55 = vpop.f32.mrf.mxu3 }
 0x371   : > { %v3832_v57 = vadd.f32 %v3788_v55, %v3554_v54  ;;  %v4689_v55 = vld [vmem:[#allocation2 + $0xfa] sm:$0xff] }
 0x372   : > { %v3266_v59 = vpop.f32.mrf.mxu1 }
 0x373   : > { %v3864_v60 = vadd.f32 %v6634_v8, %v3832_v57  ;;  %5756 = vmatmul.msk.f32.gmra.mxu2 %vm368_vm1, %v4405_v56  ;;  %v3054_v61 = vpop.f32.mrf.mxu0 }
 0x374   : > { %v3267_v62 = vadd.f32 %v3266_v59, %v3054_v61  ;;  %5790 = vmatmul.msk.f32.gmra.mxu3 %vm368_vm1, %v4683_v58 }
 0x375   : > { %3896 = vst.msk [vmem:[%s6115_s22 + $0x1b0] sm:$0xff] %vm368_vm1, %v3864_v60  ;;  %5722 = vmatmul.msk.f32.gmra.mxu1 %vm368_vm1, %v4403_v37  ;;  %v6897_v37 = vld [vmem:[%s7113_s3] ss:$0 sm:$0xff] }
 0x376   : > { %v3513_v63 = vpop.f32.mrf.mxu2  ;;  %5689 = vmatmul.msk.f32.gmra.mxu0 %vm368_vm1, %v4681_v38 }
 0x377   : > { %v3555_v0 = vadd.f32 %v3513_v63, %v3267_v62  ;;  %v4412_v63 = vld [vmem:[#allocation2 + $0x109] sm:$0xff] }
 0x378   : > { %v3791_v1 = vpop.f32.mrf.mxu3 }
 0x379   : > { %v3833_v3 = vadd.f32 %v3791_v1, %v3555_v0  ;;  %v4690_v1 = vld [vmem:[#allocation2 + $0x10a] sm:$0xff] }
 0x37a   : > { %v3269_v5 = vpop.f32.mrf.mxu1 }
 0x37b   : > { %v3865_v52 = vadd.f32 %v6634_v8, %v3833_v3  ;;  %5757 = vmatmul.msk.f32.gmra.mxu2 %vm368_vm1, %v4406_v2  ;;  %v3057_v6 = vpop.f32.mrf.mxu0 }
 0x37c   : > { %v3270_v7 = vadd.f32 %v3269_v5, %v3057_v6  ;;  %5791 = vmatmul.msk.f32.gmra.mxu3 %vm368_vm1, %v4684_v4 }
 0x37d   : > { %3897 = vst.msk [vmem:[%s6115_s22 + $0x1b8] sm:$0xff] %vm368_vm1, %v3865_v52  ;;  %5723 = vmatmul.msk.f32.gmra.mxu1 %vm368_vm1, %v4404_v46 }
 0x37e   : > { %v3516_v9 = vpop.f32.mrf.mxu2  ;;  %5690 = vmatmul.msk.f32.gmra.mxu0 %vm368_vm1, %v4682_v48 }
 0x37f   : > { %v3556_v10 = vadd.f32 %v3516_v9, %v3270_v7  ;;  %v4413_v9 = vld [vmem:[#allocation2 + $0x111] sm:$0xff] }
 0x380   : > { %v3794_v11 = vpop.f32.mrf.mxu3 }
 0x381   : > { %v3834_v13 = vadd.f32 %v3794_v11, %v3556_v10  ;;  %v4691_v11 = vld [vmem:[#allocation2 + $0x112] sm:$0xff] }
 0x382   : > { %v3272_v15 = vpop.f32.mrf.mxu1 }
 0x383   : > { %v3866_v16 = vadd.f32 %v6634_v8, %v3834_v13  ;;  %5758 = vmatmul.msk.f32.gmra.mxu2 %vm368_vm1, %v4407_v12  ;;  %v3060_v17 = vpop.f32.mrf.mxu0 }
 0x384   : > { %v3273_v18 = vadd.f32 %v3272_v15, %v3060_v17  ;;  %5792 = vmatmul.msk.f32.gmra.mxu3 %vm368_vm1, %v4685_v14 }
 0x385   : > { %3898 = vst.msk [vmem:[%s6115_s22 + $0x1d0] sm:$0xff] %vm368_vm1, %v3866_v16  ;;  %5724 = vmatmul.msk.f32.gmra.mxu1 %vm368_vm1, %v4405_v56 }
 0x386   : > { %v3519_v19 = vpop.f32.mrf.mxu2  ;;  %5691 = vmatmul.msk.f32.gmra.mxu0 %vm368_vm1, %v4683_v58 }
 0x387   : > { %v3557_v21 = vadd.f32 %v3519_v19, %v3273_v18  ;;  %v4414_v19 = vld [vmem:[#allocation2 + $0x121] sm:$0xff] }
 0x388   : > { %v3797_v22 = vpop.f32.mrf.mxu3 }
 0x389   : > { %v3835_v24 = vadd.f32 %v3797_v22, %v3557_v21  ;;  %v4692_v22 = vld [vmem:[#allocation2 + $0x122] sm:$0xff] }
 0x38a   : > { %v3275_v20 = vpop.f32.mrf.mxu1 }
 0x38b   : > { %v3867_v28 = vadd.f32 %v6634_v8, %v3835_v24  ;;  %5759 = vmatmul.msk.f32.gmra.mxu2 %vm368_vm1, %v4408_v23  ;;  %v3063_v29 = vpop.f32.mrf.mxu0 }
 0x38c   : > { %v3276_v30 = vadd.f32 %v3275_v20, %v3063_v29  ;;  %5793 = vmatmul.msk.f32.gmra.mxu3 %vm368_vm1, %v4686_v27 }
 0x38d   : > { %3899 = vst.msk [vmem:[%s6115_s22 + $0x1d8] sm:$0xff] %vm368_vm1, %v3867_v28  ;;  %5725 = vmatmul.msk.f32.gmra.mxu1 %vm368_vm1, %v4406_v2 }
 0x38e   : > { %v3522_v31 = vpop.f32.mrf.mxu2  ;;  %5692 = vmatmul.msk.f32.gmra.mxu0 %vm368_vm1, %v4684_v4 }
 0x38f   : > { %v3558_v32 = vadd.f32 %v3522_v31, %v3276_v30  ;;  %v4415_v31 = vld [vmem:[#allocation2 + $0x129] sm:$0xff] }
 0x390   : > { %v3800_v33 = vpop.f32.mrf.mxu3 }
 0x391   : > { %v3836_v35 = vadd.f32 %v3800_v33, %v3558_v32  ;;  %v4693_v33 = vld [vmem:[#allocation2 + $0x12a] sm:$0xff] }
 0x392   : > { %v3278_v8 = vpop.f32.mrf.mxu1 }
 0x393   : > { %v3868_v25 = vadd.f32 %v6897_v37, %v3836_v35  ;;  %5760 = vmatmul.msk.f32.gmra.mxu2 %vm368_vm1, %v4409_v34  ;;  %v3066_v38 = vpop.f32.mrf.mxu0 }
 0x394   : > { %v3279_v39 = vadd.f32 %v3278_v8, %v3066_v38  ;;  %5794 = vmatmul.msk.f32.gmra.mxu3 %vm368_vm1, %v4687_v36 }
 0x395   : > { %3900 = vst.msk [vmem:[%s6115_s22 + $0x1f0] sm:$0xff] %vm368_vm1, %v3868_v25  ;;  %5726 = vmatmul.msk.f32.gmra.mxu1 %vm368_vm1, %v4407_v12 }
 0x396   : > { %v3525_v40 = vpop.f32.mrf.mxu2  ;;  %5693 = vmatmul.msk.f32.gmra.mxu0 %vm368_vm1, %v4685_v14 }
 0x397   : > { %v3559_v41 = vadd.f32 %v3525_v40, %v3279_v39  ;;  %v4416_v40 = vld [vmem:[#allocation2 + $0x139] sm:$0xff] }
 0x398   : > { %v3803_v42 = vpop.f32.mrf.mxu3 }
 0x399   : > { %v3837_v44 = vadd.f32 %v3803_v42, %v3559_v41  ;;  %v4694_v42 = vld [vmem:[#allocation2 + $0x13a] sm:$0xff] }
 0x39a   : > { %v4298_v46 = vpop.f32.mrf.mxu1 }
 0x39b   : > { %v3869_v47 = vadd.f32 %v6897_v37, %v3837_v44  ;;  %5761 = vmatmul.msk.f32.gmra.mxu2 %vm368_vm1, %v4410_v43  ;;  %v4086_v48 = vpop.f32.mrf.mxu0 }
 0x39c   : > { %v4299_v49 = vadd.f32 %v4298_v46, %v4086_v48  ;;  %5795 = vmatmul.msk.f32.gmra.mxu3 %vm368_vm1, %v4688_v45 }
 0x39d   : > { %3901 = vst.msk [vmem:[%s6115_s22 + $0x1f8] sm:$0xff] %vm368_vm1, %v3869_v47  ;;  %5727 = vmatmul.msk.f32.gmra.mxu1 %vm368_vm1, %v4408_v23 }
 0x39e   : > { %v4544_v50 = vpop.f32.mrf.mxu2  ;;  %5694 = vmatmul.msk.f32.gmra.mxu0 %vm368_vm1, %v4686_v27 }
 0x39f   : > { %v4640_v51 = vadd.f32 %v4544_v50, %v4299_v49  ;;  %v4417_v50 = vld [vmem:[#allocation2 + $0x141] sm:$0xff] }
 0x3a0   : > { %v4822_v26 = vpop.f32.mrf.mxu3 }
 0x3a1   : > { %v4918_v54 = vadd.f32 %v4822_v26, %v4640_v51  ;;  %v4695_v26 = vld [vmem:[#allocation2 + $0x142] sm:$0xff] }
 0x3a2   : > { %v4301_v56 = vpop.f32.mrf.mxu1 }
 0x3a3   : > { %v4950_v57 = vadd.f32 %v6897_v37, %v4918_v54  ;;  %5762 = vmatmul.msk.f32.gmra.mxu2 %vm368_vm1, %v4411_v53  ;;  %v4089_v58 = vpop.f32.mrf.mxu0 }
 0x3a4   : > { %v4302_v59 = vadd.f32 %v4301_v56, %v4089_v58  ;;  %5796 = vmatmul.msk.f32.gmra.mxu3 %vm368_vm1, %v4689_v55 }
 0x3a5   : > { %5014 = vrot.lane.b32.xlu2 %v4950_v57, %s5872_s10  ;;  %5728 = vmatmul.msk.f32.gmra.mxu1 %vm368_vm1, %v4409_v34 }
 0x3a6   : > { %v4547_v60 = vpop.f32.mrf.mxu2  ;;  %5695 = vmatmul.msk.f32.gmra.mxu0 %vm368_vm1, %v4687_v36 }
 0x3a7   : > { %v4641_v61 = vadd.f32 %v4547_v60, %v4302_v59  ;;  %v4418_v60 = vld [vmem:[#allocation2 + $0x151] sm:$0xff] }
 0x3a8   : > { %v4825_v62 = vpop.f32.mrf.mxu3 }
 0x3a9   : > { %v4919_v0 = vadd.f32 %v4825_v62, %v4641_v61  ;;  %v4696_v62 = vld [vmem:[#allocation2 + $0x152] sm:$0xff] }
 0x3aa   : > { %v4304_v2 = vpop.f32.mrf.mxu1 }
 0x3ab   : > { %v4951_v3 = vadd.f32 %v6897_v37, %v4919_v0  ;;  %5763 = vmatmul.msk.f32.gmra.mxu2 %vm368_vm1, %v4412_v63  ;;  %v4092_v4 = vpop.f32.mrf.mxu0 }
 0x3ac   : > { %v4305_v5 = vadd.f32 %v4304_v2, %v4092_v4  ;;  %5797 = vmatmul.msk.f32.gmra.mxu3 %vm368_vm1, %v4690_v1 }
 0x3ad   : > { %5016 = vrot.lane.b32.xlu0 %v4951_v3, %s5872_s10  ;;  %5729 = vmatmul.msk.f32.gmra.mxu1 %vm368_vm1, %v4410_v43 }
 0x3ae   : > { %v4550_v52 = vpop.f32.mrf.mxu2  ;;  %5696 = vmatmul.msk.f32.gmra.mxu0 %vm368_vm1, %v4688_v45 }
 0x3af   : > { %v4642_v6 = vadd.f32 %v4550_v52, %v4305_v5  ;;  %v4419_v52 = vld [vmem:[#allocation2 + $0x159] sm:$0xff] }
 0x3b0   : > { %v4828_v7 = vpop.f32.mrf.mxu3 }
 0x3b1   : > { %v4920_v10 = vadd.f32 %v4828_v7, %v4642_v6  ;;  %v4697_v7 = vld [vmem:[#allocation2 + $0x15a] sm:$0xff] }
 0x3b2   : > { %v4307_v12 = vpop.f32.mrf.mxu1 }
 0x3b3   : > { %v4952_v13 = vadd.f32 %v6897_v37, %v4920_v10  ;;  %5764 = vmatmul.msk.f32.gmra.mxu2 %vm368_vm1, %v4413_v9  ;;  %v4095_v14 = vpop.f32.mrf.mxu0 }
 0x3b4   : > { %v4308_v15 = vadd.f32 %v4307_v12, %v4095_v14  ;;  %5798 = vmatmul.msk.f32.gmra.mxu3 %vm368_vm1, %v4691_v11 }
 0x3b5   : > { %5018 = vrot.lane.b32.xlu1 %v4952_v13, %s5872_s10  ;;  %5730 = vmatmul.msk.f32.gmra.mxu1 %vm368_vm1, %v4411_v53 }
 0x3b6   : > { %v4553_v16 = vpop.f32.mrf.mxu2  ;;  %5697 = vmatmul.msk.f32.gmra.mxu0 %vm368_vm1, %v4689_v55 }
 0x3b7   : > { %v4643_v17 = vadd.f32 %v4553_v16, %v4308_v15  ;;  %v4420_v16 = vld [vmem:[#allocation2 + $0x169] sm:$0xff] }
 0x3b8   : > { %v4831_v18 = vpop.f32.mrf.mxu3 }
 0x3b9   : > { %v4921_v21 = vadd.f32 %v4831_v18, %v4643_v17  ;;  %v4698_v18 = vld [vmem:[#allocation2 + $0x16a] sm:$0xff] }
 0x3ba   : > { %v4310_v23 = vpop.f32.mrf.mxu1 }
 0x3bb   : > { %v4953_v24 = vadd.f32 %v6897_v37, %v4921_v21  ;;  %5765 = vmatmul.msk.f32.gmra.mxu2 %vm368_vm1, %v4414_v19  ;;  %v4098_v27 = vpop.f32.mrf.mxu0 }
 0x3bc   : > { %v4311_v20 = vadd.f32 %v4310_v23, %v4098_v27  ;;  %5799 = vmatmul.msk.f32.gmra.mxu3 %vm368_vm1, %v4692_v22 }
 0x3bd   : > { %5020 = vrot.lane.b32.xlu2 %v4953_v24, %s5872_s10  ;;  %5731 = vmatmul.msk.f32.gmra.mxu1 %vm368_vm1, %v4412_v63 }
 0x3be   : > { %v4556_v28 = vpop.f32.mrf.mxu2  ;;  %5698 = vmatmul.msk.f32.gmra.mxu0 %vm368_vm1, %v4690_v1 }
 0x3bf   : > { %v4644_v29 = vadd.f32 %v4556_v28, %v4311_v20  ;;  %v4421_v28 = vld [vmem:[#allocation2 + $0x171] sm:$0xff] }
 0x3c0   : > { %v4834_v30 = vpop.f32.mrf.mxu3 }
 0x3c1   : > { %v4922_v32 = vadd.f32 %v4834_v30, %v4644_v29  ;;  %v4699_v30 = vld [vmem:[#allocation2 + $0x172] sm:$0xff] }
 0x3c2   : > { %v4313_v34 = vpop.f32.mrf.mxu1 }
 0x3c3   : > { %v4954_v35 = vadd.f32 %v6897_v37, %v4922_v32  ;;  %5766 = vmatmul.msk.f32.gmra.mxu2 %vm368_vm1, %v4415_v31  ;;  %v4101_v36 = vpop.f32.mrf.mxu0 }
 0x3c4   : > { %v4314_v8 = vadd.f32 %v4313_v34, %v4101_v36  ;;  %5800 = vmatmul.msk.f32.gmra.mxu3 %vm368_vm1, %v4693_v33 }
 0x3c5   : > { %5022 = vrot.lane.b32.xlu0 %v4954_v35, %s5872_s10  ;;  %5732 = vmatmul.msk.f32.gmra.mxu1 %vm368_vm1, %v4413_v9 }
 0x3c6   : > { %v4559_v25 = vpop.f32.mrf.mxu2  ;;  %5699 = vmatmul.msk.f32.gmra.mxu0 %vm368_vm1, %v4691_v11 }
 0x3c7   : > { %v4645_v38 = vadd.f32 %v4559_v25, %v4314_v8  ;;  %v4422_v25 = vld [vmem:[#allocation2 + $0x181] sm:$0xff] }
 0x3c8   : > { %v4837_v39 = vpop.f32.mrf.mxu3 }
 0x3c9   : > { %v4923_v41 = vadd.f32 %v4837_v39, %v4645_v38  ;;  %v4700_v39 = vld [vmem:[#allocation2 + $0x182] sm:$0xff] }
 0x3ca   : > { %v4316_v43 = vpop.f32.mrf.mxu1 }
 0x3cb   : > { %v4955_v44 = vadd.f32 %v6897_v37, %v4923_v41  ;;  %5767 = vmatmul.msk.f32.gmra.mxu2 %vm368_vm1, %v4416_v40  ;;  %v4104_v45 = vpop.f32.mrf.mxu0 }
 0x3cc   : > { %v4317_v46 = vadd.f32 %v4316_v43, %v4104_v45  ;;  %5801 = vmatmul.msk.f32.gmra.mxu3 %vm368_vm1, %v4694_v42 }
 0x3cd   : > { %5024 = vrot.lane.b32.xlu1 %v4955_v44, %s5872_s10  ;;  %5733 = vmatmul.msk.f32.gmra.mxu1 %vm368_vm1, %v4414_v19 }
 0x3ce   : > { %v4562_v47 = vpop.f32.mrf.mxu2  ;;  %5700 = vmatmul.msk.f32.gmra.mxu0 %vm368_vm1, %v4692_v22 }
 0x3cf   : > { %v4646_v48 = vadd.f32 %v4562_v47, %v4317_v46 }
 0x3d0   : > { %v4840_v49 = vpop.f32.mrf.mxu3 }
 0x3d1   : > { %v4924_v51 = vadd.f32 %v4840_v49, %v4646_v48  ;;  %v4423_v48 = vld [vmem:[#allocation2 + $0x189] sm:$0xff] }
 0x3d2   : > { %v4319_v53 = vpop.f32.mrf.mxu1 }
 0x3d3   : > { %v4956_v54 = vadd.f32 %v6897_v37, %v4924_v51  ;;  %5768 = vmatmul.msk.f32.gmra.mxu2 %vm368_vm1, %v4417_v50  ;;  %v4107_v55 = vpop.f32.mrf.mxu0 }
 0x3d4   : > { %v4320_v56 = vadd.f32 %v4319_v53, %v4107_v55  ;;  %5802 = vmatmul.msk.f32.gmra.mxu3 %vm368_vm1, %v4695_v26 }
 0x3d5   : > { %5026 = vrot.lane.b32.xlu2 %v4956_v54, %s5872_s10  ;;  %5734 = vmatmul.msk.f32.gmra.mxu1 %vm368_vm1, %v4415_v31 }
 0x3d6   : > { %v4565_v57 = vpop.f32.mrf.mxu2  ;;  %5701 = vmatmul.msk.f32.gmra.mxu0 %vm368_vm1, %v4693_v33 }
 0x3d7   : > { %v4647_v58 = vadd.f32 %v4565_v57, %v4320_v56 }
 0x3d8   : > { %v4843_v59 = vpop.f32.mrf.mxu3 }
 0x3d9   : > { %v4925_v61 = vadd.f32 %v4843_v59, %v4647_v58  ;;  %v4424_v58 = vld [vmem:[#allocation2 + $0x199] sm:$0xff] }
 0x3da   : > { %v4322_v63 = vpop.f32.mrf.mxu1 }
 0x3db   : > { %v4957_v0 = vadd.f32 %v6897_v37, %v4925_v61  ;;  %5769 = vmatmul.msk.f32.gmra.mxu2 %vm368_vm1, %v4418_v60  ;;  %v4110_v1 = vpop.f32.mrf.mxu0 }
 0x3dc   : > { %v4323_v2 = vadd.f32 %v4322_v63, %v4110_v1  ;;  %5803 = vmatmul.msk.f32.gmra.mxu3 %vm368_vm1, %v4696_v62 }
 0x3dd   : > { %5028 = vrot.lane.b32.xlu0 %v4957_v0, %s5872_s10  ;;  %5735 = vmatmul.msk.f32.gmra.mxu1 %vm368_vm1, %v4416_v40 }
 0x3de   : > { %v4568_v3 = vpop.f32.mrf.mxu2  ;;  %5702 = vmatmul.msk.f32.gmra.mxu0 %vm368_vm1, %v4694_v42 }
 0x3df   : > { %v4648_v4 = vadd.f32 %v4568_v3, %v4323_v2 }
 0x3e0   : > { %v4846_v5 = vpop.f32.mrf.mxu3 }
 0x3e1   : > { %v4926_v6 = vadd.f32 %v4846_v5, %v4648_v4  ;;  %v4425_v4 = vld [vmem:[#allocation2 + $0x1a1] sm:$0xff] }
 0x3e2   : > { %v4325_v9 = vpop.f32.mrf.mxu1 }
 0x3e3   : > { %v4958_v10 = vadd.f32 %v6897_v37, %v4926_v6  ;;  %5770 = vmatmul.msk.f32.gmra.mxu2 %vm368_vm1, %v4419_v52  ;;  %v4113_v11 = vpop.f32.mrf.mxu0 }
 0x3e4   : > { %v4326_v12 = vadd.f32 %v4325_v9, %v4113_v11  ;;  %5804 = vmatmul.msk.f32.gmra.mxu3 %vm368_vm1, %v4697_v7 }
 0x3e5   : > { %5030 = vrot.lane.b32.xlu1 %v4958_v10, %s5872_s10  ;;  %5736 = vmatmul.msk.f32.gmra.mxu1 %vm368_vm1, %v4417_v50  ;;  %v4701_v50 = vld [vmem:[#allocation2 + $0x18a] sm:$0xff] }
 0x3e6   : > { %v4571_v13 = vpop.f32.mrf.mxu2  ;;  %5703 = vmatmul.msk.f32.gmra.mxu0 %vm368_vm1, %v4695_v26 }
 0x3e7   : > { %v4649_v14 = vadd.f32 %v4571_v13, %v4326_v12 }
 0x3e8   : > { %v4849_v15 = vpop.f32.mrf.mxu3 }
 0x3e9   : > { %v4927_v17 = vadd.f32 %v4849_v15, %v4649_v14 }
 0x3ea   : > { %v4328_v19 = vpop.f32.mrf.mxu1 }
 0x3eb   : > { %v4959_v21 = vadd.f32 %v6897_v37, %v4927_v17  ;;  %5771 = vmatmul.msk.f32.gmra.mxu2 %vm368_vm1, %v4420_v16  ;;  %v4116_v22 = vpop.f32.mrf.mxu0 }
 0x3ec   : > { %v4329_v23 = vadd.f32 %v4328_v19, %v4116_v22  ;;  %5805 = vmatmul.msk.f32.gmra.mxu3 %vm368_vm1, %v4698_v18 }
 0x3ed   : > { %5032 = vrot.lane.b32.xlu2 %v4959_v21, %s5872_s10  ;;  %5737 = vmatmul.msk.f32.gmra.mxu1 %vm368_vm1, %v4418_v60  ;;  %v4702_v60 = vld [vmem:[#allocation2 + $0x19a] sm:$0xff] }
 0x3ee   : > { %v4574_v24 = vpop.f32.mrf.mxu2  ;;  %5704 = vmatmul.msk.f32.gmra.mxu0 %vm368_vm1, %v4696_v62 }
 0x3ef   : > { %v4650_v27 = vadd.f32 %v4574_v24, %v4329_v23 }
 0x3f0   : > { %v4852_v20 = vpop.f32.mrf.mxu3 }
 0x3f1   : > { %v4928_v29 = vadd.f32 %v4852_v20, %v4650_v27 }
 0x3f2   : > { %v4331_v31 = vpop.f32.mrf.mxu1 }
 0x3f3   : > { %v4960_v32 = vadd.f32 %v6897_v37, %v4928_v29  ;;  %5772 = vmatmul.msk.f32.gmra.mxu2 %vm368_vm1, %v4421_v28  ;;  %v4119_v33 = vpop.f32.mrf.mxu0 }
 0x3f4   : > { %v4332_v34 = vadd.f32 %v4331_v31, %v4119_v33  ;;  %5806 = vmatmul.msk.f32.gmra.mxu3 %vm368_vm1, %v4699_v30 }
 0x3f5   : > { %5034 = vrot.lane.b32.xlu0 %v4960_v32, %s5872_s10  ;;  %5738 = vmatmul.msk.f32.gmra.mxu1 %vm368_vm1, %v4419_v52  ;;  %v4703_v52 = vld [vmem:[#allocation2 + $0x1a2] sm:$0xff] }
 0x3f6   : > { %v4577_v35 = vpop.f32.mrf.mxu2  ;;  %5705 = vmatmul.msk.f32.gmra.mxu0 %vm368_vm1, %v4697_v7 }
 0x3f7   : > { %v4651_v36 = vadd.f32 %v4577_v35, %v4332_v34 }
 0x3f8   : > { %v4855_v8 = vpop.f32.mrf.mxu3 }
 0x3f9   : > { %v4929_v38 = vadd.f32 %v4855_v8, %v4651_v36 }
 0x3fa   : > { %v4334_v40 = vpop.f32.mrf.mxu1 }
 0x3fb   : > { %v4961_v41 = vadd.f32 %v6897_v37, %v4929_v38  ;;  %5773 = vmatmul.msk.f32.gmra.mxu2 %vm368_vm1, %v4422_v25  ;;  %v4122_v42 = vpop.f32.mrf.mxu0 }
 0x3fc   : > { %v4335_v43 = vadd.f32 %v4334_v40, %v4122_v42  ;;  %5807 = vmatmul.msk.f32.gmra.mxu3 %vm368_vm1, %v4700_v39 }
 0x3fd   : > { %5036 = vrot.lane.b32.xlu1 %v4961_v41, %s5872_s10  ;;  %5739 = vmatmul.msk.f32.gmra.mxu1 %vm368_vm1, %v4420_v16 }
 0x3fe   : > { %v4580_v44 = vpop.f32.mrf.mxu2  ;;  %5706 = vmatmul.msk.f32.gmra.mxu0 %vm368_vm1, %v4698_v18 }
 0x3ff   : > { %v4652_v45 = vadd.f32 %v4580_v44, %v4335_v43  ;;  %v5015_v46 = vpop.permute.xlu2 %5014 }
 0x400   : > { %5110 = vst.msk [vmem:[%s6115_s22 + $0x10] sm:$0xff] %vm2756_vm3, %v5015_v46  ;;  %v4858_v47 = vpop.f32.mrf.mxu3 }
 0x401   : > { %v4930_v49 = vadd.f32 %v4858_v47, %v4652_v45 }
 0x402   : > { %v4337_v51 = vpop.f32.mrf.mxu1 }
 0x403   : > { %v4962_v26 = vadd.f32 %v6897_v37, %v4930_v49  ;;  %5774 = vmatmul.msk.f32.gmra.mxu2 %vm368_vm1, %v4423_v48  ;;  %v4125_v53 = vpop.f32.mrf.mxu0 }
 0x404   : > { %v4338_v54 = vadd.f32 %v4337_v51, %v4125_v53  ;;  %5808 = vmatmul.msk.f32.gmra.mxu3 %vm368_vm1, %v4701_v50 }
 0x405   : > { %5038 = vrot.lane.b32.xlu2 %v4962_v26, %s5872_s10  ;;  %5740 = vmatmul.msk.f32.gmra.mxu1 %vm368_vm1, %v4421_v28 }
 0x406   : > { %v4583_v55 = vpop.f32.mrf.mxu2  ;;  %5707 = vmatmul.msk.f32.gmra.mxu0 %vm368_vm1, %v4699_v30 }
 0x407   : > { %v4653_v56 = vadd.f32 %v4583_v55, %v4338_v54 }
 0x408   : > { %v4861_v57 = vpop.f32.mrf.mxu3 }
 0x409   : > { %v4931_v59 = vadd.f32 %v4861_v57, %v4653_v56 }
 0x40a   : > { %v4340_v61 = vpop.f32.mrf.mxu1 }
 0x40b   : > { %v4963_v62 = vadd.f32 %v6897_v37, %v4931_v59  ;;  %5775 = vmatmul.msk.f32.gmra.mxu2 %vm368_vm1, %v4424_v58  ;;  %v4128_v63 = vpop.f32.mrf.mxu0 }
 0x40c   : > { %v4341_v0 = vadd.f32 %v4340_v61, %v4128_v63  ;;  %5809 = vmatmul.msk.f32.gmra.mxu3 %vm368_vm1, %v4702_v60 }
 0x40d   : > { %5040 = vrot.lane.b32.xlu0 %v4963_v62, %s5872_s10  ;;  %5741 = vmatmul.msk.f32.gmra.mxu1 %vm368_vm1, %v4422_v25 }
 0x40e   : > { %v4586_v1 = vpop.f32.mrf.mxu2  ;;  %5708 = vmatmul.msk.f32.gmra.mxu0 %vm368_vm1, %v4700_v39 }
 0x40f   : > { %v4654_v2 = vadd.f32 %v4586_v1, %v4341_v0 }
 0x410   : > { %v4864_v3 = vpop.f32.mrf.mxu3 }
 0x411   : > { %v4932_v5 = vadd.f32 %v4864_v3, %v4654_v2 }
 0x412   : > { %v4343_v6 = vpop.f32.mrf.mxu1 }
 0x413   : > { %v4964_v7 = vadd.f32 %v6897_v37, %v4932_v5  ;;  %5776 = vmatmul.msk.f32.gmra.mxu2 %vm368_vm1, %v4425_v4  ;;  %v4131_v9 = vpop.f32.mrf.mxu0 }
 0x414   : > { %v4344_v10 = vadd.f32 %v4343_v6, %v4131_v9  ;;  %5810 = vmatmul.msk.f32.gmra.mxu3 %vm368_vm1, %v4703_v52 }
 0x415   : > { %5042 = vrot.lane.b32.xlu1 %v4964_v7, %s5872_s10  ;;  %5742 = vmatmul.msk.f32.gmra.mxu1 %vm368_vm1, %v4423_v48 }
 0x416   : > { %v4589_v11 = vpop.f32.mrf.mxu2  ;;  %5709 = vmatmul.msk.f32.gmra.mxu0 %vm368_vm1, %v4701_v50 }
 0x417   : > { %v4655_v12 = vadd.f32 %v4589_v11, %v4344_v10  ;;  %v5021_v13 = vpop.permute.xlu2 %5020 }
 0x418   : > { %5113 = vst.msk [vmem:[%s6115_s22 + $0x38] sm:$0xff] %vm2756_vm3, %v5021_v13  ;;  %v4867_v14 = vpop.f32.mrf.mxu3 }
 0x419   : > { %v4933_v15 = vadd.f32 %v4867_v14, %v4655_v12 }
 0x41a   : > { %v4346_v16 = vpop.f32.mrf.mxu1 }
 0x41b   : > { %v4965_v17 = vadd.f32 %v6897_v37, %v4933_v15  ;;  %v4134_v18 = vpop.f32.mrf.mxu0 }
 0x41c   : > { %v4347_v19 = vadd.f32 %v4346_v16, %v4134_v18 }
 0x41d   : > { %5044 = vrot.lane.b32.xlu2 %v4965_v17, %s5872_s10 }
 0x41e   : > { %v4592_v21 = vpop.f32.mrf.mxu2 }
 0x41f   : > { %v4656_v22 = vadd.f32 %v4592_v21, %v4347_v19  ;;  %v5017_v23 = vpop.permute.xlu0 %5016 }
 0x420   : > { %5111 = vst.msk [vmem:[%s6115_s22 + $0x18] sm:$0xff] %vm2756_vm3, %v5017_v23  ;;  %v4870_v24 = vpop.f32.mrf.mxu3 }
 0x421   : > { %v4934_v27 = vadd.f32 %v4870_v24, %v4656_v22 }
 0x422   : > { %v4349_v20 = vpop.f32.mrf.mxu1 }
 0x423   : > { %v4966_v28 = vadd.f32 %v6897_v37, %v4934_v27  ;;  %v4137_v29 = vpop.f32.mrf.mxu0 }
 0x424   : > { %v4350_v30 = vadd.f32 %v4349_v20, %v4137_v29 }
 0x425   : > { %5046 = vrot.lane.b32.xlu0 %v4966_v28, %s5872_s10 }
 0x426   : > { %v4595_v31 = vpop.f32.mrf.mxu2 }
 0x427   : > { %v4657_v32 = vadd.f32 %v4595_v31, %v4350_v30  ;;  %v5019_v33 = vpop.permute.xlu1 %5018 }
 0x428   : > { %5112 = vst.msk [vmem:[%s6115_s22 + $0x30] sm:$0xff] %vm2756_vm3, %v5019_v33  ;;  %v4873_v34 = vpop.f32.mrf.mxu3 }
 0x429   : > { %v4935_v35 = vadd.f32 %v4873_v34, %v4657_v32 }
 0x42a   : > { %v4352_v36 = vpop.f32.mrf.mxu1 }
 0x42b   : > { %v4967_v8 = vadd.f32 %v6897_v37, %v4935_v35  ;;  %v4140_v25 = vpop.f32.mrf.mxu0 }
 0x42c   : > { %v4353_v38 = vadd.f32 %v4352_v36, %v4140_v25 }
 0x42d   : > { %5048 = vrot.lane.b32.xlu1 %v4967_v8, %s5872_s10 }
 0x42e   : > { %v4598_v39 = vpop.f32.mrf.mxu2 }
 0x42f   : > { %v4658_v40 = vadd.f32 %v4598_v39, %v4353_v38  ;;  %v5027_v41 = vpop.permute.xlu2 %5026 }
 0x430   : > { %5116 = vst.msk [vmem:[%s6115_s22 + $0x70] sm:$0xff] %vm2756_vm3, %v5027_v41  ;;  %v4876_v42 = vpop.f32.mrf.mxu3 }
 0x431   : > { %v4936_v43 = vadd.f32 %v4876_v42, %v4658_v40 }
 0x432   : > { %v4355_v44 = vpop.f32.mrf.mxu1 }
 0x433   : > { %v4968_v45 = vadd.f32 %v6897_v37, %v4936_v43  ;;  %v4143_v46 = vpop.f32.mrf.mxu0 }
 0x434   : > { %v4356_v47 = vadd.f32 %v4355_v44, %v4143_v46 }
 0x435   : > { %5050 = vrot.lane.b32.xlu2 %v4968_v45, %s5872_s10 }
 0x436   : > { %v4601_v48 = vpop.f32.mrf.mxu2 }
 0x437   : > { %v4659_v49 = vadd.f32 %v4601_v48, %v4356_v47  ;;  %v5023_v50 = vpop.permute.xlu0 %5022 }
 0x438   : > { %5114 = vst.msk [vmem:[%s6115_s22 + $0x50] sm:$0xff] %vm2756_vm3, %v5023_v50  ;;  %v4879_v51 = vpop.f32.mrf.mxu3 }
 0x439   : > { %v4937_v26 = vadd.f32 %v4879_v51, %v4659_v49 }
 0x43a   : > { %v4358_v53 = vpop.f32.mrf.mxu1 }
 0x43b   : > { %v4969_v54 = vadd.f32 %v6897_v37, %v4937_v26  ;;  %v4146_v55 = vpop.f32.mrf.mxu0 }
 0x43c   : > { %v4359_v56 = vadd.f32 %v4358_v53, %v4146_v55 }
 0x43d   : > { %5052 = vrot.lane.b32.xlu0 %v4969_v54, %s5872_s10 }
 0x43e   : > { %v4604_v57 = vpop.f32.mrf.mxu2 }
 0x43f   : > { %v4660_v58 = vadd.f32 %v4604_v57, %v4359_v56  ;;  %v5025_v59 = vpop.permute.xlu1 %5024 }
 0x440   : > { %5115 = vst.msk [vmem:[%s6115_s22 + $0x58] sm:$0xff] %vm2756_vm3, %v5025_v59  ;;  %v4882_v60 = vpop.f32.mrf.mxu3 }
 0x441   : > { %v4938_v61 = vadd.f32 %v4882_v60, %v4660_v58 }
 0x442   : > { %v4361_v62 = vpop.f32.mrf.mxu1 }
 0x443   : > { %v4970_v63 = vadd.f32 %v6897_v37, %v4938_v61  ;;  %v4149_v0 = vpop.f32.mrf.mxu0 }
 0x444   : > { %v4362_v1 = vadd.f32 %v4361_v62, %v4149_v0 }
 0x445   : > { %5054 = vrot.lane.b32.xlu1 %v4970_v63, %s5872_s10 }
 0x446   : > { %v4607_v2 = vpop.f32.mrf.mxu2 }
 0x447   : > { %v4661_v3 = vadd.f32 %v4607_v2, %v4362_v1  ;;  %v5033_v4 = vpop.permute.xlu2 %5032 }
 0x448   : > { %5119 = vst.msk [vmem:[%s6115_s22 + $0x98] sm:$0xff] %vm2756_vm3, %v5033_v4  ;;  %v4885_v5 = vpop.f32.mrf.mxu3 }
 0x449   : > { %v4939_v52 = vadd.f32 %v4885_v5, %v4661_v3 }
 0x44a   : > { %v4364_v6 = vpop.f32.mrf.mxu1 }
 0x44b   : > { %v4971_v7 = vadd.f32 %v6897_v37, %v4939_v52  ;;  %v4152_v9 = vpop.f32.mrf.mxu0 }
 0x44c   : > { %v4365_v10 = vadd.f32 %v4364_v6, %v4152_v9 }
 0x44d   : > { %5056 = vrot.lane.b32.xlu2 %v4971_v7, %s5872_s10 }
 0x44e   : > { %v4610_v11 = vpop.f32.mrf.mxu2 }
 0x44f   : > { %v4662_v12 = vadd.f32 %v4610_v11, %v4365_v10  ;;  %v5029_v13 = vpop.permute.xlu0 %5028 }
 0x450   : > { %5117 = vst.msk [vmem:[%s6115_s22 + $0x78] sm:$0xff] %vm2756_vm3, %v5029_v13  ;;  %v4888_v14 = vpop.f32.mrf.mxu3 }
 0x451   : > { %v4940_v15 = vadd.f32 %v4888_v14, %v4662_v12 }
 0x452   : > { %v4367_v16 = vpop.f32.mrf.mxu1 }
 0x453   : > { %v4972_v17 = vadd.f32 %v6897_v37, %v4940_v15  ;;  %v4155_v18 = vpop.f32.mrf.mxu0 }
 0x454   : > { %v4368_v19 = vadd.f32 %v4367_v16, %v4155_v18 }
 0x455   : > { %5058 = vrot.lane.b32.xlu0 %v4972_v17, %s5872_s10 }
 0x456   : > { %v4613_v21 = vpop.f32.mrf.mxu2 }
 0x457   : > { %v4663_v22 = vadd.f32 %v4613_v21, %v4368_v19  ;;  %v5031_v23 = vpop.permute.xlu1 %5030 }
 0x458   : > { %5118 = vst.msk [vmem:[%s6115_s22 + $0x90] sm:$0xff] %vm2756_vm3, %v5031_v23  ;;  %v4891_v24 = vpop.f32.mrf.mxu3 }
 0x459   : > { %v4941_v27 = vadd.f32 %v4891_v24, %v4663_v22 }
 0x45a   : > { %v4370_v20 = vpop.f32.mrf.mxu1 }
 0x45b   : > { %v4973_v28 = vadd.f32 %v6897_v37, %v4941_v27  ;;  %v4158_v29 = vpop.f32.mrf.mxu0 }
 0x45c   : > { %v4371_v30 = vadd.f32 %v4370_v20, %v4158_v29 }
 0x45d   : > { %5060 = vrot.lane.b32.xlu1 %v4973_v28, %s5872_s10 }
 0x45e   : > { %v4616_v31 = vpop.f32.mrf.mxu2 }
 0x45f   : > { %v4664_v32 = vadd.f32 %v4616_v31, %v4371_v30  ;;  %v5039_v33 = vpop.permute.xlu2 %5038 }
 0x460   : > { %5122 = vst.msk [vmem:[%s6115_s22 + $0xd0] sm:$0xff] %vm2756_vm3, %v5039_v33  ;;  %v4894_v34 = vpop.f32.mrf.mxu3 }
 0x461   : > { %v4942_v35 = vadd.f32 %v4894_v34, %v4664_v32 }
 0x462   : > { %v4373_v36 = vpop.f32.mrf.mxu1 }
 0x463   : > { %v4974_v8 = vadd.f32 %v6897_v37, %v4942_v35  ;;  %v4161_v25 = vpop.f32.mrf.mxu0 }
 0x464   : > { %v4374_v38 = vadd.f32 %v4373_v36, %v4161_v25 }
 0x465   : > { %5062 = vrot.lane.b32.xlu2 %v4974_v8, %s5872_s10 }
 0x466   : > { %v4619_v39 = vpop.f32.mrf.mxu2 }
 0x467   : > { %v4665_v40 = vadd.f32 %v4619_v39, %v4374_v38  ;;  %v5035_v41 = vpop.permute.xlu0 %5034 }
 0x468   : > { %5120 = vst.msk [vmem:[%s6115_s22 + $0xb0] sm:$0xff] %vm2756_vm3, %v5035_v41  ;;  %v4897_v42 = vpop.f32.mrf.mxu3 }
 0x469   : > { %v4943_v43 = vadd.f32 %v4897_v42, %v4665_v40 }
 0x46a   : > { %v4376_v44 = vpop.f32.mrf.mxu1 }
 0x46b   : > { %v4975_v45 = vadd.f32 %v6897_v37, %v4943_v43  ;;  %v4164_v46 = vpop.f32.mrf.mxu0 }
 0x46c   : > { %v4377_v47 = vadd.f32 %v4376_v44, %v4164_v46 }
 0x46d   : > { %5064 = vrot.lane.b32.xlu0 %v4975_v45, %s5872_s10 }
 0x46e   : > { %v4622_v48 = vpop.f32.mrf.mxu2 }
 0x46f   : > { %v4666_v49 = vadd.f32 %v4622_v48, %v4377_v47  ;;  %v5037_v50 = vpop.permute.xlu1 %5036 }
 0x470   : > { %5121 = vst.msk [vmem:[%s6115_s22 + $0xb8] sm:$0xff] %vm2756_vm3, %v5037_v50  ;;  %v4900_v51 = vpop.f32.mrf.mxu3 }
 0x471   : > { %v4944_v26 = vadd.f32 %v4900_v51, %v4666_v49 }
 0x472   : > { %v4379_v53 = vpop.f32.mrf.mxu1 }
 0x473   : > { %v4976_v54 = vadd.f32 %v6897_v37, %v4944_v26  ;;  %v4167_v55 = vpop.f32.mrf.mxu0 }
 0x474   : > { %v4380_v56 = vadd.f32 %v4379_v53, %v4167_v55 }
 0x475   : > { %5066 = vrot.lane.b32.xlu1 %v4976_v54, %s5872_s10 }
 0x476   : > { %v4625_v57 = vpop.f32.mrf.mxu2 }
 0x477   : > { %v4667_v58 = vadd.f32 %v4625_v57, %v4380_v56  ;;  %v5045_v59 = vpop.permute.xlu2 %5044 }
 0x478   : > { %5125 = vst.msk [vmem:[%s6115_s22 + $0xf8] sm:$0xff] %vm2756_vm3, %v5045_v59  ;;  %v4903_v60 = vpop.f32.mrf.mxu3 }
 0x479   : > { %v4945_v61 = vadd.f32 %v4903_v60, %v4667_v58 }
 0x47a   : > { %v4382_v62 = vpop.f32.mrf.mxu1 }
 0x47b   : > { %v4977_v63 = vadd.f32 %v6897_v37, %v4945_v61  ;;  %v4170_v0 = vpop.f32.mrf.mxu0 }
 0x47c   : > { %v4383_v1 = vadd.f32 %v4382_v62, %v4170_v0 }
 0x47d   : > { %5068 = vrot.lane.b32.xlu2 %v4977_v63, %s5872_s10 }
 0x47e   : > { %v4628_v2 = vpop.f32.mrf.mxu2 }
 0x47f   : > { %v4668_v3 = vadd.f32 %v4628_v2, %v4383_v1  ;;  %v5041_v4 = vpop.permute.xlu0 %5040 }
 0x480   : > { %5123 = vst.msk [vmem:[%s6115_s22 + $0xd8] sm:$0xff] %vm2756_vm3, %v5041_v4  ;;  %v4906_v5 = vpop.f32.mrf.mxu3 }
 0x481   : > { %v4946_v52 = vadd.f32 %v4906_v5, %v4668_v3 }
 0x482   : > { %v4385_v6 = vpop.f32.mrf.mxu1 }
 0x483   : > { %v4978_v7 = vadd.f32 %v6897_v37, %v4946_v52  ;;  %v4173_v9 = vpop.f32.mrf.mxu0 }
 0x484   : > { %v4386_v10 = vadd.f32 %v4385_v6, %v4173_v9 }
 0x485   : > { %5070 = vrot.lane.b32.xlu0 %v4978_v7, %s5872_s10 }
 0x486   : > { %v4631_v11 = vpop.f32.mrf.mxu2 }
 0x487   : > { %v4669_v12 = vadd.f32 %v4631_v11, %v4386_v10  ;;  %v5043_v13 = vpop.permute.xlu1 %5042 }
 0x488   : > { %5124 = vst.msk [vmem:[%s6115_s22 + $0xf0] sm:$0xff] %vm2756_vm3, %v5043_v13  ;;  %v4909_v14 = vpop.f32.mrf.mxu3 }
 0x489   : > { %v4947_v15 = vadd.f32 %v4909_v14, %v4669_v12 }
 0x48a   : > { %v4388_v16 = vpop.f32.mrf.mxu1 }
 0x48b   : > { %v4979_v17 = vadd.f32 %v6897_v37, %v4947_v15  ;;  %v4176_v18 = vpop.f32.mrf.mxu0 }
 0x48c   : > { %v4389_v19 = vadd.f32 %v4388_v16, %v4176_v18 }
 0x48d   : > { %5072 = vrot.lane.b32.xlu1 %v4979_v17, %s5872_s10 }
 0x48e   : > { %v4634_v21 = vpop.f32.mrf.mxu2 }
 0x48f   : > { %v4670_v22 = vadd.f32 %v4634_v21, %v4389_v19  ;;  %v5051_v23 = vpop.permute.xlu2 %5050 }
 0x490   : > { %5128 = vst.msk [vmem:[%s6115_s22 + $0x130] sm:$0xff] %vm2756_vm3, %v5051_v23  ;;  %v4912_v24 = vpop.f32.mrf.mxu3 }
 0x491   : > { %v4948_v27 = vadd.f32 %v4912_v24, %v4670_v22 }
 0x492   : > { %v4391_v20 = vpop.f32.mrf.mxu1 }
 0x493   : > { %v4980_v28 = vadd.f32 %v6897_v37, %v4948_v27  ;;  %v4179_v29 = vpop.f32.mrf.mxu0 }
 0x494   : > { %v4392_v30 = vadd.f32 %v4391_v20, %v4179_v29 }
 0x495   : > { %5074 = vrot.lane.b32.xlu2 %v4980_v28, %s5872_s10 }
 0x496   : > { %v4637_v31 = vpop.f32.mrf.mxu2 }
 0x497   : > { %v4671_v32 = vadd.f32 %v4637_v31, %v4392_v30  ;;  %v5047_v33 = vpop.permute.xlu0 %5046 }
 0x498   : > { %5126 = vst.msk [vmem:[%s6115_s22 + $0x110] sm:$0xff] %vm2756_vm3, %v5047_v33  ;;  %v4915_v34 = vpop.f32.mrf.mxu3 }
 0x499   : > { %v4949_v35 = vadd.f32 %v4915_v34, %v4671_v32 }
 0x49b   : > { %v4981_v36 = vadd.f32 %v6897_v37, %v4949_v35 }
 0x49d   : > { %5076 = vrot.lane.b32.xlu0 %v4981_v36, %s5872_s10 }
 0x49f   : > { %v5049_v8 = vpop.permute.xlu1 %5048 }
 0x4a0   : > { %5127 = vst.msk [vmem:[%s6115_s22 + $0x118] sm:$0xff] %vm2756_vm3, %v5049_v8 }
 0x4a7   : > { %v5057_v25 = vpop.permute.xlu2 %5056 }
 0x4a8   : > { %5131 = vst.msk [vmem:[%s6115_s22 + $0x158] sm:$0xff] %vm2756_vm3, %v5057_v25 }
 0x4af   : > { %v5053_v38 = vpop.permute.xlu0 %5052 }
 0x4b0   : > { %5129 = vst.msk [vmem:[%s6115_s22 + $0x138] sm:$0xff] %vm2756_vm3, %v5053_v38 }
 0x4b7   : > { %v5055_v39 = vpop.permute.xlu1 %5054 }
 0x4b8   : > { %5130 = vst.msk [vmem:[%s6115_s22 + $0x150] sm:$0xff] %vm2756_vm3, %v5055_v39 }
 0x4bf   : > { %v5063_v37 = vpop.permute.xlu2 %5062 }
 0x4c0   : > { %5134 = vst.msk [vmem:[%s6115_s22 + $0x190] sm:$0xff] %vm2756_vm3, %v5063_v37 }
 0x4c7   : > { %v5059_v40 = vpop.permute.xlu0 %5058 }
 0x4c8   : > { %5132 = vst.msk [vmem:[%s6115_s22 + $0x170] sm:$0xff] %vm2756_vm3, %v5059_v40 }
 0x4cf   : > { %v5061_v41 = vpop.permute.xlu1 %5060 }
 0x4d0   : > { %5133 = vst.msk [vmem:[%s6115_s22 + $0x178] sm:$0xff] %vm2756_vm3, %v5061_v41 }
 0x4d7   : > { %v5069_v42 = vpop.permute.xlu2 %5068 }
 0x4d8   : > { %5137 = vst.msk [vmem:[%s6115_s22 + $0x1b8] sm:$0xff] %vm2756_vm3, %v5069_v42 }
 0x4df   : > { %v5065_v43 = vpop.permute.xlu0 %5064 }
 0x4e0   : > { %5135 = vst.msk [vmem:[%s6115_s22 + $0x198] sm:$0xff] %vm2756_vm3, %v5065_v43 }
 0x4e7   : > { %v5067_v44 = vpop.permute.xlu1 %5066 }
 0x4e8   : > { %5136 = vst.msk [vmem:[%s6115_s22 + $0x1b0] sm:$0xff] %vm2756_vm3, %v5067_v44 }
 0x4ef   : > { %v5075_v45 = vpop.permute.xlu2 %5074 }
 0x4f0   : > { %5140 = vst.msk [vmem:[%s6115_s22 + $0x1f0] sm:$0xff] %vm2756_vm3, %v5075_v45 }
 0x4f7   : > { %v5071_v46 = vpop.permute.xlu0 %5070 }
 0x4f8   : > { %5138 = vst.msk [vmem:[%s6115_s22 + $0x1d0] sm:$0xff] %vm2756_vm3, %v5071_v46 }
 0x4ff   : > { %v5073_v47 = vpop.permute.xlu1 %5072 }
 0x500   : > { %5139 = vst.msk [vmem:[%s6115_s22 + $0x1d8] sm:$0xff] %vm2756_vm3, %v5073_v47 }
 0x50f   : > { %v5077_v48 = vpop.permute.xlu0 %5076 }
 0x510   : > { %5141 = vst.msk [vmem:[%s6115_s22 + $0x1f8] sm:$0xff] %vm2756_vm3, %v5077_v48 }
 0x511 PF: > { %s14_s17 = sadd.s32 1, %s5870_s17   ;;  %s7115_s15 = smov %s5866_s16 }
 0x512   : > { %p11_p5 = scmp.ge.s32.totalorder %s14_s17, 4   ;;  %s7116_s16 = smov %s7118_s18 }
 0x514   :  { %13 = sbr.rel (!%p11_p5) target bundleno = 2 (0x2), region = 87 }

</bundles_post_ra>
